<compile_context>
chip_gen: v6e
topology: v6e:2x2x1
jax: 0.10.0
libtpu: 0.0.40
codegen_flags: <defaults>
</compile_context>

<pallas_src>
import functools

import jax
import jax.numpy as jnp
from jax.experimental import pallas as pl
from jax.experimental.pallas import tpu as pltpu

_LANES = 128


# ----------------------------- fused kernel ----------------------------------


def _fused_forward_kernel(
    # activations / mask (blocked over batch)
    emb_ref, maskb_ref,
    # stacked per-layer weights (VMEM residents)
    wqkv_ref, bqkv_ref, wo_ref, bo_ref, ln1g_ref, ln1b_ref,
    wi_ref, bi_ref, wo2_ref, bo2_ref, ln2g_ref, ln2b_ref,
    # embedding LN + MLM head + decoder + detection weights
    embg_ref, embb_ref,
    mlmw_ref, mlmb_ref, mlmg_ref, mlmlb_ref,
    decw_ref, decb_ref, detw_ref, detb_ref,
    # outputs
    logits_ref, prob_ref,
    # scratch
    ctx_ref,
    *, num_layers, num_heads, head_dim, eps):
    H = num_heads * head_dim
    scale = 1.0 / (head_dim ** 0.5)

    def mm(x, w_bf16):
        # bf16 MXU operands, f32 accumulation.
        return jnp.dot(x.astype(jnp.bfloat16), w_bf16,
                       preferred_element_type=jnp.float32)

    def layer_norm(x, g, b):
        mu = jnp.mean(x, axis=-1, keepdims=True)
        var = jnp.mean(jnp.square(x - mu), axis=-1, keepdims=True)
        return (x - mu) * jax.lax.rsqrt(var + eps) * g + b

    def gelu(x):
        # TODO(synk): tanh-approx GELU; HF BERT's default is the exact erf GELU.
        return 0.5 * x * (1.0 + jnp.tanh(0.7978845608028654 *
                                         (x + 0.044715 * x * x * x)))

    bias = maskb_ref[0]                                  # (1, S) additive mask

    # --- embedding layernorm ---
    x = layer_norm(emb_ref[...], embg_ref[...], embb_ref[...])     # (S, H) f32

    # --- encoder layers (statically unrolled; weights stay resident) ---
    for l in range(num_layers):
        qkv = mm(x, wqkv_ref[l]) + bqkv_ref[l]          # (S, 3H) f32
        for h in range(num_heads):
            lo = h * head_dim
            q = qkv[:, lo:lo + head_dim]
            k = qkv[:, H + lo:H + lo + head_dim]
            v = qkv[:, 2 * H + lo:2 * H + lo + head_dim]
            # scores = q @ k^T  (contraction on last dim of both)
            s = jax.lax.dot_general(
                q.astype(jnp.bfloat16), k.astype(jnp.bfloat16),
                (((1,), (1,)), ((), ())),
                preferred_element_type=jnp.float32) * scale        # (S, S)
            s = s + bias
            s = s - jnp.max(s, axis=-1, keepdims=True)
            p = jnp.exp(s)
            p = p * pl.reciprocal(jnp.sum(p, axis=-1, keepdims=True), approx=True)
            ctx_ref[:, lo:lo + head_dim] = jnp.dot(
                p.astype(jnp.bfloat16), v.astype(jnp.bfloat16),
                preferred_element_type=jnp.float32)
        attn_out = mm(ctx_ref[...], wo_ref[l]) + bo_ref[l]
        x = layer_norm(attn_out + x, ln1g_ref[l], ln1b_ref[l])
        inter = gelu(mm(x, wi_ref[l]) + bi_ref[l])
        ffn_out = mm(inter, wo2_ref[l]) + bo2_ref[l]
        x = layer_norm(ffn_out + x, ln2g_ref[l], ln2b_ref[l])

    # x == bert_outputs.hidden_states[-1] for this batch row, shape (S, H)

    # --- MLM head: dense + gelu + layernorm + decoder -> logits (lane-dense) ---
    t = gelu(mm(x, mlmw_ref[...]) + mlmb_ref[...])
    t = layer_norm(t, mlmg_ref[...], mlmlb_ref[...])
    logits_ref[...] = mm(t, decw_ref[...]) + decb_ref[...]         # (S, Vp)

    # --- detection head on last hidden state, 128-wide dense slab (col 0 = prob) ---
    prob_ref[...] = mm(x, detw_ref[...]) + detb_ref[...]           # (S, 128)


# ----------------------------- wrapper ----------------------------------------


def _resident(shape):
    nd = len(shape)
    return pl.BlockSpec(shape, lambda b, _nd=nd: (0,) * _nd)


def bert_finetune_mac_forward(params, input_ids, input_tyi, input_attn_mask):
    """Equivalent of BertFineTuneMac_combineLoss.forward with text_labels=None.

    Returns (prob, logits):
      prob   = detection(hidden_states[-1])   shape (B, S, 1)   (pre-sigmoid)
      logits = MLM head(hidden_states[-1])    shape (B, S, vocab)
    """
    B, S = input_ids.shape
    H = params["word_emb"].shape[1]
    NH = params["heads"]
    HD = H // NH
    V = params["decoder_w"].shape[1]
    L = len(params["layers"])
    Vp = ((V + _LANES - 1) // _LANES) * _LANES

    f32, bf16 = jnp.float32, jnp.bfloat16

    # --- embeddings: table gather is parameter glue, kept in plain JAX ---
    pos_ids = jnp.arange(S, dtype=jnp.int32)
    emb = (jnp.take(params["word_emb"], input_ids, axis=0)
           + jnp.take(params["pos_emb"], pos_ids, axis=0)[None, :, :]
           + jnp.take(params["type_emb"], input_tyi, axis=0))
    emb = emb.reshape(B * S, H).astype(f32)

    # additive attention-mask bias, HuggingFace style: (1 - mask) * large_negative
    mask_bias = ((1.0 - input_attn_mask.astype(f32)) * (-1e9)).reshape(B, 1, S)

    layers = params["layers"]
    wqkv = jnp.stack([jnp.concatenate([l["wq"], l["wk"], l["wv"]], axis=1)
                      for l in layers]).astype(bf16)                 # (L, H, 3H)
    bqkv = jnp.stack([jnp.concatenate([l["bq"], l["bk"], l["bv"]])[None, :]
                      for l in layers]).astype(f32)                  # (L, 1, 3H)
    wo   = jnp.stack([l["wo"] for l in layers]).astype(bf16)
    bo   = jnp.stack([l["bo"][None, :] for l in layers]).astype(f32)
    ln1g = jnp.stack([l["ln1_g"][None, :] for l in layers]).astype(f32)
    ln1b = jnp.stack([l["ln1_b"][None, :] for l in layers]).astype(f32)
    wi   = jnp.stack([l["wi"] for l in layers]).astype(bf16)
    bi   = jnp.stack([l["bi"][None, :] for l in layers]).astype(f32)
    wo2  = jnp.stack([l["wo2"] for l in layers]).astype(bf16)
    bo2  = jnp.stack([l["bo2"][None, :] for l in layers]).astype(f32)
    ln2g = jnp.stack([l["ln2_g"][None, :] for l in layers]).astype(f32)
    ln2b = jnp.stack([l["ln2_b"][None, :] for l in layers]).astype(f32)

    embg  = params["emb_ln_g"][None, :].astype(f32)
    embb  = params["emb_ln_b"][None, :].astype(f32)
    mlmw  = params["mlm_dense_w"].astype(bf16)
    mlmb  = params["mlm_dense_b"][None, :].astype(f32)
    mlmg  = params["mlm_ln_g"][None, :].astype(f32)
    mlmlb = params["mlm_ln_b"][None, :].astype(f32)

    # decoder padded to a multiple of 128 lanes; detection packed into a dense
    # 128-wide slab (column 0 = real weight) so no 1-lane masked stores.
    decw = jnp.zeros((H, Vp), bf16).at[:, :V].set(params["decoder_w"].astype(bf16))
    decb = jnp.zeros((1, Vp), f32).at[:, :V].set(params["decoder_b"][None, :].astype(f32))
    detw = jnp.zeros((H, _LANES), bf16).at[:, :1].set(params["det_w"].astype(bf16))
    detb = jnp.zeros((1, _LANES), f32).at[:, :1].set(params["det_b"][None, :].astype(f32))

    kernel = functools.partial(
        _fused_forward_kernel,
        num_layers=L, num_heads=NH, head_dim=HD, eps=1e-12)

    in_specs = [
        pl.BlockSpec((S, H), lambda b: (b, 0)),          # embeddings (per batch)
        pl.BlockSpec((1, 1, S), lambda b: (b, 0, 0)),    # mask bias (per batch)
        _resident(wqkv.shape), _resident(bqkv.shape),
        _resident(wo.shape), _resident(bo.shape),
        _resident(ln1g.shape), _resident(ln1b.shape),
        _resident(wi.shape), _resident(bi.shape),
        _resident(wo2.shape), _resident(bo2.shape),
        _resident(ln2g.shape), _resident(ln2b.shape),
        _resident(embg.shape), _resident(embb.shape),
        _resident(mlmw.shape), _resident(mlmb.shape),
        _resident(mlmg.shape), _resident(mlmlb.shape),
        _resident(decw.shape), _resident(decb.shape),
        _resident(detw.shape), _resident(detb.shape),
    ]
    out_specs = (
        pl.BlockSpec((S, Vp), lambda b: (b, 0)),
        pl.BlockSpec((S, _LANES), lambda b: (b, 0)),
    )
    out_shape = (
        jax.ShapeDtypeStruct((B * S, Vp), f32),
        jax.ShapeDtypeStruct((B * S, _LANES), f32),
    )

    logits_pad, prob_pad = pl.pallas_call(
        kernel,
        grid=(B,),
        in_specs=in_specs,
        out_specs=out_specs,
        out_shape=out_shape,
        scratch_shapes=[pltpu.VMEM((S, H), jnp.float32)],
        compiler_params=pltpu.CompilerParams(
            dimension_semantics=("parallel",)),
    )(emb, mask_bias, wqkv, bqkv, wo, bo, ln1g, ln1b, wi, bi, wo2, bo2,
      ln2g, ln2b, embg, embb, mlmw, mlmb, mlmg, mlmlb, decw, decb, detw, detb)

    logits = logits_pad[:, :V].reshape(B, S, V)
    prob = prob_pad[:, :1].reshape(B, S, 1)

    # text_labels is None  ->  outputs = (prob, bert_outputs.logits)
    return prob, logits


# ----------------------------- synthetic model params -------------------------


def init_params(key, vocab=128, hidden=32, num_layers=2, heads=4, inter=64,
                max_pos=16, type_vocab=2):
    keys = iter(jax.random.split(key, 64))

    def nrm(shape):
        return 0.02 * jax.random.normal(next(keys), shape, jnp.float32)

    params = dict(
        heads=heads,
        word_emb=nrm((vocab, hidden)),
        pos_emb=nrm((max_pos, hidden)),
        type_emb=nrm((type_vocab, hidden)),
        emb_ln_g=jnp.ones((hidden,), jnp.float32),
        emb_ln_b=jnp.zeros((hidden,), jnp.float32),
        layers=[],
        mlm_dense_w=nrm((hidden, hidden)),
        mlm_dense_b=jnp.zeros((hidden,), jnp.float32),
        mlm_ln_g=jnp.ones((hidden,), jnp.float32),
        mlm_ln_b=jnp.zeros((hidden,), jnp.float32),
        decoder_w=nrm((hidden, vocab)),
        decoder_b=jnp.zeros((vocab,), jnp.float32),
        det_w=nrm((hidden, 1)),          # self.detection = nn.Linear(hidden_size, 1)
        det_b=jnp.zeros((1,), jnp.float32),
    )
    for _ in range(num_layers):
        params["layers"].append(dict(
            wq=nrm((hidden, hidden)), bq=jnp.zeros((hidden,), jnp.float32),
            wk=nrm((hidden, hidden)), bk=jnp.zeros((hidden,), jnp.float32),
            wv=nrm((hidden, hidden)), bv=jnp.zeros((hidden,), jnp.float32),
            wo=nrm((hidden, hidden)), bo=jnp.zeros((hidden,), jnp.float32),
            ln1_g=jnp.ones((hidden,), jnp.float32), ln1_b=jnp.zeros((hidden,), jnp.float32),
            wi=nrm((hidden, inter)), bi=jnp.zeros((inter,), jnp.float32),
            wo2=nrm((inter, hidden)), bo2=jnp.zeros((hidden,), jnp.float32),
            ln2_g=jnp.ones((hidden,), jnp.float32), ln2_b=jnp.zeros((hidden,), jnp.float32),
        ))
    return params


# ----------------------------- main -------------------------------------------


if __name__ == "__main__":
    key = jax.random.PRNGKey(0)
    pkey, dkey = jax.random.split(key)
    params = init_params(pkey)

    B, S, VOCAB = 2, 8, 128
    input_ids = jax.random.randint(jax.random.fold_in(dkey, 0), (B, S), 0, VOCAB,
                                   dtype=jnp.int32)
    input_tyi = jnp.zeros((B, S), jnp.int32)
    input_attn_mask = jnp.ones((B, S), jnp.int32)

    prob, logits = bert_finetune_mac_forward(params, input_ids, input_tyi,
                                             input_attn_mask)
    jax.block_until_ready((prob, logits))

    assert prob.shape == (B, S, 1) and logits.shape == (B, S, VOCAB)
    assert bool(jnp.all(jnp.isfinite(prob))) and bool(jnp.all(jnp.isfinite(logits)))
    print("KERNEL_OK")
</pallas_src>

<mosaic_0001>
module attributes {stable_mosaic.version = 11 : i64} {
  func.func @_fused_forward_kernel(%arg0: i32, %arg1: memref<8x32xf32, #tpu.memory_space<vmem>>, %arg2: memref<1x1x8xf32, #tpu.memory_space<vmem>>, %arg3: memref<2x32x96xbf16, #tpu.memory_space<vmem>>, %arg4: memref<2x1x96xf32, #tpu.memory_space<vmem>>, %arg5: memref<2x32x32xbf16, #tpu.memory_space<vmem>>, %arg6: memref<2x1x32xf32, #tpu.memory_space<vmem>>, %arg7: memref<2x1x32xf32, #tpu.memory_space<vmem>>, %arg8: memref<2x1x32xf32, #tpu.memory_space<vmem>>, %arg9: memref<2x32x64xbf16, #tpu.memory_space<vmem>>, %arg10: memref<2x1x64xf32, #tpu.memory_space<vmem>>, %arg11: memref<2x64x32xbf16, #tpu.memory_space<vmem>>, %arg12: memref<2x1x32xf32, #tpu.memory_space<vmem>>, %arg13: memref<2x1x32xf32, #tpu.memory_space<vmem>>, %arg14: memref<2x1x32xf32, #tpu.memory_space<vmem>>, %arg15: memref<1x32xf32, #tpu.memory_space<vmem>>, %arg16: memref<1x32xf32, #tpu.memory_space<vmem>>, %arg17: memref<32x32xbf16, #tpu.memory_space<vmem>>, %arg18: memref<1x32xf32, #tpu.memory_space<vmem>>, %arg19: memref<1x32xf32, #tpu.memory_space<vmem>>, %arg20: memref<1x32xf32, #tpu.memory_space<vmem>>, %arg21: memref<32x128xbf16, #tpu.memory_space<vmem>>, %arg22: memref<1x128xf32, #tpu.memory_space<vmem>>, %arg23: memref<32x128xbf16, #tpu.memory_space<vmem>>, %arg24: memref<1x128xf32, #tpu.memory_space<vmem>>, %arg25: memref<8x128xf32, #tpu.memory_space<vmem>>, %arg26: memref<8x128xf32, #tpu.memory_space<vmem>>, %arg27: memref<8x32xf32, #tpu.memory_space<vmem>>) attributes {dimension_semantics = [#tpu.dimension_semantics<parallel>], iteration_bounds = array<i64: 2>, scalar_prefetch = 0 : i64, scratch_operands = 1 : i64, tpu.core_type = #tpu.core_type<tc>, window_params = [{transform_indices = @transform_0, window_bounds = array<i64: 8, 32>}, {transform_indices = @transform_1, window_bounds = array<i64: 1, 1, 8>}, {pipeline_mode = #tpu.pipeline_mode<synchronous>, transform_indices = @transform_2, window_bounds = array<i64: 2, 32, 96>}, {pipeline_mode = #tpu.pipeline_mode<synchronous>, transform_indices = @transform_3, window_bounds = array<i64: 2, 1, 96>}, {pipeline_mode = #tpu.pipeline_mode<synchronous>, transform_indices = @transform_4, window_bounds = array<i64: 2, 32, 32>}, {pipeline_mode = #tpu.pipeline_mode<synchronous>, transform_indices = @transform_5, window_bounds = array<i64: 2, 1, 32>}, {pipeline_mode = #tpu.pipeline_mode<synchronous>, transform_indices = @transform_6, window_bounds = array<i64: 2, 1, 32>}, {pipeline_mode = #tpu.pipeline_mode<synchronous>, transform_indices = @transform_7, window_bounds = array<i64: 2, 1, 32>}, {pipeline_mode = #tpu.pipeline_mode<synchronous>, transform_indices = @transform_8, window_bounds = array<i64: 2, 32, 64>}, {pipeline_mode = #tpu.pipeline_mode<synchronous>, transform_indices = @transform_9, window_bounds = array<i64: 2, 1, 64>}, {pipeline_mode = #tpu.pipeline_mode<synchronous>, transform_indices = @transform_10, window_bounds = array<i64: 2, 64, 32>}, {pipeline_mode = #tpu.pipeline_mode<synchronous>, transform_indices = @transform_11, window_bounds = array<i64: 2, 1, 32>}, {pipeline_mode = #tpu.pipeline_mode<synchronous>, transform_indices = @transform_12, window_bounds = array<i64: 2, 1, 32>}, {pipeline_mode = #tpu.pipeline_mode<synchronous>, transform_indices = @transform_13, window_bounds = array<i64: 2, 1, 32>}, {pipeline_mode = #tpu.pipeline_mode<synchronous>, transform_indices = @transform_14, window_bounds = array<i64: 1, 32>}, {pipeline_mode = #tpu.pipeline_mode<synchronous>, transform_indices = @transform_15, window_bounds = array<i64: 1, 32>}, {pipeline_mode = #tpu.pipeline_mode<synchronous>, transform_indices = @transform_16, window_bounds = array<i64: 32, 32>}, {pipeline_mode = #tpu.pipeline_mode<synchronous>, transform_indices = @transform_17, window_bounds = array<i64: 1, 32>}, {pipeline_mode = #tpu.pipeline_mode<synchronous>, transform_indices = @transform_18, window_bounds = array<i64: 1, 32>}, {pipeline_mode = #tpu.pipeline_mode<synchronous>, transform_indices = @transform_19, window_bounds = array<i64: 1, 32>}, {pipeline_mode = #tpu.pipeline_mode<synchronous>, transform_indices = @transform_20, window_bounds = array<i64: 32, 128>}, {pipeline_mode = #tpu.pipeline_mode<synchronous>, transform_indices = @transform_21, window_bounds = array<i64: 1, 128>}, {pipeline_mode = #tpu.pipeline_mode<synchronous>, transform_indices = @transform_22, window_bounds = array<i64: 32, 128>}, {pipeline_mode = #tpu.pipeline_mode<synchronous>, transform_indices = @transform_23, window_bounds = array<i64: 1, 128>}, {transform_indices = @transform_24, window_bounds = array<i64: 8, 128>}, {transform_indices = @transform_25, window_bounds = array<i64: 8, 128>}]} {
    %c0 = arith.constant 0 : index
    %c0_0 = arith.constant 0 : index
    %c0_1 = arith.constant 0 : index
    %0 = vector.load %arg2[%c0, %c0_0, %c0_1] : memref<1x1x8xf32, #tpu.memory_space<vmem>>, vector<1x1x8xf32>
    %1 = vector.shape_cast %0 : vector<1x1x8xf32> to vector<1x8xf32>
    %c0_2 = arith.constant 0 : index
    %c0_3 = arith.constant 0 : index
    %2 = vector.load %arg1[%c0_2, %c0_3] : memref<8x32xf32, #tpu.memory_space<vmem>>, vector<8x32xf32>
    %c0_4 = arith.constant 0 : index
    %c0_5 = arith.constant 0 : index
    %3 = vector.load %arg15[%c0_4, %c0_5] : memref<1x32xf32, #tpu.memory_space<vmem>>, vector<1x32xf32>
    %c0_6 = arith.constant 0 : index
    %c0_7 = arith.constant 0 : index
    %4 = vector.load %arg16[%c0_6, %c0_7] : memref<1x32xf32, #tpu.memory_space<vmem>>, vector<1x32xf32>
    %cst = arith.constant dense<0.000000e+00> : vector<8xf32>
    %5 = vector.multi_reduction <add>, %2, %cst [1] : vector<8x32xf32> to vector<8xf32>
    %6 = vector.shape_cast %5 : vector<8xf32> to vector<8x1xf32>
    %cst_8 = arith.constant 3.200000e+01 : f32
    %7 = vector.broadcast %cst_8 : f32 to vector<8x1xf32>
    %8 = arith.divf %6, %7 : vector<8x1xf32>
    %9 = vector.broadcast %8 : vector<8x1xf32> to vector<8x32xf32>
    %10 = arith.subf %2, %9 : vector<8x32xf32>
    %11 = arith.mulf %10, %10 : vector<8x32xf32>
    %cst_9 = arith.constant dense<0.000000e+00> : vector<8xf32>
    %12 = vector.multi_reduction <add>, %11, %cst_9 [1] : vector<8x32xf32> to vector<8xf32>
    %13 = vector.shape_cast %12 : vector<8xf32> to vector<8x1xf32>
    %cst_10 = arith.constant 3.200000e+01 : f32
    %14 = vector.broadcast %cst_10 : f32 to vector<8x1xf32>
    %15 = arith.divf %13, %14 : vector<8x1xf32>
    %16 = vector.broadcast %8 : vector<8x1xf32> to vector<8x32xf32>
    %17 = arith.subf %2, %16 : vector<8x32xf32>
    %cst_11 = arith.constant 9.99999996E-13 : f32
    %18 = vector.broadcast %cst_11 : f32 to vector<8x1xf32>
    %19 = arith.addf %15, %18 : vector<8x1xf32>
    %20 = math.rsqrt %19 : vector<8x1xf32>
    %21 = vector.broadcast %20 : vector<8x1xf32> to vector<8x32xf32>
    %22 = arith.mulf %17, %21 : vector<8x32xf32>
    %23 = vector.broadcast %3 : vector<1x32xf32> to vector<8x32xf32>
    %24 = arith.mulf %22, %23 : vector<8x32xf32>
    %25 = vector.broadcast %4 : vector<1x32xf32> to vector<8x32xf32>
    %26 = arith.addf %24, %25 : vector<8x32xf32>
    %c0_12 = arith.constant 0 : index
    %c0_13 = arith.constant 0 : index
    %c0_14 = arith.constant 0 : index
    %27 = vector.load %arg3[%c0_12, %c0_13, %c0_14] : memref<2x32x96xbf16, #tpu.memory_space<vmem>>, vector<1x32x96xbf16>
    %28 = vector.shape_cast %27 : vector<1x32x96xbf16> to vector<32x96xbf16>
    %29 = arith.truncf %26 : vector<8x32xf32> to vector<8x32xbf16>
    %cst_15 = arith.constant dense<0.000000e+00> : vector<8x96xf32>
    %30 = tpu.matmul %29, %28, %cst_15 {dimension_numbers = #tpu.dot_dimension_numbers<[1], [0], [0], [1], [0, 0, 1, 1], [], []>} : vector<8x32xbf16>, vector<32x96xbf16>, vector<8x96xf32> -> vector<8x96xf32>
    %c0_16 = arith.constant 0 : index
    %c0_17 = arith.constant 0 : index
    %c0_18 = arith.constant 0 : index
    %31 = vector.load %arg4[%c0_16, %c0_17, %c0_18] : memref<2x1x96xf32, #tpu.memory_space<vmem>>, vector<1x1x96xf32>
    %32 = vector.shape_cast %31 : vector<1x1x96xf32> to vector<1x96xf32>
    %33 = vector.broadcast %32 : vector<1x96xf32> to vector<8x96xf32>
    %34 = arith.addf %30, %33 : vector<8x96xf32>
    %35 = vector.extract_strided_slice %34 {offsets = [0, 0], sizes = [8, 8], strides = [1, 1]} : vector<8x96xf32> to vector<8x8xf32>
    %36 = vector.extract_strided_slice %34 {offsets = [0, 32], sizes = [8, 8], strides = [1, 1]} : vector<8x96xf32> to vector<8x8xf32>
    %37 = vector.extract_strided_slice %34 {offsets = [0, 64], sizes = [8, 8], strides = [1, 1]} : vector<8x96xf32> to vector<8x8xf32>
    %38 = arith.truncf %35 : vector<8x8xf32> to vector<8x8xbf16>
    %39 = arith.truncf %36 : vector<8x8xf32> to vector<8x8xbf16>
    %cst_19 = arith.constant dense<0.000000e+00> : vector<8x8xf32>
    %40 = tpu.matmul %38, %39, %cst_19 {dimension_numbers = #tpu.dot_dimension_numbers<[1], [1], [0], [0], [0, 0, 1, 0], [], []>} : vector<8x8xbf16>, vector<8x8xbf16>, vector<8x8xf32> -> vector<8x8xf32>
    %cst_20 = arith.constant 0.353553385 : f32
    %41 = vector.broadcast %cst_20 : f32 to vector<8x8xf32>
    %42 = arith.mulf %40, %41 : vector<8x8xf32>
    %43 = vector.broadcast %1 : vector<1x8xf32> to vector<8x8xf32>
    %44 = arith.addf %42, %43 : vector<8x8xf32>
    %cst_21 = arith.constant dense<0xFF800000> : vector<8xf32>
    %45 = vector.multi_reduction <maximumf>, %44, %cst_21 [1] : vector<8x8xf32> to vector<8xf32>
    %46 = vector.shape_cast %45 : vector<8xf32> to vector<8x1xf32>
    %47 = vector.broadcast %46 : vector<8x1xf32> to vector<8x8xf32>
    %48 = arith.subf %44, %47 : vector<8x8xf32>
    %49 = math.exp %48 : vector<8x8xf32>
    %cst_22 = arith.constant dense<0.000000e+00> : vector<8xf32>
    %50 = vector.multi_reduction <add>, %49, %cst_22 [1] : vector<8x8xf32> to vector<8xf32>
    %51 = vector.shape_cast %50 : vector<8xf32> to vector<8x1xf32>
    %52 = tpu.reciprocal %51 {approx = true} : vector<8x1xf32> -> vector<8x1xf32>
    %53 = vector.broadcast %52 : vector<8x1xf32> to vector<8x8xf32>
    %54 = arith.mulf %49, %53 : vector<8x8xf32>
    %55 = arith.truncf %54 : vector<8x8xf32> to vector<8x8xbf16>
    %56 = arith.truncf %37 : vector<8x8xf32> to vector<8x8xbf16>
    %cst_23 = arith.constant dense<0.000000e+00> : vector<8x8xf32>
    %57 = tpu.matmul %55, %56, %cst_23 {dimension_numbers = #tpu.dot_dimension_numbers<[1], [0], [0], [1], [0, 0, 1, 1], [], []>} : vector<8x8xbf16>, vector<8x8xbf16>, vector<8x8xf32> -> vector<8x8xf32>
    %c0_24 = arith.constant 0 : index
    %c0_25 = arith.constant 0 : index
    %58 = vector.load %arg27[%c0_24, %c0_25] : memref<8x32xf32, #tpu.memory_space<vmem>>, vector<8x8xf32>
    tpu.vector_store %arg27[%c0_24, %c0_25], %57 {strides = array<i32>} : memref<8x32xf32, #tpu.memory_space<vmem>>, vector<8x8xf32>,
    %59 = vector.extract_strided_slice %34 {offsets = [0, 8], sizes = [8, 8], strides = [1, 1]} : vector<8x96xf32> to vector<8x8xf32>
    %60 = vector.extract_strided_slice %34 {offsets = [0, 40], sizes = [8, 8], strides = [1, 1]} : vector<8x96xf32> to vector<8x8xf32>
    %61 = vector.extract_strided_slice %34 {offsets = [0, 72], sizes = [8, 8], strides = [1, 1]} : vector<8x96xf32> to vector<8x8xf32>
    %62 = arith.truncf %59 : vector<8x8xf32> to vector<8x8xbf16>
    %63 = arith.truncf %60 : vector<8x8xf32> to vector<8x8xbf16>
    %cst_26 = arith.constant dense<0.000000e+00> : vector<8x8xf32>
    %64 = tpu.matmul %62, %63, %cst_26 {dimension_numbers = #tpu.dot_dimension_numbers<[1], [1], [0], [0], [0, 0, 1, 0], [], []>} : vector<8x8xbf16>, vector<8x8xbf16>, vector<8x8xf32> -> vector<8x8xf32>
    %cst_27 = arith.constant 0.353553385 : f32
    %65 = vector.broadcast %cst_27 : f32 to vector<8x8xf32>
    %66 = arith.mulf %64, %65 : vector<8x8xf32>
    %67 = vector.broadcast %1 : vector<1x8xf32> to vector<8x8xf32>
    %68 = arith.addf %66, %67 : vector<8x8xf32>
    %cst_28 = arith.constant dense<0xFF800000> : vector<8xf32>
    %69 = vector.multi_reduction <maximumf>, %68, %cst_28 [1] : vector<8x8xf32> to vector<8xf32>
    %70 = vector.shape_cast %69 : vector<8xf32> to vector<8x1xf32>
    %71 = vector.broadcast %70 : vector<8x1xf32> to vector<8x8xf32>
    %72 = arith.subf %68, %71 : vector<8x8xf32>
    %73 = math.exp %72 : vector<8x8xf32>
    %cst_29 = arith.constant dense<0.000000e+00> : vector<8xf32>
    %74 = vector.multi_reduction <add>, %73, %cst_29 [1] : vector<8x8xf32> to vector<8xf32>
    %75 = vector.shape_cast %74 : vector<8xf32> to vector<8x1xf32>
    %76 = tpu.reciprocal %75 {approx = true} : vector<8x1xf32> -> vector<8x1xf32>
    %77 = vector.broadcast %76 : vector<8x1xf32> to vector<8x8xf32>
    %78 = arith.mulf %73, %77 : vector<8x8xf32>
    %79 = arith.truncf %78 : vector<8x8xf32> to vector<8x8xbf16>
    %80 = arith.truncf %61 : vector<8x8xf32> to vector<8x8xbf16>
    %cst_30 = arith.constant dense<0.000000e+00> : vector<8x8xf32>
    %81 = tpu.matmul %79, %80, %cst_30 {dimension_numbers = #tpu.dot_dimension_numbers<[1], [0], [0], [1], [0, 0, 1, 1], [], []>} : vector<8x8xbf16>, vector<8x8xbf16>, vector<8x8xf32> -> vector<8x8xf32>
    %c0_31 = arith.constant 0 : index
    %c8 = arith.constant 8 : index
    %82 = vector.load %arg27[%c0_31, %c8] : memref<8x32xf32, #tpu.memory_space<vmem>>, vector<8x8xf32>
    tpu.vector_store %arg27[%c0_31, %c8], %81 {strides = array<i32>} : memref<8x32xf32, #tpu.memory_space<vmem>>, vector<8x8xf32>,
    %83 = vector.extract_strided_slice %34 {offsets = [0, 16], sizes = [8, 8], strides = [1, 1]} : vector<8x96xf32> to vector<8x8xf32>
    %84 = vector.extract_strided_slice %34 {offsets = [0, 48], sizes = [8, 8], strides = [1, 1]} : vector<8x96xf32> to vector<8x8xf32>
    %85 = vector.extract_strided_slice %34 {offsets = [0, 80], sizes = [8, 8], strides = [1, 1]} : vector<8x96xf32> to vector<8x8xf32>
    %86 = arith.truncf %83 : vector<8x8xf32> to vector<8x8xbf16>
    %87 = arith.truncf %84 : vector<8x8xf32> to vector<8x8xbf16>
    %cst_32 = arith.constant dense<0.000000e+00> : vector<8x8xf32>
    %88 = tpu.matmul %86, %87, %cst_32 {dimension_numbers = #tpu.dot_dimension_numbers<[1], [1], [0], [0], [0, 0, 1, 0], [], []>} : vector<8x8xbf16>, vector<8x8xbf16>, vector<8x8xf32> -> vector<8x8xf32>
    %cst_33 = arith.constant 0.353553385 : f32
    %89 = vector.broadcast %cst_33 : f32 to vector<8x8xf32>
    %90 = arith.mulf %88, %89 : vector<8x8xf32>
    %91 = vector.broadcast %1 : vector<1x8xf32> to vector<8x8xf32>
    %92 = arith.addf %90, %91 : vector<8x8xf32>
    %cst_34 = arith.constant dense<0xFF800000> : vector<8xf32>
    %93 = vector.multi_reduction <maximumf>, %92, %cst_34 [1] : vector<8x8xf32> to vector<8xf32>
    %94 = vector.shape_cast %93 : vector<8xf32> to vector<8x1xf32>
    %95 = vector.broadcast %94 : vector<8x1xf32> to vector<8x8xf32>
    %96 = arith.subf %92, %95 : vector<8x8xf32>
    %97 = math.exp %96 : vector<8x8xf32>
    %cst_35 = arith.constant dense<0.000000e+00> : vector<8xf32>
    %98 = vector.multi_reduction <add>, %97, %cst_35 [1] : vector<8x8xf32> to vector<8xf32>
    %99 = vector.shape_cast %98 : vector<8xf32> to vector<8x1xf32>
    %100 = tpu.reciprocal %99 {approx = true} : vector<8x1xf32> -> vector<8x1xf32>
    %101 = vector.broadcast %100 : vector<8x1xf32> to vector<8x8xf32>
    %102 = arith.mulf %97, %101 : vector<8x8xf32>
    %103 = arith.truncf %102 : vector<8x8xf32> to vector<8x8xbf16>
    %104 = arith.truncf %85 : vector<8x8xf32> to vector<8x8xbf16>
    %cst_36 = arith.constant dense<0.000000e+00> : vector<8x8xf32>
    %105 = tpu.matmul %103, %104, %cst_36 {dimension_numbers = #tpu.dot_dimension_numbers<[1], [0], [0], [1], [0, 0, 1, 1], [], []>} : vector<8x8xbf16>, vector<8x8xbf16>, vector<8x8xf32> -> vector<8x8xf32>
    %c0_37 = arith.constant 0 : index
    %c16 = arith.constant 16 : index
    %106 = vector.load %arg27[%c0_37, %c16] : memref<8x32xf32, #tpu.memory_space<vmem>>, vector<8x8xf32>
    tpu.vector_store %arg27[%c0_37, %c16], %105 {strides = array<i32>} : memref<8x32xf32, #tpu.memory_space<vmem>>, vector<8x8xf32>,
    %107 = vector.extract_strided_slice %34 {offsets = [0, 24], sizes = [8, 8], strides = [1, 1]} : vector<8x96xf32> to vector<8x8xf32>
    %108 = vector.extract_strided_slice %34 {offsets = [0, 56], sizes = [8, 8], strides = [1, 1]} : vector<8x96xf32> to vector<8x8xf32>
    %109 = vector.extract_strided_slice %34 {offsets = [0, 88], sizes = [8, 8], strides = [1, 1]} : vector<8x96xf32> to vector<8x8xf32>
    %110 = arith.truncf %107 : vector<8x8xf32> to vector<8x8xbf16>
    %111 = arith.truncf %108 : vector<8x8xf32> to vector<8x8xbf16>
    %cst_38 = arith.constant dense<0.000000e+00> : vector<8x8xf32>
    %112 = tpu.matmul %110, %111, %cst_38 {dimension_numbers = #tpu.dot_dimension_numbers<[1], [1], [0], [0], [0, 0, 1, 0], [], []>} : vector<8x8xbf16>, vector<8x8xbf16>, vector<8x8xf32> -> vector<8x8xf32>
    %cst_39 = arith.constant 0.353553385 : f32
    %113 = vector.broadcast %cst_39 : f32 to vector<8x8xf32>
    %114 = arith.mulf %112, %113 : vector<8x8xf32>
    %115 = vector.broadcast %1 : vector<1x8xf32> to vector<8x8xf32>
    %116 = arith.addf %114, %115 : vector<8x8xf32>
    %cst_40 = arith.constant dense<0xFF800000> : vector<8xf32>
    %117 = vector.multi_reduction <maximumf>, %116, %cst_40 [1] : vector<8x8xf32> to vector<8xf32>
    %118 = vector.shape_cast %117 : vector<8xf32> to vector<8x1xf32>
    %119 = vector.broadcast %118 : vector<8x1xf32> to vector<8x8xf32>
    %120 = arith.subf %116, %119 : vector<8x8xf32>
    %121 = math.exp %120 : vector<8x8xf32>
    %cst_41 = arith.constant dense<0.000000e+00> : vector<8xf32>
    %122 = vector.multi_reduction <add>, %121, %cst_41 [1] : vector<8x8xf32> to vector<8xf32>
    %123 = vector.shape_cast %122 : vector<8xf32> to vector<8x1xf32>
    %124 = tpu.reciprocal %123 {approx = true} : vector<8x1xf32> -> vector<8x1xf32>
    %125 = vector.broadcast %124 : vector<8x1xf32> to vector<8x8xf32>
    %126 = arith.mulf %121, %125 : vector<8x8xf32>
    %127 = arith.truncf %126 : vector<8x8xf32> to vector<8x8xbf16>
    %128 = arith.truncf %109 : vector<8x8xf32> to vector<8x8xbf16>
    %cst_42 = arith.constant dense<0.000000e+00> : vector<8x8xf32>
    %129 = tpu.matmul %127, %128, %cst_42 {dimension_numbers = #tpu.dot_dimension_numbers<[1], [0], [0], [1], [0, 0, 1, 1], [], []>} : vector<8x8xbf16>, vector<8x8xbf16>, vector<8x8xf32> -> vector<8x8xf32>
    %c0_43 = arith.constant 0 : index
    %c24 = arith.constant 24 : index
    %130 = vector.load %arg27[%c0_43, %c24] : memref<8x32xf32, #tpu.memory_space<vmem>>, vector<8x8xf32>
    tpu.vector_store %arg27[%c0_43, %c24], %129 {strides = array<i32>} : memref<8x32xf32, #tpu.memory_space<vmem>>, vector<8x8xf32>,
    %c0_44 = arith.constant 0 : index
    %c0_45 = arith.constant 0 : index
    %131 = vector.load %arg27[%c0_44, %c0_45] : memref<8x32xf32, #tpu.memory_space<vmem>>, vector<8x32xf32>
    %c0_46 = arith.constant 0 : index
    %c0_47 = arith.constant 0 : index
    %c0_48 = arith.constant 0 : index
    %132 = vector.load %arg5[%c0_46, %c0_47, %c0_48] : memref<2x32x32xbf16, #tpu.memory_space<vmem>>, vector<1x32x32xbf16>
    %133 = vector.shape_cast %132 : vector<1x32x32xbf16> to vector<32x32xbf16>
    %134 = arith.truncf %131 : vector<8x32xf32> to vector<8x32xbf16>
    %cst_49 = arith.constant dense<0.000000e+00> : vector<8x32xf32>
    %135 = tpu.matmul %134, %133, %cst_49 {dimension_numbers = #tpu.dot_dimension_numbers<[1], [0], [0], [1], [0, 0, 1, 1], [], []>} : vector<8x32xbf16>, vector<32x32xbf16>, vector<8x32xf32> -> vector<8x32xf32>
    %c0_50 = arith.constant 0 : index
    %c0_51 = arith.constant 0 : index
    %c0_52 = arith.constant 0 : index
    %136 = vector.load %arg6[%c0_50, %c0_51, %c0_52] : memref<2x1x32xf32, #tpu.memory_space<vmem>>, vector<1x1x32xf32>
    %137 = vector.shape_cast %136 : vector<1x1x32xf32> to vector<1x32xf32>
    %138 = vector.broadcast %137 : vector<1x32xf32> to vector<8x32xf32>
    %139 = arith.addf %135, %138 : vector<8x32xf32>
    %140 = arith.addf %139, %26 : vector<8x32xf32>
    %c0_53 = arith.constant 0 : index
    %c0_54 = arith.constant 0 : index
    %c0_55 = arith.constant 0 : index
    %141 = vector.load %arg7[%c0_53, %c0_54, %c0_55] : memref<2x1x32xf32, #tpu.memory_space<vmem>>, vector<1x1x32xf32>
    %142 = vector.shape_cast %141 : vector<1x1x32xf32> to vector<1x32xf32>
    %c0_56 = arith.constant 0 : index
    %c0_57 = arith.constant 0 : index
    %c0_58 = arith.constant 0 : index
    %143 = vector.load %arg8[%c0_56, %c0_57, %c0_58] : memref<2x1x32xf32, #tpu.memory_space<vmem>>, vector<1x1x32xf32>
    %144 = vector.shape_cast %143 : vector<1x1x32xf32> to vector<1x32xf32>
    %cst_59 = arith.constant dense<0.000000e+00> : vector<8xf32>
    %145 = vector.multi_reduction <add>, %140, %cst_59 [1] : vector<8x32xf32> to vector<8xf32>
    %146 = vector.shape_cast %145 : vector<8xf32> to vector<8x1xf32>
    %cst_60 = arith.constant 3.200000e+01 : f32
    %147 = vector.broadcast %cst_60 : f32 to vector<8x1xf32>
    %148 = arith.divf %146, %147 : vector<8x1xf32>
    %149 = vector.broadcast %148 : vector<8x1xf32> to vector<8x32xf32>
    %150 = arith.subf %140, %149 : vector<8x32xf32>
    %151 = arith.mulf %150, %150 : vector<8x32xf32>
    %cst_61 = arith.constant dense<0.000000e+00> : vector<8xf32>
    %152 = vector.multi_reduction <add>, %151, %cst_61 [1] : vector<8x32xf32> to vector<8xf32>
    %153 = vector.shape_cast %152 : vector<8xf32> to vector<8x1xf32>
    %cst_62 = arith.constant 3.200000e+01 : f32
    %154 = vector.broadcast %cst_62 : f32 to vector<8x1xf32>
    %155 = arith.divf %153, %154 : vector<8x1xf32>
    %156 = vector.broadcast %148 : vector<8x1xf32> to vector<8x32xf32>
    %157 = arith.subf %140, %156 : vector<8x32xf32>
    %cst_63 = arith.constant 9.99999996E-13 : f32
    %158 = vector.broadcast %cst_63 : f32 to vector<8x1xf32>
    %159 = arith.addf %155, %158 : vector<8x1xf32>
    %160 = math.rsqrt %159 : vector<8x1xf32>
    %161 = vector.broadcast %160 : vector<8x1xf32> to vector<8x32xf32>
    %162 = arith.mulf %157, %161 : vector<8x32xf32>
    %163 = vector.broadcast %142 : vector<1x32xf32> to vector<8x32xf32>
    %164 = arith.mulf %162, %163 : vector<8x32xf32>
    %165 = vector.broadcast %144 : vector<1x32xf32> to vector<8x32xf32>
    %166 = arith.addf %164, %165 : vector<8x32xf32>
    %c0_64 = arith.constant 0 : index
    %c0_65 = arith.constant 0 : index
    %c0_66 = arith.constant 0 : index
    %167 = vector.load %arg9[%c0_64, %c0_65, %c0_66] : memref<2x32x64xbf16, #tpu.memory_space<vmem>>, vector<1x32x64xbf16>
    %168 = vector.shape_cast %167 : vector<1x32x64xbf16> to vector<32x64xbf16>
    %169 = arith.truncf %166 : vector<8x32xf32> to vector<8x32xbf16>
    %cst_67 = arith.constant dense<0.000000e+00> : vector<8x64xf32>
    %170 = tpu.matmul %169, %168, %cst_67 {dimension_numbers = #tpu.dot_dimension_numbers<[1], [0], [0], [1], [0, 0, 1, 1], [], []>} : vector<8x32xbf16>, vector<32x64xbf16>, vector<8x64xf32> -> vector<8x64xf32>
    %c0_68 = arith.constant 0 : index
    %c0_69 = arith.constant 0 : index
    %c0_70 = arith.constant 0 : index
    %171 = vector.load %arg10[%c0_68, %c0_69, %c0_70] : memref<2x1x64xf32, #tpu.memory_space<vmem>>, vector<1x1x64xf32>
    %172 = vector.shape_cast %171 : vector<1x1x64xf32> to vector<1x64xf32>
    %173 = vector.broadcast %172 : vector<1x64xf32> to vector<8x64xf32>
    %174 = arith.addf %170, %173 : vector<8x64xf32>
    %cst_71 = arith.constant 5.000000e-01 : f32
    %175 = vector.broadcast %cst_71 : f32 to vector<8x64xf32>
    %176 = arith.mulf %175, %174 : vector<8x64xf32>
    %cst_72 = arith.constant 4.471500e-02 : f32
    %177 = vector.broadcast %cst_72 : f32 to vector<8x64xf32>
    %178 = arith.mulf %177, %174 : vector<8x64xf32>
    %179 = arith.mulf %178, %174 : vector<8x64xf32>
    %180 = arith.mulf %179, %174 : vector<8x64xf32>
    %181 = arith.addf %174, %180 : vector<8x64xf32>
    %cst_73 = arith.constant 0.797884583 : f32
    %182 = vector.broadcast %cst_73 : f32 to vector<8x64xf32>
    %183 = arith.mulf %182, %181 : vector<8x64xf32>
    %184 = math.tanh %183 : vector<8x64xf32>
    %cst_74 = arith.constant 1.000000e+00 : f32
    %185 = vector.broadcast %cst_74 : f32 to vector<8x64xf32>
    %186 = arith.addf %185, %184 : vector<8x64xf32>
    %187 = arith.mulf %176, %186 : vector<8x64xf32>
    %c0_75 = arith.constant 0 : index
    %c0_76 = arith.constant 0 : index
    %c0_77 = arith.constant 0 : index
    %188 = vector.load %arg11[%c0_75, %c0_76, %c0_77] : memref<2x64x32xbf16, #tpu.memory_space<vmem>>, vector<1x64x32xbf16>
    %189 = vector.shape_cast %188 : vector<1x64x32xbf16> to vector<64x32xbf16>
    %190 = arith.truncf %187 : vector<8x64xf32> to vector<8x64xbf16>
    %cst_78 = arith.constant dense<0.000000e+00> : vector<8x32xf32>
    %191 = tpu.matmul %190, %189, %cst_78 {dimension_numbers = #tpu.dot_dimension_numbers<[1], [0], [0], [1], [0, 0, 1, 1], [], []>} : vector<8x64xbf16>, vector<64x32xbf16>, vector<8x32xf32> -> vector<8x32xf32>
    %c0_79 = arith.constant 0 : index
    %c0_80 = arith.constant 0 : index
    %c0_81 = arith.constant 0 : index
    %192 = vector.load %arg12[%c0_79, %c0_80, %c0_81] : memref<2x1x32xf32, #tpu.memory_space<vmem>>, vector<1x1x32xf32>
    %193 = vector.shape_cast %192 : vector<1x1x32xf32> to vector<1x32xf32>
    %194 = vector.broadcast %193 : vector<1x32xf32> to vector<8x32xf32>
    %195 = arith.addf %191, %194 : vector<8x32xf32>
    %196 = arith.addf %195, %166 : vector<8x32xf32>
    %c0_82 = arith.constant 0 : index
    %c0_83 = arith.constant 0 : index
    %c0_84 = arith.constant 0 : index
    %197 = vector.load %arg13[%c0_82, %c0_83, %c0_84] : memref<2x1x32xf32, #tpu.memory_space<vmem>>, vector<1x1x32xf32>
    %198 = vector.shape_cast %197 : vector<1x1x32xf32> to vector<1x32xf32>
    %c0_85 = arith.constant 0 : index
    %c0_86 = arith.constant 0 : index
    %c0_87 = arith.constant 0 : index
    %199 = vector.load %arg14[%c0_85, %c0_86, %c0_87] : memref<2x1x32xf32, #tpu.memory_space<vmem>>, vector<1x1x32xf32>
    %200 = vector.shape_cast %199 : vector<1x1x32xf32> to vector<1x32xf32>
    %cst_88 = arith.constant dense<0.000000e+00> : vector<8xf32>
    %201 = vector.multi_reduction <add>, %196, %cst_88 [1] : vector<8x32xf32> to vector<8xf32>
    %202 = vector.shape_cast %201 : vector<8xf32> to vector<8x1xf32>
    %cst_89 = arith.constant 3.200000e+01 : f32
    %203 = vector.broadcast %cst_89 : f32 to vector<8x1xf32>
    %204 = arith.divf %202, %203 : vector<8x1xf32>
    %205 = vector.broadcast %204 : vector<8x1xf32> to vector<8x32xf32>
    %206 = arith.subf %196, %205 : vector<8x32xf32>
    %207 = arith.mulf %206, %206 : vector<8x32xf32>
    %cst_90 = arith.constant dense<0.000000e+00> : vector<8xf32>
    %208 = vector.multi_reduction <add>, %207, %cst_90 [1] : vector<8x32xf32> to vector<8xf32>
    %209 = vector.shape_cast %208 : vector<8xf32> to vector<8x1xf32>
    %cst_91 = arith.constant 3.200000e+01 : f32
    %210 = vector.broadcast %cst_91 : f32 to vector<8x1xf32>
    %211 = arith.divf %209, %210 : vector<8x1xf32>
    %212 = vector.broadcast %204 : vector<8x1xf32> to vector<8x32xf32>
    %213 = arith.subf %196, %212 : vector<8x32xf32>
    %cst_92 = arith.constant 9.99999996E-13 : f32
    %214 = vector.broadcast %cst_92 : f32 to vector<8x1xf32>
    %215 = arith.addf %211, %214 : vector<8x1xf32>
    %216 = math.rsqrt %215 : vector<8x1xf32>
    %217 = vector.broadcast %216 : vector<8x1xf32> to vector<8x32xf32>
    %218 = arith.mulf %213, %217 : vector<8x32xf32>
    %219 = vector.broadcast %198 : vector<1x32xf32> to vector<8x32xf32>
    %220 = arith.mulf %218, %219 : vector<8x32xf32>
    %221 = vector.broadcast %200 : vector<1x32xf32> to vector<8x32xf32>
    %222 = arith.addf %220, %221 : vector<8x32xf32>
    %c1 = arith.constant 1 : index
    %c0_93 = arith.constant 0 : index
    %c0_94 = arith.constant 0 : index
    %223 = vector.load %arg3[%c1, %c0_93, %c0_94] : memref<2x32x96xbf16, #tpu.memory_space<vmem>>, vector<1x32x96xbf16>
    %224 = vector.shape_cast %223 : vector<1x32x96xbf16> to vector<32x96xbf16>
    %225 = arith.truncf %222 : vector<8x32xf32> to vector<8x32xbf16>
    %cst_95 = arith.constant dense<0.000000e+00> : vector<8x96xf32>
    %226 = tpu.matmul %225, %224, %cst_95 {dimension_numbers = #tpu.dot_dimension_numbers<[1], [0], [0], [1], [0, 0, 1, 1], [], []>} : vector<8x32xbf16>, vector<32x96xbf16>, vector<8x96xf32> -> vector<8x96xf32>
    %c1_96 = arith.constant 1 : index
    %c0_97 = arith.constant 0 : index
    %c0_98 = arith.constant 0 : index
    %227 = vector.load %arg4[%c1_96, %c0_97, %c0_98] : memref<2x1x96xf32, #tpu.memory_space<vmem>>, vector<1x1x96xf32>
    %228 = vector.shape_cast %227 : vector<1x1x96xf32> to vector<1x96xf32>
    %229 = vector.broadcast %228 : vector<1x96xf32> to vector<8x96xf32>
    %230 = arith.addf %226, %229 : vector<8x96xf32>
    %231 = vector.extract_strided_slice %230 {offsets = [0, 0], sizes = [8, 8], strides = [1, 1]} : vector<8x96xf32> to vector<8x8xf32>
    %232 = vector.extract_strided_slice %230 {offsets = [0, 32], sizes = [8, 8], strides = [1, 1]} : vector<8x96xf32> to vector<8x8xf32>
    %233 = vector.extract_strided_slice %230 {offsets = [0, 64], sizes = [8, 8], strides = [1, 1]} : vector<8x96xf32> to vector<8x8xf32>
    %234 = arith.truncf %231 : vector<8x8xf32> to vector<8x8xbf16>
    %235 = arith.truncf %232 : vector<8x8xf32> to vector<8x8xbf16>
    %cst_99 = arith.constant dense<0.000000e+00> : vector<8x8xf32>
    %236 = tpu.matmul %234, %235, %cst_99 {dimension_numbers = #tpu.dot_dimension_numbers<[1], [1], [0], [0], [0, 0, 1, 0], [], []>} : vector<8x8xbf16>, vector<8x8xbf16>, vector<8x8xf32> -> vector<8x8xf32>
    %cst_100 = arith.constant 0.353553385 : f32
    %237 = vector.broadcast %cst_100 : f32 to vector<8x8xf32>
    %238 = arith.mulf %236, %237 : vector<8x8xf32>
    %239 = vector.broadcast %1 : vector<1x8xf32> to vector<8x8xf32>
    %240 = arith.addf %238, %239 : vector<8x8xf32>
    %cst_101 = arith.constant dense<0xFF800000> : vector<8xf32>
    %241 = vector.multi_reduction <maximumf>, %240, %cst_101 [1] : vector<8x8xf32> to vector<8xf32>
    %242 = vector.shape_cast %241 : vector<8xf32> to vector<8x1xf32>
    %243 = vector.broadcast %242 : vector<8x1xf32> to vector<8x8xf32>
    %244 = arith.subf %240, %243 : vector<8x8xf32>
    %245 = math.exp %244 : vector<8x8xf32>
    %cst_102 = arith.constant dense<0.000000e+00> : vector<8xf32>
    %246 = vector.multi_reduction <add>, %245, %cst_102 [1] : vector<8x8xf32> to vector<8xf32>
    %247 = vector.shape_cast %246 : vector<8xf32> to vector<8x1xf32>
    %248 = tpu.reciprocal %247 {approx = true} : vector<8x1xf32> -> vector<8x1xf32>
    %249 = vector.broadcast %248 : vector<8x1xf32> to vector<8x8xf32>
    %250 = arith.mulf %245, %249 : vector<8x8xf32>
    %251 = arith.truncf %250 : vector<8x8xf32> to vector<8x8xbf16>
    %252 = arith.truncf %233 : vector<8x8xf32> to vector<8x8xbf16>
    %cst_103 = arith.constant dense<0.000000e+00> : vector<8x8xf32>
    %253 = tpu.matmul %251, %252, %cst_103 {dimension_numbers = #tpu.dot_dimension_numbers<[1], [0], [0], [1], [0, 0, 1, 1], [], []>} : vector<8x8xbf16>, vector<8x8xbf16>, vector<8x8xf32> -> vector<8x8xf32>
    %c0_104 = arith.constant 0 : index
    %c0_105 = arith.constant 0 : index
    %254 = vector.load %arg27[%c0_104, %c0_105] : memref<8x32xf32, #tpu.memory_space<vmem>>, vector<8x8xf32>
    tpu.vector_store %arg27[%c0_104, %c0_105], %253 {strides = array<i32>} : memref<8x32xf32, #tpu.memory_space<vmem>>, vector<8x8xf32>,
    %255 = vector.extract_strided_slice %230 {offsets = [0, 8], sizes = [8, 8], strides = [1, 1]} : vector<8x96xf32> to vector<8x8xf32>
    %256 = vector.extract_strided_slice %230 {offsets = [0, 40], sizes = [8, 8], strides = [1, 1]} : vector<8x96xf32> to vector<8x8xf32>
    %257 = vector.extract_strided_slice %230 {offsets = [0, 72], sizes = [8, 8], strides = [1, 1]} : vector<8x96xf32> to vector<8x8xf32>
    %258 = arith.truncf %255 : vector<8x8xf32> to vector<8x8xbf16>
    %259 = arith.truncf %256 : vector<8x8xf32> to vector<8x8xbf16>
    %cst_106 = arith.constant dense<0.000000e+00> : vector<8x8xf32>
    %260 = tpu.matmul %258, %259, %cst_106 {dimension_numbers = #tpu.dot_dimension_numbers<[1], [1], [0], [0], [0, 0, 1, 0], [], []>} : vector<8x8xbf16>, vector<8x8xbf16>, vector<8x8xf32> -> vector<8x8xf32>
    %cst_107 = arith.constant 0.353553385 : f32
    %261 = vector.broadcast %cst_107 : f32 to vector<8x8xf32>
    %262 = arith.mulf %260, %261 : vector<8x8xf32>
    %263 = vector.broadcast %1 : vector<1x8xf32> to vector<8x8xf32>
    %264 = arith.addf %262, %263 : vector<8x8xf32>
    %cst_108 = arith.constant dense<0xFF800000> : vector<8xf32>
    %265 = vector.multi_reduction <maximumf>, %264, %cst_108 [1] : vector<8x8xf32> to vector<8xf32>
    %266 = vector.shape_cast %265 : vector<8xf32> to vector<8x1xf32>
    %267 = vector.broadcast %266 : vector<8x1xf32> to vector<8x8xf32>
    %268 = arith.subf %264, %267 : vector<8x8xf32>
    %269 = math.exp %268 : vector<8x8xf32>
    %cst_109 = arith.constant dense<0.000000e+00> : vector<8xf32>
    %270 = vector.multi_reduction <add>, %269, %cst_109 [1] : vector<8x8xf32> to vector<8xf32>
    %271 = vector.shape_cast %270 : vector<8xf32> to vector<8x1xf32>
    %272 = tpu.reciprocal %271 {approx = true} : vector<8x1xf32> -> vector<8x1xf32>
    %273 = vector.broadcast %272 : vector<8x1xf32> to vector<8x8xf32>
    %274 = arith.mulf %269, %273 : vector<8x8xf32>
    %275 = arith.truncf %274 : vector<8x8xf32> to vector<8x8xbf16>
    %276 = arith.truncf %257 : vector<8x8xf32> to vector<8x8xbf16>
    %cst_110 = arith.constant dense<0.000000e+00> : vector<8x8xf32>
    %277 = tpu.matmul %275, %276, %cst_110 {dimension_numbers = #tpu.dot_dimension_numbers<[1], [0], [0], [1], [0, 0, 1, 1], [], []>} : vector<8x8xbf16>, vector<8x8xbf16>, vector<8x8xf32> -> vector<8x8xf32>
    %c0_111 = arith.constant 0 : index
    %c8_112 = arith.constant 8 : index
    %278 = vector.load %arg27[%c0_111, %c8_112] : memref<8x32xf32, #tpu.memory_space<vmem>>, vector<8x8xf32>
    tpu.vector_store %arg27[%c0_111, %c8_112], %277 {strides = array<i32>} : memref<8x32xf32, #tpu.memory_space<vmem>>, vector<8x8xf32>,
    %279 = vector.extract_strided_slice %230 {offsets = [0, 16], sizes = [8, 8], strides = [1, 1]} : vector<8x96xf32> to vector<8x8xf32>
    %280 = vector.extract_strided_slice %230 {offsets = [0, 48], sizes = [8, 8], strides = [1, 1]} : vector<8x96xf32> to vector<8x8xf32>
    %281 = vector.extract_strided_slice %230 {offsets = [0, 80], sizes = [8, 8], strides = [1, 1]} : vector<8x96xf32> to vector<8x8xf32>
    %282 = arith.truncf %279 : vector<8x8xf32> to vector<8x8xbf16>
    %283 = arith.truncf %280 : vector<8x8xf32> to vector<8x8xbf16>
    %cst_113 = arith.constant dense<0.000000e+00> : vector<8x8xf32>
    %284 = tpu.matmul %282, %283, %cst_113 {dimension_numbers = #tpu.dot_dimension_numbers<[1], [1], [0], [0], [0, 0, 1, 0], [], []>} : vector<8x8xbf16>, vector<8x8xbf16>, vector<8x8xf32> -> vector<8x8xf32>
    %cst_114 = arith.constant 0.353553385 : f32
    %285 = vector.broadcast %cst_114 : f32 to vector<8x8xf32>
    %286 = arith.mulf %284, %285 : vector<8x8xf32>
    %287 = vector.broadcast %1 : vector<1x8xf32> to vector<8x8xf32>
    %288 = arith.addf %286, %287 : vector<8x8xf32>
    %cst_115 = arith.constant dense<0xFF800000> : vector<8xf32>
    %289 = vector.multi_reduction <maximumf>, %288, %cst_115 [1] : vector<8x8xf32> to vector<8xf32>
    %290 = vector.shape_cast %289 : vector<8xf32> to vector<8x1xf32>
    %291 = vector.broadcast %290 : vector<8x1xf32> to vector<8x8xf32>
    %292 = arith.subf %288, %291 : vector<8x8xf32>
    %293 = math.exp %292 : vector<8x8xf32>
    %cst_116 = arith.constant dense<0.000000e+00> : vector<8xf32>
    %294 = vector.multi_reduction <add>, %293, %cst_116 [1] : vector<8x8xf32> to vector<8xf32>
    %295 = vector.shape_cast %294 : vector<8xf32> to vector<8x1xf32>
    %296 = tpu.reciprocal %295 {approx = true} : vector<8x1xf32> -> vector<8x1xf32>
    %297 = vector.broadcast %296 : vector<8x1xf32> to vector<8x8xf32>
    %298 = arith.mulf %293, %297 : vector<8x8xf32>
    %299 = arith.truncf %298 : vector<8x8xf32> to vector<8x8xbf16>
    %300 = arith.truncf %281 : vector<8x8xf32> to vector<8x8xbf16>
    %cst_117 = arith.constant dense<0.000000e+00> : vector<8x8xf32>
    %301 = tpu.matmul %299, %300, %cst_117 {dimension_numbers = #tpu.dot_dimension_numbers<[1], [0], [0], [1], [0, 0, 1, 1], [], []>} : vector<8x8xbf16>, vector<8x8xbf16>, vector<8x8xf32> -> vector<8x8xf32>
    %c0_118 = arith.constant 0 : index
    %c16_119 = arith.constant 16 : index
    %302 = vector.load %arg27[%c0_118, %c16_119] : memref<8x32xf32, #tpu.memory_space<vmem>>, vector<8x8xf32>
    tpu.vector_store %arg27[%c0_118, %c16_119], %301 {strides = array<i32>} : memref<8x32xf32, #tpu.memory_space<vmem>>, vector<8x8xf32>,
    %303 = vector.extract_strided_slice %230 {offsets = [0, 24], sizes = [8, 8], strides = [1, 1]} : vector<8x96xf32> to vector<8x8xf32>
    %304 = vector.extract_strided_slice %230 {offsets = [0, 56], sizes = [8, 8], strides = [1, 1]} : vector<8x96xf32> to vector<8x8xf32>
    %305 = vector.extract_strided_slice %230 {offsets = [0, 88], sizes = [8, 8], strides = [1, 1]} : vector<8x96xf32> to vector<8x8xf32>
    %306 = arith.truncf %303 : vector<8x8xf32> to vector<8x8xbf16>
    %307 = arith.truncf %304 : vector<8x8xf32> to vector<8x8xbf16>
    %cst_120 = arith.constant dense<0.000000e+00> : vector<8x8xf32>
    %308 = tpu.matmul %306, %307, %cst_120 {dimension_numbers = #tpu.dot_dimension_numbers<[1], [1], [0], [0], [0, 0, 1, 0], [], []>} : vector<8x8xbf16>, vector<8x8xbf16>, vector<8x8xf32> -> vector<8x8xf32>
    %cst_121 = arith.constant 0.353553385 : f32
    %309 = vector.broadcast %cst_121 : f32 to vector<8x8xf32>
    %310 = arith.mulf %308, %309 : vector<8x8xf32>
    %311 = vector.broadcast %1 : vector<1x8xf32> to vector<8x8xf32>
    %312 = arith.addf %310, %311 : vector<8x8xf32>
    %cst_122 = arith.constant dense<0xFF800000> : vector<8xf32>
    %313 = vector.multi_reduction <maximumf>, %312, %cst_122 [1] : vector<8x8xf32> to vector<8xf32>
    %314 = vector.shape_cast %313 : vector<8xf32> to vector<8x1xf32>
    %315 = vector.broadcast %314 : vector<8x1xf32> to vector<8x8xf32>
    %316 = arith.subf %312, %315 : vector<8x8xf32>
    %317 = math.exp %316 : vector<8x8xf32>
    %cst_123 = arith.constant dense<0.000000e+00> : vector<8xf32>
    %318 = vector.multi_reduction <add>, %317, %cst_123 [1] : vector<8x8xf32> to vector<8xf32>
    %319 = vector.shape_cast %318 : vector<8xf32> to vector<8x1xf32>
    %320 = tpu.reciprocal %319 {approx = true} : vector<8x1xf32> -> vector<8x1xf32>
    %321 = vector.broadcast %320 : vector<8x1xf32> to vector<8x8xf32>
    %322 = arith.mulf %317, %321 : vector<8x8xf32>
    %323 = arith.truncf %322 : vector<8x8xf32> to vector<8x8xbf16>
    %324 = arith.truncf %305 : vector<8x8xf32> to vector<8x8xbf16>
    %cst_124 = arith.constant dense<0.000000e+00> : vector<8x8xf32>
    %325 = tpu.matmul %323, %324, %cst_124 {dimension_numbers = #tpu.dot_dimension_numbers<[1], [0], [0], [1], [0, 0, 1, 1], [], []>} : vector<8x8xbf16>, vector<8x8xbf16>, vector<8x8xf32> -> vector<8x8xf32>
    %c0_125 = arith.constant 0 : index
    %c24_126 = arith.constant 24 : index
    %326 = vector.load %arg27[%c0_125, %c24_126] : memref<8x32xf32, #tpu.memory_space<vmem>>, vector<8x8xf32>
    tpu.vector_store %arg27[%c0_125, %c24_126], %325 {strides = array<i32>} : memref<8x32xf32, #tpu.memory_space<vmem>>, vector<8x8xf32>,
    %c0_127 = arith.constant 0 : index
    %c0_128 = arith.constant 0 : index
    %327 = vector.load %arg27[%c0_127, %c0_128] : memref<8x32xf32, #tpu.memory_space<vmem>>, vector<8x32xf32>
    %c1_129 = arith.constant 1 : index
    %c0_130 = arith.constant 0 : index
    %c0_131 = arith.constant 0 : index
    %328 = vector.load %arg5[%c1_129, %c0_130, %c0_131] : memref<2x32x32xbf16, #tpu.memory_space<vmem>>, vector<1x32x32xbf16>
    %329 = vector.shape_cast %328 : vector<1x32x32xbf16> to vector<32x32xbf16>
    %330 = arith.truncf %327 : vector<8x32xf32> to vector<8x32xbf16>
    %cst_132 = arith.constant dense<0.000000e+00> : vector<8x32xf32>
    %331 = tpu.matmul %330, %329, %cst_132 {dimension_numbers = #tpu.dot_dimension_numbers<[1], [0], [0], [1], [0, 0, 1, 1], [], []>} : vector<8x32xbf16>, vector<32x32xbf16>, vector<8x32xf32> -> vector<8x32xf32>
    %c1_133 = arith.constant 1 : index
    %c0_134 = arith.constant 0 : index
    %c0_135 = arith.constant 0 : index
    %332 = vector.load %arg6[%c1_133, %c0_134, %c0_135] : memref<2x1x32xf32, #tpu.memory_space<vmem>>, vector<1x1x32xf32>
    %333 = vector.shape_cast %332 : vector<1x1x32xf32> to vector<1x32xf32>
    %334 = vector.broadcast %333 : vector<1x32xf32> to vector<8x32xf32>
    %335 = arith.addf %331, %334 : vector<8x32xf32>
    %336 = arith.addf %335, %222 : vector<8x32xf32>
    %c1_136 = arith.constant 1 : index
    %c0_137 = arith.constant 0 : index
    %c0_138 = arith.constant 0 : index
    %337 = vector.load %arg7[%c1_136, %c0_137, %c0_138] : memref<2x1x32xf32, #tpu.memory_space<vmem>>, vector<1x1x32xf32>
    %338 = vector.shape_cast %337 : vector<1x1x32xf32> to vector<1x32xf32>
    %c1_139 = arith.constant 1 : index
    %c0_140 = arith.constant 0 : index
    %c0_141 = arith.constant 0 : index
    %339 = vector.load %arg8[%c1_139, %c0_140, %c0_141] : memref<2x1x32xf32, #tpu.memory_space<vmem>>, vector<1x1x32xf32>
    %340 = vector.shape_cast %339 : vector<1x1x32xf32> to vector<1x32xf32>
    %cst_142 = arith.constant dense<0.000000e+00> : vector<8xf32>
    %341 = vector.multi_reduction <add>, %336, %cst_142 [1] : vector<8x32xf32> to vector<8xf32>
    %342 = vector.shape_cast %341 : vector<8xf32> to vector<8x1xf32>
    %cst_143 = arith.constant 3.200000e+01 : f32
    %343 = vector.broadcast %cst_143 : f32 to vector<8x1xf32>
    %344 = arith.divf %342, %343 : vector<8x1xf32>
    %345 = vector.broadcast %344 : vector<8x1xf32> to vector<8x32xf32>
    %346 = arith.subf %336, %345 : vector<8x32xf32>
    %347 = arith.mulf %346, %346 : vector<8x32xf32>
    %cst_144 = arith.constant dense<0.000000e+00> : vector<8xf32>
    %348 = vector.multi_reduction <add>, %347, %cst_144 [1] : vector<8x32xf32> to vector<8xf32>
    %349 = vector.shape_cast %348 : vector<8xf32> to vector<8x1xf32>
    %cst_145 = arith.constant 3.200000e+01 : f32
    %350 = vector.broadcast %cst_145 : f32 to vector<8x1xf32>
    %351 = arith.divf %349, %350 : vector<8x1xf32>
    %352 = vector.broadcast %344 : vector<8x1xf32> to vector<8x32xf32>
    %353 = arith.subf %336, %352 : vector<8x32xf32>
    %cst_146 = arith.constant 9.99999996E-13 : f32
    %354 = vector.broadcast %cst_146 : f32 to vector<8x1xf32>
    %355 = arith.addf %351, %354 : vector<8x1xf32>
    %356 = math.rsqrt %355 : vector<8x1xf32>
    %357 = vector.broadcast %356 : vector<8x1xf32> to vector<8x32xf32>
    %358 = arith.mulf %353, %357 : vector<8x32xf32>
    %359 = vector.broadcast %338 : vector<1x32xf32> to vector<8x32xf32>
    %360 = arith.mulf %358, %359 : vector<8x32xf32>
    %361 = vector.broadcast %340 : vector<1x32xf32> to vector<8x32xf32>
    %362 = arith.addf %360, %361 : vector<8x32xf32>
    %c1_147 = arith.constant 1 : index
    %c0_148 = arith.constant 0 : index
    %c0_149 = arith.constant 0 : index
    %363 = vector.load %arg9[%c1_147, %c0_148, %c0_149] : memref<2x32x64xbf16, #tpu.memory_space<vmem>>, vector<1x32x64xbf16>
    %364 = vector.shape_cast %363 : vector<1x32x64xbf16> to vector<32x64xbf16>
    %365 = arith.truncf %362 : vector<8x32xf32> to vector<8x32xbf16>
    %cst_150 = arith.constant dense<0.000000e+00> : vector<8x64xf32>
    %366 = tpu.matmul %365, %364, %cst_150 {dimension_numbers = #tpu.dot_dimension_numbers<[1], [0], [0], [1], [0, 0, 1, 1], [], []>} : vector<8x32xbf16>, vector<32x64xbf16>, vector<8x64xf32> -> vector<8x64xf32>
    %c1_151 = arith.constant 1 : index
    %c0_152 = arith.constant 0 : index
    %c0_153 = arith.constant 0 : index
    %367 = vector.load %arg10[%c1_151, %c0_152, %c0_153] : memref<2x1x64xf32, #tpu.memory_space<vmem>>, vector<1x1x64xf32>
    %368 = vector.shape_cast %367 : vector<1x1x64xf32> to vector<1x64xf32>
    %369 = vector.broadcast %368 : vector<1x64xf32> to vector<8x64xf32>
    %370 = arith.addf %366, %369 : vector<8x64xf32>
    %cst_154 = arith.constant 5.000000e-01 : f32
    %371 = vector.broadcast %cst_154 : f32 to vector<8x64xf32>
    %372 = arith.mulf %371, %370 : vector<8x64xf32>
    %cst_155 = arith.constant 4.471500e-02 : f32
    %373 = vector.broadcast %cst_155 : f32 to vector<8x64xf32>
    %374 = arith.mulf %373, %370 : vector<8x64xf32>
    %375 = arith.mulf %374, %370 : vector<8x64xf32>
    %376 = arith.mulf %375, %370 : vector<8x64xf32>
    %377 = arith.addf %370, %376 : vector<8x64xf32>
    %cst_156 = arith.constant 0.797884583 : f32
    %378 = vector.broadcast %cst_156 : f32 to vector<8x64xf32>
    %379 = arith.mulf %378, %377 : vector<8x64xf32>
    %380 = math.tanh %379 : vector<8x64xf32>
    %cst_157 = arith.constant 1.000000e+00 : f32
    %381 = vector.broadcast %cst_157 : f32 to vector<8x64xf32>
    %382 = arith.addf %381, %380 : vector<8x64xf32>
    %383 = arith.mulf %372, %382 : vector<8x64xf32>
    %c1_158 = arith.constant 1 : index
    %c0_159 = arith.constant 0 : index
    %c0_160 = arith.constant 0 : index
    %384 = vector.load %arg11[%c1_158, %c0_159, %c0_160] : memref<2x64x32xbf16, #tpu.memory_space<vmem>>, vector<1x64x32xbf16>
    %385 = vector.shape_cast %384 : vector<1x64x32xbf16> to vector<64x32xbf16>
    %386 = arith.truncf %383 : vector<8x64xf32> to vector<8x64xbf16>
    %cst_161 = arith.constant dense<0.000000e+00> : vector<8x32xf32>
    %387 = tpu.matmul %386, %385, %cst_161 {dimension_numbers = #tpu.dot_dimension_numbers<[1], [0], [0], [1], [0, 0, 1, 1], [], []>} : vector<8x64xbf16>, vector<64x32xbf16>, vector<8x32xf32> -> vector<8x32xf32>
    %c1_162 = arith.constant 1 : index
    %c0_163 = arith.constant 0 : index
    %c0_164 = arith.constant 0 : index
    %388 = vector.load %arg12[%c1_162, %c0_163, %c0_164] : memref<2x1x32xf32, #tpu.memory_space<vmem>>, vector<1x1x32xf32>
    %389 = vector.shape_cast %388 : vector<1x1x32xf32> to vector<1x32xf32>
    %390 = vector.broadcast %389 : vector<1x32xf32> to vector<8x32xf32>
    %391 = arith.addf %387, %390 : vector<8x32xf32>
    %392 = arith.addf %391, %362 : vector<8x32xf32>
    %c1_165 = arith.constant 1 : index
    %c0_166 = arith.constant 0 : index
    %c0_167 = arith.constant 0 : index
    %393 = vector.load %arg13[%c1_165, %c0_166, %c0_167] : memref<2x1x32xf32, #tpu.memory_space<vmem>>, vector<1x1x32xf32>
    %394 = vector.shape_cast %393 : vector<1x1x32xf32> to vector<1x32xf32>
    %c1_168 = arith.constant 1 : index
    %c0_169 = arith.constant 0 : index
    %c0_170 = arith.constant 0 : index
    %395 = vector.load %arg14[%c1_168, %c0_169, %c0_170] : memref<2x1x32xf32, #tpu.memory_space<vmem>>, vector<1x1x32xf32>
    %396 = vector.shape_cast %395 : vector<1x1x32xf32> to vector<1x32xf32>
    %cst_171 = arith.constant dense<0.000000e+00> : vector<8xf32>
    %397 = vector.multi_reduction <add>, %392, %cst_171 [1] : vector<8x32xf32> to vector<8xf32>
    %398 = vector.shape_cast %397 : vector<8xf32> to vector<8x1xf32>
    %cst_172 = arith.constant 3.200000e+01 : f32
    %399 = vector.broadcast %cst_172 : f32 to vector<8x1xf32>
    %400 = arith.divf %398, %399 : vector<8x1xf32>
    %401 = vector.broadcast %400 : vector<8x1xf32> to vector<8x32xf32>
    %402 = arith.subf %392, %401 : vector<8x32xf32>
    %403 = arith.mulf %402, %402 : vector<8x32xf32>
    %cst_173 = arith.constant dense<0.000000e+00> : vector<8xf32>
    %404 = vector.multi_reduction <add>, %403, %cst_173 [1] : vector<8x32xf32> to vector<8xf32>
    %405 = vector.shape_cast %404 : vector<8xf32> to vector<8x1xf32>
    %cst_174 = arith.constant 3.200000e+01 : f32
    %406 = vector.broadcast %cst_174 : f32 to vector<8x1xf32>
    %407 = arith.divf %405, %406 : vector<8x1xf32>
    %408 = vector.broadcast %400 : vector<8x1xf32> to vector<8x32xf32>
    %409 = arith.subf %392, %408 : vector<8x32xf32>
    %cst_175 = arith.constant 9.99999996E-13 : f32
    %410 = vector.broadcast %cst_175 : f32 to vector<8x1xf32>
    %411 = arith.addf %407, %410 : vector<8x1xf32>
    %412 = math.rsqrt %411 : vector<8x1xf32>
    %413 = vector.broadcast %412 : vector<8x1xf32> to vector<8x32xf32>
    %414 = arith.mulf %409, %413 : vector<8x32xf32>
    %415 = vector.broadcast %394 : vector<1x32xf32> to vector<8x32xf32>
    %416 = arith.mulf %414, %415 : vector<8x32xf32>
    %417 = vector.broadcast %396 : vector<1x32xf32> to vector<8x32xf32>
    %418 = arith.addf %416, %417 : vector<8x32xf32>
    %c0_176 = arith.constant 0 : index
    %c0_177 = arith.constant 0 : index
    %419 = vector.load %arg17[%c0_176, %c0_177] : memref<32x32xbf16, #tpu.memory_space<vmem>>, vector<32x32xbf16>
    %420 = arith.truncf %418 : vector<8x32xf32> to vector<8x32xbf16>
    %cst_178 = arith.constant dense<0.000000e+00> : vector<8x32xf32>
    %421 = tpu.matmul %420, %419, %cst_178 {dimension_numbers = #tpu.dot_dimension_numbers<[1], [0], [0], [1], [0, 0, 1, 1], [], []>} : vector<8x32xbf16>, vector<32x32xbf16>, vector<8x32xf32> -> vector<8x32xf32>
    %c0_179 = arith.constant 0 : index
    %c0_180 = arith.constant 0 : index
    %422 = vector.load %arg18[%c0_179, %c0_180] : memref<1x32xf32, #tpu.memory_space<vmem>>, vector<1x32xf32>
    %423 = vector.broadcast %422 : vector<1x32xf32> to vector<8x32xf32>
    %424 = arith.addf %421, %423 : vector<8x32xf32>
    %cst_181 = arith.constant 5.000000e-01 : f32
    %425 = vector.broadcast %cst_181 : f32 to vector<8x32xf32>
    %426 = arith.mulf %425, %424 : vector<8x32xf32>
    %cst_182 = arith.constant 4.471500e-02 : f32
    %427 = vector.broadcast %cst_182 : f32 to vector<8x32xf32>
    %428 = arith.mulf %427, %424 : vector<8x32xf32>
    %429 = arith.mulf %428, %424 : vector<8x32xf32>
    %430 = arith.mulf %429, %424 : vector<8x32xf32>
    %431 = arith.addf %424, %430 : vector<8x32xf32>
    %cst_183 = arith.constant 0.797884583 : f32
    %432 = vector.broadcast %cst_183 : f32 to vector<8x32xf32>
    %433 = arith.mulf %432, %431 : vector<8x32xf32>
    %434 = math.tanh %433 : vector<8x32xf32>
    %cst_184 = arith.constant 1.000000e+00 : f32
    %435 = vector.broadcast %cst_184 : f32 to vector<8x32xf32>
    %436 = arith.addf %435, %434 : vector<8x32xf32>
    %437 = arith.mulf %426, %436 : vector<8x32xf32>
    %c0_185 = arith.constant 0 : index
    %c0_186 = arith.constant 0 : index
    %438 = vector.load %arg19[%c0_185, %c0_186] : memref<1x32xf32, #tpu.memory_space<vmem>>, vector<1x32xf32>
    %c0_187 = arith.constant 0 : index
    %c0_188 = arith.constant 0 : index
    %439 = vector.load %arg20[%c0_187, %c0_188] : memref<1x32xf32, #tpu.memory_space<vmem>>, vector<1x32xf32>
    %cst_189 = arith.constant dense<0.000000e+00> : vector<8xf32>
    %440 = vector.multi_reduction <add>, %437, %cst_189 [1] : vector<8x32xf32> to vector<8xf32>
    %441 = vector.shape_cast %440 : vector<8xf32> to vector<8x1xf32>
    %cst_190 = arith.constant 3.200000e+01 : f32
    %442 = vector.broadcast %cst_190 : f32 to vector<8x1xf32>
    %443 = arith.divf %441, %442 : vector<8x1xf32>
    %444 = vector.broadcast %443 : vector<8x1xf32> to vector<8x32xf32>
    %445 = arith.subf %437, %444 : vector<8x32xf32>
    %446 = arith.mulf %445, %445 : vector<8x32xf32>
    %cst_191 = arith.constant dense<0.000000e+00> : vector<8xf32>
    %447 = vector.multi_reduction <add>, %446, %cst_191 [1] : vector<8x32xf32> to vector<8xf32>
    %448 = vector.shape_cast %447 : vector<8xf32> to vector<8x1xf32>
    %cst_192 = arith.constant 3.200000e+01 : f32
    %449 = vector.broadcast %cst_192 : f32 to vector<8x1xf32>
    %450 = arith.divf %448, %449 : vector<8x1xf32>
    %451 = vector.broadcast %443 : vector<8x1xf32> to vector<8x32xf32>
    %452 = arith.subf %437, %451 : vector<8x32xf32>
    %cst_193 = arith.constant 9.99999996E-13 : f32
    %453 = vector.broadcast %cst_193 : f32 to vector<8x1xf32>
    %454 = arith.addf %450, %453 : vector<8x1xf32>
    %455 = math.rsqrt %454 : vector<8x1xf32>
    %456 = vector.broadcast %455 : vector<8x1xf32> to vector<8x32xf32>
    %457 = arith.mulf %452, %456 : vector<8x32xf32>
    %458 = vector.broadcast %438 : vector<1x32xf32> to vector<8x32xf32>
    %459 = arith.mulf %457, %458 : vector<8x32xf32>
    %460 = vector.broadcast %439 : vector<1x32xf32> to vector<8x32xf32>
    %461 = arith.addf %459, %460 : vector<8x32xf32>
    %c0_194 = arith.constant 0 : index
    %c0_195 = arith.constant 0 : index
    %462 = vector.load %arg21[%c0_194, %c0_195] : memref<32x128xbf16, #tpu.memory_space<vmem>>, vector<32x128xbf16>
    %463 = arith.truncf %461 : vector<8x32xf32> to vector<8x32xbf16>
    %cst_196 = arith.constant dense<0.000000e+00> : vector<8x128xf32>
    %464 = tpu.matmul %463, %462, %cst_196 {dimension_numbers = #tpu.dot_dimension_numbers<[1], [0], [0], [1], [0, 0, 1, 1], [], []>} : vector<8x32xbf16>, vector<32x128xbf16>, vector<8x128xf32> -> vector<8x128xf32>
    %c0_197 = arith.constant 0 : index
    %c0_198 = arith.constant 0 : index
    %465 = vector.load %arg22[%c0_197, %c0_198] : memref<1x128xf32, #tpu.memory_space<vmem>>, vector<1x128xf32>
    %466 = vector.broadcast %465 : vector<1x128xf32> to vector<8x128xf32>
    %467 = arith.addf %464, %466 : vector<8x128xf32>
    %c0_199 = arith.constant 0 : index
    %c0_200 = arith.constant 0 : index
    %468 = vector.load %arg25[%c0_199, %c0_200] : memref<8x128xf32, #tpu.memory_space<vmem>>, vector<8x128xf32>
    tpu.vector_store %arg25[%c0_199, %c0_200], %467 {strides = array<i32>} : memref<8x128xf32, #tpu.memory_space<vmem>>, vector<8x128xf32>,
    %c0_201 = arith.constant 0 : index
    %c0_202 = arith.constant 0 : index
    %469 = vector.load %arg23[%c0_201, %c0_202] : memref<32x128xbf16, #tpu.memory_space<vmem>>, vector<32x128xbf16>
    %470 = arith.truncf %418 : vector<8x32xf32> to vector<8x32xbf16>
    %cst_203 = arith.constant dense<0.000000e+00> : vector<8x128xf32>
    %471 = tpu.matmul %470, %469, %cst_203 {dimension_numbers = #tpu.dot_dimension_numbers<[1], [0], [0], [1], [0, 0, 1, 1], [], []>} : vector<8x32xbf16>, vector<32x128xbf16>, vector<8x128xf32> -> vector<8x128xf32>
    %c0_204 = arith.constant 0 : index
    %c0_205 = arith.constant 0 : index
    %472 = vector.load %arg24[%c0_204, %c0_205] : memref<1x128xf32, #tpu.memory_space<vmem>>, vector<1x128xf32>
    %473 = vector.broadcast %472 : vector<1x128xf32> to vector<8x128xf32>
    %474 = arith.addf %471, %473 : vector<8x128xf32>
    %c0_206 = arith.constant 0 : index
    %c0_207 = arith.constant 0 : index
    %475 = vector.load %arg26[%c0_206, %c0_207] : memref<8x128xf32, #tpu.memory_space<vmem>>, vector<8x128xf32>
    tpu.vector_store %arg26[%c0_206, %c0_207], %474 {strides = array<i32>} : memref<8x128xf32, #tpu.memory_space<vmem>>, vector<8x128xf32>,
    return
  }
  func.func @transform_0(%arg0: i32) -> (i32, i32) {
    %c0_i32 = arith.constant 0 : i32
    %c0_i32_0 = arith.constant 0 : i32
    return %arg0, %c0_i32 : i32, i32
  }
  func.func @transform_1(%arg0: i32) -> (i32, i32, i32) {
    %c0_i32 = arith.constant 0 : i32
    %c0_i32_0 = arith.constant 0 : i32
    %c0_i32_1 = arith.constant 0 : i32
    return %arg0, %c0_i32, %c0_i32_0 : i32, i32, i32
  }
  func.func @transform_2(%arg0: i32) -> (i32, i32, i32) {
    %c0_i32 = arith.constant 0 : i32
    %c0_i32_0 = arith.constant 0 : i32
    %c0_i32_1 = arith.constant 0 : i32
    %c0_i32_2 = arith.constant 0 : i32
    return %c0_i32, %c0_i32_0, %c0_i32_1 : i32, i32, i32
  }
  func.func @transform_3(%arg0: i32) -> (i32, i32, i32) {
    %c0_i32 = arith.constant 0 : i32
    %c0_i32_0 = arith.constant 0 : i32
    %c0_i32_1 = arith.constant 0 : i32
    %c0_i32_2 = arith.constant 0 : i32
    return %c0_i32, %c0_i32_0, %c0_i32_1 : i32, i32, i32
  }
  func.func @transform_4(%arg0: i32) -> (i32, i32, i32) {
    %c0_i32 = arith.constant 0 : i32
    %c0_i32_0 = arith.constant 0 : i32
    %c0_i32_1 = arith.constant 0 : i32
    %c0_i32_2 = arith.constant 0 : i32
    return %c0_i32, %c0_i32_0, %c0_i32_1 : i32, i32, i32
  }
  func.func @transform_5(%arg0: i32) -> (i32, i32, i32) {
    %c0_i32 = arith.constant 0 : i32
    %c0_i32_0 = arith.constant 0 : i32
    %c0_i32_1 = arith.constant 0 : i32
    %c0_i32_2 = arith.constant 0 : i32
    return %c0_i32, %c0_i32_0, %c0_i32_1 : i32, i32, i32
  }
  func.func @transform_6(%arg0: i32) -> (i32, i32, i32) {
    %c0_i32 = arith.constant 0 : i32
    %c0_i32_0 = arith.constant 0 : i32
    %c0_i32_1 = arith.constant 0 : i32
    %c0_i32_2 = arith.constant 0 : i32
    return %c0_i32, %c0_i32_0, %c0_i32_1 : i32, i32, i32
  }
  func.func @transform_7(%arg0: i32) -> (i32, i32, i32) {
    %c0_i32 = arith.constant 0 : i32
    %c0_i32_0 = arith.constant 0 : i32
    %c0_i32_1 = arith.constant 0 : i32
    %c0_i32_2 = arith.constant 0 : i32
    return %c0_i32, %c0_i32_0, %c0_i32_1 : i32, i32, i32
  }
  func.func @transform_8(%arg0: i32) -> (i32, i32, i32) {
    %c0_i32 = arith.constant 0 : i32
    %c0_i32_0 = arith.constant 0 : i32
    %c0_i32_1 = arith.constant 0 : i32
    %c0_i32_2 = arith.constant 0 : i32
    return %c0_i32, %c0_i32_0, %c0_i32_1 : i32, i32, i32
  }
  func.func @transform_9(%arg0: i32) -> (i32, i32, i32) {
    %c0_i32 = arith.constant 0 : i32
    %c0_i32_0 = arith.constant 0 : i32
    %c0_i32_1 = arith.constant 0 : i32
    %c0_i32_2 = arith.constant 0 : i32
    return %c0_i32, %c0_i32_0, %c0_i32_1 : i32, i32, i32
  }
  func.func @transform_10(%arg0: i32) -> (i32, i32, i32) {
    %c0_i32 = arith.constant 0 : i32
    %c0_i32_0 = arith.constant 0 : i32
    %c0_i32_1 = arith.constant 0 : i32
    %c0_i32_2 = arith.constant 0 : i32
    return %c0_i32, %c0_i32_0, %c0_i32_1 : i32, i32, i32
  }
  func.func @transform_11(%arg0: i32) -> (i32, i32, i32) {
    %c0_i32 = arith.constant 0 : i32
    %c0_i32_0 = arith.constant 0 : i32
    %c0_i32_1 = arith.constant 0 : i32
    %c0_i32_2 = arith.constant 0 : i32
    return %c0_i32, %c0_i32_0, %c0_i32_1 : i32, i32, i32
  }
  func.func @transform_12(%arg0: i32) -> (i32, i32, i32) {
    %c0_i32 = arith.constant 0 : i32
    %c0_i32_0 = arith.constant 0 : i32
    %c0_i32_1 = arith.constant 0 : i32
    %c0_i32_2 = arith.constant 0 : i32
    return %c0_i32, %c0_i32_0, %c0_i32_1 : i32, i32, i32
  }
  func.func @transform_13(%arg0: i32) -> (i32, i32, i32) {
    %c0_i32 = arith.constant 0 : i32
    %c0_i32_0 = arith.constant 0 : i32
    %c0_i32_1 = arith.constant 0 : i32
    %c0_i32_2 = arith.constant 0 : i32
    return %c0_i32, %c0_i32_0, %c0_i32_1 : i32, i32, i32
  }
  func.func @transform_14(%arg0: i32) -> (i32, i32) {
    %c0_i32 = arith.constant 0 : i32
    %c0_i32_0 = arith.constant 0 : i32
    %c0_i32_1 = arith.constant 0 : i32
    return %c0_i32, %c0_i32_0 : i32, i32
  }
  func.func @transform_15(%arg0: i32) -> (i32, i32) {
    %c0_i32 = arith.constant 0 : i32
    %c0_i32_0 = arith.constant 0 : i32
    %c0_i32_1 = arith.constant 0 : i32
    return %c0_i32, %c0_i32_0 : i32, i32
  }
  func.func @transform_16(%arg0: i32) -> (i32, i32) {
    %c0_i32 = arith.constant 0 : i32
    %c0_i32_0 = arith.constant 0 : i32
    %c0_i32_1 = arith.constant 0 : i32
    return %c0_i32, %c0_i32_0 : i32, i32
  }
  func.func @transform_17(%arg0: i32) -> (i32, i32) {
    %c0_i32 = arith.constant 0 : i32
    %c0_i32_0 = arith.constant 0 : i32
    %c0_i32_1 = arith.constant 0 : i32
    return %c0_i32, %c0_i32_0 : i32, i32
  }
  func.func @transform_18(%arg0: i32) -> (i32, i32) {
    %c0_i32 = arith.constant 0 : i32
    %c0_i32_0 = arith.constant 0 : i32
    %c0_i32_1 = arith.constant 0 : i32
    return %c0_i32, %c0_i32_0 : i32, i32
  }
  func.func @transform_19(%arg0: i32) -> (i32, i32) {
    %c0_i32 = arith.constant 0 : i32
    %c0_i32_0 = arith.constant 0 : i32
    %c0_i32_1 = arith.constant 0 : i32
    return %c0_i32, %c0_i32_0 : i32, i32
  }
  func.func @transform_20(%arg0: i32) -> (i32, i32) {
    %c0_i32 = arith.constant 0 : i32
    %c0_i32_0 = arith.constant 0 : i32
    %c0_i32_1 = arith.constant 0 : i32
    return %c0_i32, %c0_i32_0 : i32, i32
  }
  func.func @transform_21(%arg0: i32) -> (i32, i32) {
    %c0_i32 = arith.constant 0 : i32
    %c0_i32_0 = arith.constant 0 : i32
    %c0_i32_1 = arith.constant 0 : i32
    return %c0_i32, %c0_i32_0 : i32, i32
  }
  func.func @transform_22(%arg0: i32) -> (i32, i32) {
    %c0_i32 = arith.constant 0 : i32
    %c0_i32_0 = arith.constant 0 : i32
    %c0_i32_1 = arith.constant 0 : i32
    return %c0_i32, %c0_i32_0 : i32, i32
  }
  func.func @transform_23(%arg0: i32) -> (i32, i32) {
    %c0_i32 = arith.constant 0 : i32
    %c0_i32_0 = arith.constant 0 : i32
    %c0_i32_1 = arith.constant 0 : i32
    return %c0_i32, %c0_i32_0 : i32, i32
  }
  func.func @transform_24(%arg0: i32) -> (i32, i32) {
    %c0_i32 = arith.constant 0 : i32
    %c0_i32_0 = arith.constant 0 : i32
    return %arg0, %c0_i32 : i32, i32
  }
  func.func @transform_25(%arg0: i32) -> (i32, i32) {
    %c0_i32 = arith.constant 0 : i32
    %c0_i32_0 = arith.constant 0 : i32
    return %arg0, %c0_i32 : i32, i32
  }
}

</mosaic_0001>

<bundles_post_ra>
// kernel: tpu_custom_call.1
= control target key start
LH: loop header
LB: loop body
LE: loop exit
PB: predicated region body
PF: predicated region fallthrough
CT: control target
= control target key end

     0   :  { %s5308_s0 = inlined_call_operand.hbm [shape: f32[16,32], index: 0, kind: input, shape index: {}]   ;;  %s5309_s1 = inlined_call_operand.hbm [shape: f32[2,1,8], index: 1, kind: input, shape index: {}]   ;;  %s5310_s2 = inlined_call_operand.vmem [shape: bf16[2,32,96], index: 2, kind: input, shape index: {}]   ;;  %s5311_s3 = inlined_call_operand.hbm [shape: f32[2,1,96], index: 3, kind: input, shape index: {}]   ;;  %s5312_s4 = inlined_call_operand.vmem [shape: bf16[2,32,32], index: 4, kind: input, shape index: {}]   ;;  %s5313_s5 = inlined_call_operand.hbm [shape: f32[2,1,32], index: 5, kind: input, shape index: {}]   ;;  %s5314_s6 = inlined_call_operand.hbm [shape: f32[2,1,32], index: 6, kind: input, shape index: {}]   ;;  %s5315_s7 = inlined_call_operand.hbm [shape: f32[2,1,32], index: 7, kind: input, shape index: {}]   ;;  %s5316_s8 = inlined_call_operand.vmem [shape: bf16[2,32,64], index: 8, kind: input, shape index: {}]   ;;  %s5317_s9 = inlined_call_operand.hbm [shape: f32[2,1,64], index: 9, kind: input, shape index: {}]   ;;  %s5318_s10 = inlined_call_operand.vmem [shape: bf16[2,64,32], index: 10, kind: input, shape index: {}]   ;;  %s5319_s11 = inlined_call_operand.hbm [shape: f32[2,1,32], index: 11, kind: input, shape index: {}]   ;;  %s5320_s12 = inlined_call_operand.hbm [shape: f32[2,1,32], index: 12, kind: input, shape index: {}]   ;;  %s5321_s13 = inlined_call_operand.hbm [shape: f32[2,1,32], index: 13, kind: input, shape index: {}]   ;;  %s5322_s14 = inlined_call_operand.hbm [shape: f32[1,32], index: 14, kind: input, shape index: {}]   ;;  %s5323_s15 = inlined_call_operand.hbm [shape: f32[1,32], index: 15, kind: input, shape index: {}]   ;;  %s5324_s16 = inlined_call_operand.vmem [shape: bf16[32,32], index: 16, kind: input, shape index: {}]   ;;  %s5325_s17 = inlined_call_operand.hbm [shape: f32[1,32], index: 17, kind: input, shape index: {}]   ;;  %s5326_s18 = inlined_call_operand.hbm [shape: f32[1,32], index: 18, kind: input, shape index: {}]   ;;  %s5327_s19 = inlined_call_operand.vmem [shape: f32[1,32], index: 19, kind: input, shape index: {}]   ;;  %s5328_s20 = inlined_call_operand.vmem [shape: bf16[32,128], index: 20, kind: input, shape index: {}]   ;;  %s5329_s21 = inlined_call_operand.vmem [shape: f32[1,128], index: 21, kind: input, shape index: {}]   ;;  %s5330_s22 = inlined_call_operand.hbm [shape: bf16[32,128], index: 22, kind: input, shape index: {}]   ;;  %s5331_s23 = inlined_call_operand.vmem [shape: f32[1,128], index: 23, kind: input, shape index: {}]   ;;  %s5332_s24 = inlined_call_operand.hbm [shape: f32[16,128], index: 24, kind: output, shape index: {0}]   ;;  %s5333_s25 = inlined_call_operand.hbm [shape: f32[16,128], index: 25, kind: output, shape index: {1}]  }
   0x1   :  { %5361 = sst [smem:[#allocation41_spill]] %s5308_s0 }
   0x2   :  { %5362 = sst [smem:[#allocation42_spill]] %s5309_s1 }
   0x3   :  { %5363 = sst [smem:[#allocation43_spill]] %s5310_s2 }
   0x4   :  { %5364 = sst [smem:[#allocation44_spill]] %s5311_s3 }
   0x5   :  { %5365 = sst [smem:[#allocation45_spill]] %s5312_s4 }
   0x6   :  { %5366 = sst [smem:[#allocation46_spill]] %s5313_s5 }
   0x7   :  { %5367 = sst [smem:[#allocation47_spill]] %s5314_s6 }
   0x8   :  { %5368 = sst [smem:[#allocation48_spill]] %s5315_s7 }
   0x9   :  { %5369 = sst [smem:[#allocation49_spill]] %s5316_s8 }
   0xa   :  { %5370 = sst [smem:[#allocation50_spill]] %s5317_s9 }
   0xb   :  { %5371 = sst [smem:[#allocation51_spill]] %s5318_s10 }
   0xc   :  { %5372 = sst [smem:[#allocation52_spill]] %s5319_s11 }
   0xd   :  { %5373 = sst [smem:[#allocation53_spill]] %s5320_s12 }
   0xe   :  { %5374 = sst [smem:[#allocation54_spill]] %s5321_s13 }
   0xf   :  { %5375 = sst [smem:[#allocation55_spill]] %s5322_s14 }
  0x10   :  { %5376 = sst [smem:[#allocation56_spill]] %s5323_s15 }
  0x11   :  { %5377 = sst [smem:[#allocation57_spill]] %s5325_s17 }
  0x12   :  { %5378 = sst [smem:[#allocation58_spill]] %s5326_s18 }
  0x13   :  { %5379 = sst [smem:[#allocation59_spill]] %s5327_s19 }
  0x14   :  { %5380 = sst [smem:[#allocation60_spill]] %s5329_s21 }
  0x15   :  { %5381 = sst [smem:[#allocation61_spill]] %s5330_s22 }
  0x16   :  { %5382 = sst [smem:[#allocation62_spill]] %s5332_s24 }
  0x17   :  { %5383 = sst [smem:[#allocation63_spill]] %s5333_s25 }
  0x18   :  { %31 = vsyncpa [#allocation4], 0 }
  0x19   :  { %33 = vsyncpa [#allocation4 + $0x1], 0 }
  0x1a   :  { %34 = vsyncpa [#allocation7], 0 }
  0x1b   :  { %36 = vsyncpa [#allocation7 + $0x1], 0 }
  0x1c   :  { %37 = vsyncpa [#allocation10], 0 }
  0x1d   :  { %38 = vsyncpa [#allocation13], 0 }
  0x1e   :  { %39 = vsyncpa [#allocation16], 0 }
  0x1f   :  { %40 = vsyncpa [#allocation19], 0 }
  0x20   :  { %41 = vsyncpa [#allocation22], 0 }
  0x21   :  { %42 = vsyncpa [#allocation25], 0 }
  0x22   :  { %43 = vsyncpa [#allocation5], 0 }
  0x23   :  { %45 = vsyncpa [#allocation5 + $0x1], 0 }
  0x24   :  { %46 = vsyncpa [#allocation29], 0 }
  0x25   :  { %48 = vsyncpa [#allocation29 + $0x1], 0  ;;  %s4585_s29 = smov 0   ;;  %s4587_s2 = smov 0  }
  0x26   :  { %s4589_s6 = smov 0   ;;  %s4591_s30 = smov 0  }
  0x27 LB: > { %s4418_s7 = smov [#allocation8]   ;;  %s4606_s26 = sadd.s32 4294967295, %s4416_s30   ;;  %s4416_s30 = sphi %s4591_s30, %s5451_s30   ;;  %s4412_s6 = sphi %s4589_s6, %s5450_s6   ;;  %s4408_s2 = sphi %s4587_s2, %s5449_s2   ;;  %s4404_s29 = sphi %s4585_s29, %s5448_s29  }
  0x28   : > { %s640_s3 = sshll.u32 %s4418_s7, 4  ;;  %p3214_p0 = scmp.ge.s32.totalorder %s4416_s30, 1  ;;  %s641_s3 = int_to_ptr.vmem [resolvable:$true] %s640_s3 }
  0x29   : > { %p5341_p1 = scmp.eq.s32.totalorder %s4606_s26, 0  ;;  %p625_p2 = scmp.lt.s32.totalorder %s4416_s30, 3 }
  0x2a   : > { %s4419_s8 = smov [#allocation9]   ;;  %s4420_s28 = smov [#allocation12]  }
  0x2b   : > { %p4611_p3 = pnand %p3214_p0, %p625_p2  ;;  %s656_s27 = sshll.u32 %s4419_s8, 4  ;;  %s4624_s27 = int_to_ptr.vmem [resolvable:$true] %s656_s27 }
  0x2c   : > { %s682_s9 = sshll.u32 %s4420_s28, 4  ;;  %s3907_s0 = scalar_lea.vmem %s641_s3, 32  ;;  %s4626_s9 = int_to_ptr.vmem [resolvable:$true] %s682_s9 }
  0x2d   : > { %s5384_s1 = scalar_select %p4611_p3, 1, 0 }
  0x2e   : > { %p3673_p5 = pneg %p4611_p3  ;;  %p3908_p8 = scmp.ne.s32.totalorder %s641_s3, %s3907_s0 }
  0x2f   : > { %p3915_p11 = scmp.lt.s32.totalorder %s641_s3, %s641_s3  ;;  %p3916_p12 = scmp.lt.s32.totalorder %s3907_s0, %s3907_s0 }
  0x30   : > { %p4620_p6 = pnand %p3673_p5, %p5341_p1 }
  0x31   : > { %p3917_p13 = por %p3916_p12, %p3915_p11 }
  0x32   : > { %p4630_p7 = pneg %p4620_p6 }
  0x34   : > { %p3910_p9 = pnand %p3908_p8, %p4630_p7 }
  0x36   : > { %p3911_p10 = pneg %p3910_p9 }
  0x38   : > { %p3918_p0 = pnand %p3917_p13, %p3911_p10 }
  0x3a   : > { %3921 = shalt.err (!%p3918_p0)
}
  0x3b   : > { %s5342_s7 = smov 16   ;;  %s4422_s8 = smov 1  }
  0x3c   : > { %s5387_s21 = sld [smem:[#allocation44_spill]]  ;;  %s3933_s25 = scalar_lea.vmem %s4624_s27, 32 }
  0x3d   : > { %p3934_p2 = scmp.ne.s32.totalorder %s4624_s27, %s3933_s25  ;;  %p3941_p9 = scmp.lt.s32.totalorder %s4624_s27, %s4624_s27 }
  0x3e   : > { %p3942_p10 = scmp.lt.s32.totalorder %s3933_s25, %s3933_s25 }
  0x3f   : > { %p3936_p5 = pnand %p3934_p2, %p4630_p7 }
  0x40   : > { %p3943_p11 = por %p3942_p10, %p3941_p9 }
  0x41   : > { %p3937_p8 = pneg %p3936_p5 }
  0x42   : > { %3676 = dma.hbm_to_vmem [thread:$0]  (!%p4620_p6), %s5387_s21, 32, %s641_s3, [#allocation7], %s5342_s7, %s5342_s7, %s4422_s8  }
  0x43   : > { %p3944_p12 = pnand %p3943_p11, %p3937_p8 }
  0x45   : > { %3947 = shalt.err (!%p3944_p12)
}
  0x46   : > { %s5388_s21 = sld [smem:[#allocation46_spill]]  ;;  %s3959_s3 = scalar_lea.vmem %s4626_s9, 32 }
  0x47   : > { %p3960_p13 = scmp.ne.s32.totalorder %s4626_s9, %s3959_s3  ;;  %p3967_p5 = scmp.lt.s32.totalorder %s4626_s9, %s4626_s9 }
  0x48   : > { %p3968_p8 = scmp.lt.s32.totalorder %s3959_s3, %s3959_s3 }
  0x49   : > { %p3962_p0 = pnand %p3960_p13, %p4630_p7 }
  0x4a   : > { %p3969_p9 = por %p3968_p8, %p3967_p5 }
  0x4b   : > { %p3963_p2 = pneg %p3962_p0 }
  0x4c   : > { %3679 = dma.hbm_to_vmem [thread:$0]  (!%p4620_p6), %s5388_s21, 32, %s4624_s27, [#allocation10], %s5342_s7, %s5342_s7, %s4422_s8  }
  0x4d   : > { %p3970_p10 = pnand %p3969_p9, %p3963_p2 }
  0x4f   : > { %3973 = shalt.err (!%p3970_p10)
}
  0x50   : > { %s5389_s27 = sld [smem:[#allocation48_spill]]  ;;  %s4423_s0 = smov [#allocation15]  }
  0x51   : > { %s714_s24 = sshll.u32 %s4423_s0, 4  ;;  %s4424_s21 = smov [#allocation18]   ;;  %s715_s24 = int_to_ptr.vmem [resolvable:$true] %s714_s24 }
  0x52   : > { %s740_s19 = sshll.u32 %s4424_s21, 4  ;;  %s3985_s3 = scalar_lea.vmem %s715_s24, 32  ;;  %s741_s19 = int_to_ptr.vmem [resolvable:$true] %s740_s19 }
  0x53   : > { %p3986_p11 = scmp.ne.s32.totalorder %s715_s24, %s3985_s3  ;;  %p3993_p0 = scmp.lt.s32.totalorder %s715_s24, %s715_s24 }
  0x54   : > { %p3994_p2 = scmp.lt.s32.totalorder %s3985_s3, %s3985_s3 }
  0x55   : > { %p3988_p12 = pnand %p3986_p11, %p4630_p7 }
  0x56   : > { %3685 = dma.hbm_to_vmem [thread:$0]  (!%p4620_p6), %s5389_s27, 32, %s4626_s9, [#allocation13], %s5342_s7, %s5342_s7, %s4422_s8  }
  0x57   : > { %p3989_p13 = pneg %p3988_p12  ;;  %p3995_p5 = por %p3994_p2, %p3993_p0 }
  0x59   : > { %p3996_p8 = pnand %p3995_p5, %p3989_p13 }
  0x5b   : > { %3999 = shalt.err (!%p3996_p8)
}
  0x5c   : > { %s5390_s11 = sld [smem:[#allocation52_spill]]  ;;  %s4011_s28 = scalar_lea.vmem %s741_s19, 32 }
  0x5d   : > { %p4012_p9 = scmp.ne.s32.totalorder %s741_s19, %s4011_s28  ;;  %p4019_p12 = scmp.lt.s32.totalorder %s741_s19, %s741_s19 }
  0x5e   : > { %p4020_p0 = scmp.lt.s32.totalorder %s4011_s28, %s4011_s28 }
  0x5f   : > { %p4014_p10 = pnand %p4012_p9, %p4630_p7 }
  0x60   : > { %p4021_p13 = por %p4020_p0, %p4019_p12 }
  0x61   : > { %p4015_p11 = pneg %p4014_p10 }
  0x62   : > { %3691 = dma.hbm_to_vmem [thread:$0]  (!%p4620_p6), %s5390_s11, 32, %s715_s24, [#allocation16], %s5342_s7, %s5342_s7, %s4422_s8  }
  0x63   : > { %p4022_p2 = pnand %p4021_p13, %p4015_p11 }
  0x65   : > { %4025 = shalt.err (!%p4022_p2)
}
  0x66   : > { %s5391_s13 = sld [smem:[#allocation54_spill]]  ;;  %s4425_s24 = smov [#allocation21]  }
  0x67   : > { %s765_s21 = sshll.u32 %s4425_s24, 4  ;;  %s4426_s3 = smov [#allocation24]   ;;  %s766_s21 = int_to_ptr.vmem [resolvable:$true] %s765_s21 }
  0x68   : > { %s790_s9 = sshll.u32 %s4426_s3, 4  ;;  %s4037_s25 = scalar_lea.vmem %s766_s21, 16  ;;  %s791_s9 = int_to_ptr.vmem [resolvable:$true] %s790_s9 }
  0x69   : > { %p4038_p5 = scmp.ne.s32.totalorder %s766_s21, %s4037_s25  ;;  %s4044_s28 = scalar_lea.vmem %s766_s21, 32 }
  0x6a   : > { %p4045_p10 = scmp.lt.s32.totalorder %s766_s21, %s766_s21  ;;  %p4046_p11 = scmp.lt.s32.totalorder %s4044_s28, %s4037_s25 }
  0x6b   : > { %p4040_p8 = pnand %p4038_p5, %p4630_p7 }
  0x6c   : > { %3697 = dma.hbm_to_vmem [thread:$0]  (!%p4620_p6), %s5391_s13, 32, %s741_s19, [#allocation19], %s5342_s7, %s5342_s7, %s4422_s8  }
  0x6d   : > { %p4041_p9 = pneg %p4040_p8  ;;  %p4047_p12 = por %p4046_p11, %p4045_p10 }
  0x6f   : > { %p4048_p0 = pnand %p4047_p12, %p4041_p9 }
  0x71   : > { %4051 = shalt.err (!%p4048_p0)
}
  0x72   : > { %s5392_s15 = sld [smem:[#allocation56_spill]]  ;;  %s4063_s0 = scalar_lea.vmem %s791_s9, 16 }
  0x73   : > { %p4064_p13 = scmp.ne.s32.totalorder %s791_s9, %s4063_s0  ;;  %s4070_s24 = scalar_lea.vmem %s791_s9, 32 }
  0x74   : > { %p4071_p8 = scmp.lt.s32.totalorder %s791_s9, %s791_s9  ;;  %p4072_p4 = scmp.lt.s32.totalorder %s4070_s24, %s4063_s0 }
  0x75   : > { %p4066_p2 = pnand %p4064_p13, %p4630_p7 }
  0x76   : > { %p4073_p1 = por %p4072_p4, %p4071_p8 }
  0x77   : > { %p4067_p5 = pneg %p4066_p2 }
  0x78   : > { %3703 = dma.hbm_to_vmem [thread:$0]  (!%p4620_p6), %s5392_s15, 16, %s766_s21, [#allocation22]  }
  0x79   : > { %p4074_p10 = pnand %p4073_p1, %p4067_p5 }
  0x7b   : > { %4077 = shalt.err (!%p4074_p10)
}
  0x7c   : > { %s5393_s18 = sld [smem:[#allocation58_spill]]  ;;  %s4427_s21 = smov [#allocation11]  }
  0x7d   : > { %s669_s28 = sshll.u32 %s4427_s21, 4  ;;  %s4428_s27 = smov [#allocation14]   ;;  %s670_s28 = int_to_ptr.vmem [resolvable:$true] %s669_s28 }
  0x7e   : > { %s698_s19 = sshll.u32 %s4428_s27, 4  ;;  %s4089_s7 = scalar_lea.vmem %s670_s28, 32  ;;  %s699_s19 = int_to_ptr.vmem [resolvable:$true] %s698_s19 }
  0x7f   : > { %p4090_p9 = scmp.ne.s32.totalorder %s670_s28, %s4089_s7  ;;  %p4097_p4 = scmp.lt.s32.totalorder %s670_s28, %s670_s28 }
  0x80   : > { %p4098_p1 = scmp.lt.s32.totalorder %s4089_s7, %s4089_s7 }
  0x81   : > { %p4092_p11 = pnand %p4090_p9, %p4630_p7 }
  0x82   : > { %3709 = dma.hbm_to_vmem [thread:$0]  (!%p4620_p6), %s5393_s18, 16, %s791_s9, [#allocation25]  }
  0x83   : > { %p4093_p12 = pneg %p4092_p11  ;;  %p4099_p0 = por %p4098_p1, %p4097_p4 }
  0x85   : > { %p4100_p13 = pnand %p4099_p0, %p4093_p12 }
  0x87   : > { %4103 = shalt.err (!%p4100_p13)
}
  0x88   : > { %s5394_s0 = smov 16   ;;  %s5395_s3 = sld [smem:[#allocation47_spill]] }
  0x89   : > { %s4115_s25 = scalar_lea.vmem %s699_s19, 32  ;;  %p4123_p10 = scmp.lt.s32.totalorder %s699_s19, %s699_s19 }
  0x8a   : > { %p4116_p2 = scmp.ne.s32.totalorder %s699_s19, %s4115_s25  ;;  %p4124_p9 = scmp.lt.s32.totalorder %s4115_s25, %s4115_s25 }
  0x8c   : > { %p4118_p5 = pnand %p4116_p2, %p4630_p7  ;;  %p4125_p11 = por %p4124_p9, %p4123_p10 }
  0x8e   : > { %3682 = dma.hbm_to_vmem [thread:$0]  (!%p4620_p6), %s5395_s3, 32, %s670_s28, [#allocation10], %s5394_s0, %s5394_s0, %s4422_s8  }
  0x8f   : > { %p4119_p8 = pneg %p4118_p5 }
  0x91   : > { %p4126_p12 = pnand %p4125_p11, %p4119_p8 }
  0x93   : > { %4129 = shalt.err (!%p4126_p12)
}
  0x94   : > { %s5396_s27 = sld [smem:[#allocation50_spill]]  ;;  %s4429_s28 = smov [#allocation17]  }
  0x95   : > { %s727_s9 = sshll.u32 %s4429_s28, 4  ;;  %s4430_s24 = smov [#allocation20]   ;;  %s728_s9 = int_to_ptr.vmem [resolvable:$true] %s727_s9 }
  0x96   : > { %s754_s3 = sshll.u32 %s4430_s24, 4  ;;  %s4141_s11 = scalar_lea.vmem %s728_s9, 32  ;;  %s755_s3 = int_to_ptr.vmem [resolvable:$true] %s754_s3 }
  0x97   : > { %p4142_p4 = scmp.ne.s32.totalorder %s728_s9, %s4141_s11  ;;  %p4149_p13 = scmp.lt.s32.totalorder %s728_s9, %s728_s9 }
  0x98   : > { %p4150_p2 = scmp.lt.s32.totalorder %s4141_s11, %s4141_s11 }
  0x99   : > { %p4144_p1 = pnand %p4142_p4, %p4630_p7 }
  0x9a   : > { %3688 = dma.hbm_to_vmem [thread:$0]  (!%p4620_p6), %s5396_s27, 32, %s699_s19, [#allocation13], %s5394_s0, %s5394_s0, %s4422_s8  }
  0x9b   : > { %p4145_p0 = pneg %p4144_p1  ;;  %p4151_p5 = por %p4150_p2, %p4149_p13 }
  0x9d   : > { %p4152_p8 = pnand %p4151_p5, %p4145_p0 }
  0x9f   : > { %4155 = shalt.err (!%p4152_p8)
}
  0xa0   : > { %s5397_s12 = sld [smem:[#allocation53_spill]]  ;;  %s4167_s7 = scalar_lea.vmem %s755_s3, 16 }
  0xa1   : > { %p4168_p10 = scmp.ne.s32.totalorder %s755_s3, %s4167_s7  ;;  %s4174_s11 = scalar_lea.vmem %s755_s3, 32 }
  0xa2   : > { %p4175_p12 = scmp.lt.s32.totalorder %s755_s3, %s755_s3  ;;  %p4176_p4 = scmp.lt.s32.totalorder %s4174_s11, %s4167_s7 }
  0xa3   : > { %p4170_p9 = pnand %p4168_p10, %p4630_p7 }
  0xa4   : > { %p4177_p1 = por %p4176_p4, %p4175_p12 }
  0xa5   : > { %p4171_p11 = pneg %p4170_p9 }
  0xa6   : > { %3694 = dma.hbm_to_vmem [thread:$0]  (!%p4620_p6), %s5397_s12, 32, %s728_s9, [#allocation16], %s5394_s0, %s5394_s0, %s4422_s8  }
  0xa7   : > { %p4178_p0 = pnand %p4177_p1, %p4171_p11 }
  0xa9   : > { %4181 = shalt.err (!%p4178_p0)
}
  0xaa   : > { %s5398_s14 = sld [smem:[#allocation55_spill]]  ;;  %s4431_s8 = smov [#allocation23]  }
  0xab   : > { %s779_s0 = sshll.u32 %s4431_s8, 4  ;;  %s4432_s28 = smov [#allocation26]   ;;  %s780_s0 = int_to_ptr.vmem [resolvable:$true] %s779_s0 }
  0xac   : > { %s809_s9 = sshll.u32 %s4432_s28, 4  ;;  %s4193_s24 = scalar_lea.vmem %s780_s0, 16  ;;  %s810_s9 = int_to_ptr.vmem [resolvable:$true] %s809_s9 }
  0xad   : > { %p4194_p13 = scmp.ne.s32.totalorder %s780_s0, %s4193_s24  ;;  %s4200_s19 = scalar_lea.vmem %s780_s0, 32 }
  0xae   : > { %p4201_p8 = scmp.lt.s32.totalorder %s780_s0, %s780_s0  ;;  %p4202_p10 = scmp.lt.s32.totalorder %s4200_s19, %s4193_s24 }
  0xaf   : > { %p4196_p2 = pnand %p4194_p13, %p4630_p7 }
  0xb0   : > { %3700 = dma.hbm_to_vmem [thread:$0]  (!%p4620_p6), %s5398_s14, 16, %s755_s3, [#allocation19]  }
  0xb1   : > { %p4197_p5 = pneg %p4196_p2  ;;  %p4203_p9 = por %p4202_p10, %p4201_p8 }
  0xb3   : > { %p4204_p11 = pnand %p4203_p9, %p4197_p5 }
  0xb5   : > { %4207 = shalt.err (!%p4204_p11)
}
  0xb6   : > { %s5399_s17 = sld [smem:[#allocation57_spill]]  ;;  %s4219_s7 = scalar_lea.vmem %s810_s9, 256 }
  0xb7   : > { %p4220_p12 = scmp.ne.s32.totalorder %s810_s9, %s4219_s7  ;;  %p4227_p0 = scmp.lt.s32.totalorder %s810_s9, %s810_s9 }
  0xb8   : > { %p4228_p13 = scmp.lt.s32.totalorder %s4219_s7, %s4219_s7 }
  0xb9   : > { %p4222_p4 = pnand %p4220_p12, %p4630_p7 }
  0xba   : > { %p4229_p2 = por %p4228_p13, %p4227_p0 }
  0xbb   : > { %p4223_p1 = pneg %p4222_p4 }
  0xbc   : > { %3706 = dma.hbm_to_vmem [thread:$0]  (!%p4620_p6), %s5399_s17, 16, %s780_s0, [#allocation22]  }
  0xbd   : > { %p4230_p3 = pnand %p4229_p2, %p4223_p1 }
  0xbf   : > { %4233 = shalt.err (!%p4230_p3)
}
  0xc0   : > { %s4433_s11 = smov 64   ;;  %s4434_s5 = smov 4  }
  0xc1   : > { %s5400_s22 = sld [smem:[#allocation61_spill]]  ;;  %s3213_s8 = sadd.s32 4294967294, %s4416_s30  }
  0xc2   : > { %s4761_s0 = sadd.s32 1, %s4416_s30   ;;  %s61_s28 = sadd.s32 1, %s4412_s6 }
  0xc3   : > { %s58_s24 = ssub.s32 %s4416_s30, %s4761_s0  ;;  %p68_p3 = scmp.ne.s32.totalorder %s4412_s6, %s4408_s2 }
  0xc4   : > { %p59_p7 = scmp.eq.s32.totalorder %s58_s24, 0  ;;  %p69_p5 = scmp.eq.s32.totalorder %s4416_s30, 0 }
  0xc5   : > { %p74_p8 = scmp.ne.s32.totalorder %s4408_s2, %s4404_s29  ;;  %p586_p10 = scmp.eq.s32.totalorder %s4606_s26, 1 }
  0xc6   : > { %s4773_s4 = scalar_select %p59_p7, %s4412_s6, %s61_s28  }
  0xc7   : > { %3712 = dma.hbm_to_vmem [thread:$0]  (!%p4620_p6), %s5400_s22, 256, %s810_s9, [#allocation25], %s4433_s11, %s4433_s11, %s4434_s5  }
  0xc8   : > { %p70_p9 = por %p69_p5, %p68_p3  ;;  %p5401_p11 = scmp.eq.s32.totalorder %s4606_s26, 0 }
  0xc9   : > { %p4781_p6 = por %p586_p10, %p68_p3  ;;  %p592_p4 = scmp.eq.s32.totalorder %s3213_s8, 1 }
  0xca   : > { %p4777_p12 = por %p5401_p11, %p74_p8  ;;  %p3740_p1 = scmp.lt.s32.totalorder %s4416_s30, 2 }
  0xcb   : > { %s5403_s19 = scalar_select %p4781_p6, 1, 0 }
  0xcc   : > { %s5402_s9 = scalar_select %p4777_p12, 1, 0 }
  0xcd   : > { %s4787_s25 = sand.u32 1, %s4412_s6   ;;  %p4789_p0 = por %p592_p4, %p74_p8 }
  0xce   : > { %s3229_s7 = sshll.u32 %s4787_s25, 3  ;;  %s3230_s11 = sshll.u32 %s4416_s30, 7 }
  0xcf   : > { %s5404_s3 = scalar_select %p4789_p0, 1, 0 }
  0xd0   : > { %s5405_s27 = sld [smem:[#allocation41_spill]]  ;;  %s830_s8 = scalar_lea.vmem [#allocation3], %s3229_s7 }
  0xd1   : > { %s837_s24 = sshll.u32 %s830_s8, 4  ;;  %p4800_p13 = pnand %p3740_p1, %p70_p9  ;;  %s838_s24 = int_to_ptr.vmem [resolvable:$true] %s837_s24 }
  0xd2   : > { %s827_s14 = scalar_lea.sflag [#allocation4], %s4787_s25 }
  0xd3   : > { %p4236_p3 = pneg %p4800_p13 }
  0xd6   : > { %s4798_s28 = scalar_lea.hbm %s5405_s27, %s3230_s11  ;;  %s4239_s5 = scalar_lea.hbm %s5405_s27, 256 }
  0xd7   : > { %s4234_s15 = scalar_lea.hbm %s4798_s28, 128  ;;  %p4240_p8 = scmp.lt.s32.totalorder %s4798_s28, %s5405_s27 }
  0xd8   : > { %p4235_p2 = scmp.ne.s32.totalorder %s4798_s28, %s4234_s15  ;;  %p4241_p10 = scmp.lt.s32.totalorder %s4239_s5, %s4234_s15 }
  0xda   : > { %p4237_p7 = pnand %p4236_p3, %p4235_p2  ;;  %p4242_p9 = por %p4241_p10, %p4240_p8 }
  0xdc   : > { %p4238_p5 = pneg %p4237_p7 }
  0xde   : > { %p4243_p11 = pnand %p4242_p9, %p4238_p5 }
  0xe0   : > { %4246 = shalt.err (!%p4243_p11)
}
  0xe1   : > { %s4247_s13 = scalar_lea.vmem %s838_s24, 128  ;;  %s4435_s17 = smov [#allocation3]  }
  0xe2   : > { %p4248_p4 = scmp.ne.s32.totalorder %s838_s24, %s4247_s13  ;;  %s4252_s18 = sshll.u32 %s4435_s17, 4  ;;  %s4253_s18 = int_to_ptr.vmem [resolvable:$false] %s4252_s18 }
  0xe3   : > { %s4254_s11 = scalar_lea.vmem %s4253_s18, 256  ;;  %p4255_p7 = scmp.lt.s32.totalorder %s838_s24, %s4253_s18 }
  0xe4   : > { %p4250_p1 = pnand %p4248_p4, %p4236_p3  ;;  %p4256_p0 = scmp.lt.s32.totalorder %s4254_s11, %s4247_s13 }
  0xe6   : > { %p4251_p2 = pneg %p4250_p1  ;;  %p4257_p6 = por %p4256_p0, %p4255_p7 }
  0xe8   : > { %p4258_p12 = pnand %p4257_p6, %p4251_p2 }
  0xea   : > { %4261 = shalt.err (!%p4258_p12)
}
  0xeb   : > { %3716 = dma.hbm_to_vmem [thread:$0]  (!%p4800_p13), %s4798_s28, 128, %s838_s24, %s827_s14  }
  0xec   : > { %s3231_s15 = sshll.u32 %s4416_s30, 4  ;;  %s5407_s21 = sld [smem:[#allocation42_spill]] }
  0xed   : > { %s847_s13 = scalar_lea.vmem [#allocation6], %s4787_s25  ;;  %s5408_s8 = sand.u32 1, %s4416_s30  }
  0xee   : > { %s854_s18 = sshll.u32 %s847_s13, 4  ;;  %s845_s11 = scalar_lea.sflag [#allocation7], %s5408_s8  ;;  %s855_s18 = int_to_ptr.vmem [resolvable:$true] %s854_s18 }
  0xf2   : > { %s4830_s17 = scalar_lea.hbm %s5407_s21, %s3231_s15  ;;  %s4267_s24 = scalar_lea.hbm %s5407_s21, 32 }
  0xf3   : > { %s4262_s22 = scalar_lea.hbm %s4830_s17, 16  ;;  %p4268_p5 = scmp.lt.s32.totalorder %s4830_s17, %s5407_s21 }
  0xf4   : > { %p4263_p12 = scmp.ne.s32.totalorder %s4830_s17, %s4262_s22  ;;  %p4269_p8 = scmp.lt.s32.totalorder %s4267_s24, %s4262_s22 }
  0xf6   : > { %p4265_p6 = pnand %p4263_p12, %p4236_p3  ;;  %p4270_p10 = por %p4269_p8, %p4268_p5 }
  0xf8   : > { %p4266_p0 = pneg %p4265_p6 }
  0xfa   : > { %p4271_p9 = pnand %p4270_p10, %p4266_p0 }
  0xfc   : > { %4274 = shalt.err (!%p4271_p9)
}
  0xfd   : > { %s4275_s25 = scalar_lea.vmem %s855_s18, 16  ;;  %s4436_s5 = smov [#allocation6]  }
  0xfe   : > { %p4276_p11 = scmp.ne.s32.totalorder %s855_s18, %s4275_s25  ;;  %s4280_s13 = sshll.u32 %s4436_s5, 4  ;;  %s4281_s13 = int_to_ptr.vmem [resolvable:$false] %s4280_s13 }
  0xff   : > { %s4282_s8 = scalar_lea.vmem %s4281_s13, 32  ;;  %p4283_p2 = scmp.lt.s32.totalorder %s855_s18, %s4281_s13 }
 0x100   : > { %p4278_p4 = pnand %p4276_p11, %p4236_p3  ;;  %p4284_p7 = scmp.lt.s32.totalorder %s4282_s8, %s4275_s25 }
 0x102   : > { %p4279_p1 = pneg %p4278_p4  ;;  %p4285_p12 = por %p4284_p7, %p4283_p2 }
 0x104   : > { %p4286_p6 = pnand %p4285_p12, %p4279_p1 }
 0x106   : > { %4289 = shalt.err (!%p4286_p6)
}
 0x107   : > { %3719 = dma.hbm_to_vmem [thread:$0]  (!%p4800_p13), %s4830_s17, 16, %s855_s18, %s845_s11  }
 0x108   : > { %p5409_p0 = scmp.ne.s32.totalorder %s5384_s1, 0 }
 0x109   : > { %s4856_s22 = sand.u32 (!%p5409_p0), 1, %s4408_s2   ;;  %p5410_p3 = scmp.ne.s32.totalorder (!%p5409_p0), %s5402_s9, 0 }
 0x10a   : > { %863 = sbr.rel (%p5409_p0) target bundleno = 6249 (0x1869), region = 116  ;;  %s4859_s14 = sshll.u32 (!%p5409_p0), %s4856_s22, 3 }
 0x10b   : > { %s866_s28 = scalar_lea.sflag (!%p5409_p0), [#allocation4], %s4856_s22  ;;  %s869_s24 = scalar_lea.vmem (!%p5409_p0), [#allocation3], %s4859_s14 }
 0x10f   : > { %4359 = dma.done.wait (%p5410_p3), %s866_s28, 128  }
 0x110   : > { %4361 = vsyncadd (%p5410_p3), %s866_s28, 4294967168  ;;  %s874_s12 = sand.u32 1, %s4606_s26   ;;  %s877_s17 = scalar_lea.vmem [#allocation6], %s4856_s22 }
 0x111   : > { %s875_s1 = scalar_lea.sflag [#allocation7], %s874_s12 }
 0x112   : > { %4363 = dma.done.wait (%p5410_p3), %s875_s1, 16  }
 0x113   : > { %4365 = vsyncadd (%p5410_p3), %s875_s1, 4294967280  ;;  %p5411_p13 = scmp.eq.s32.totalorder %s4606_s26, 0 }
 0x115   : > { %4367 = dma.done.wait (%p5411_p13), [#allocation7], 32   ;;  %p5412_p5 = pmov %p5411_p13 }
 0x117   : > { %4369 = vsyncadd (%p5412_p5), [#allocation7], 4294967264  ;;  %p5413_p8 = pmov %p5412_p5 }
 0x118   : > { %p5414_p10 = pmov %p5412_p5 }
 0x119   : > { %4371 = dma.done.wait (%p5413_p8), [#allocation10], 64  }
 0x11a   : > { %4373 = vsyncadd (%p5414_p10), [#allocation10], 4294967232  ;;  %p5415_p9 = pmov %p5412_p5 }
 0x11b   : > { %p5416_p11 = pmov %p5412_p5 }
 0x11c   : > { %4375 = dma.done.wait (%p5415_p9), [#allocation13], 64  }
 0x11d   : > { %4377 = vsyncadd (%p5416_p11), [#allocation13], 4294967232  ;;  %p5417_p4 = pmov %p5412_p5 }
 0x11f   : > { %4379 = dma.done.wait (%p5417_p4), [#allocation16], 64   ;;  %p5418_p1 = pmov %p5417_p4 }
 0x121   : > { %4381 = vsyncadd (%p5418_p1), [#allocation16], 4294967232  ;;  %p5419_p2 = pmov %p5418_p1 }
 0x122   : > { %p5420_p7 = pmov %p5418_p1 }
 0x123   : > { %4383 = dma.done.wait (%p5419_p2), [#allocation19], 48  }
 0x124   : > { %4385 = vsyncadd (%p5420_p7), [#allocation19], 4294967248  ;;  %p5421_p12 = pmov %p5418_p1 }
 0x125   : > { %p5422_p6 = pmov %p5418_p1 }
 0x126   : > { %4387 = dma.done.wait (%p5421_p12), [#allocation22], 32  }
 0x127   : > { %4389 = vsyncadd (%p5422_p6), [#allocation22], 4294967264  ;;  %p5423_p0 = pmov %p5418_p1 }
 0x129   : > { %4391 = dma.done.wait (%p5423_p0), [#allocation25], 272   ;;  %p5424_p3 = pmov %p5423_p0 }
 0x12a   : > { %vm1010_vm0 = vcmask 261120   ;;  %v1007_v0 = vld [vmem:[%s869_s24] sm:$0xff]  ;;  %s5425_s11 = sld [smem:[#allocation43_spill]]  ;;  %v4437_v8 = vmov 0.0   ;;  %vm4438_vm1 = vmmov 0   ;;  %s4439_s25 = smov 120  }
 0x12b   : > { %4393 = vsyncadd (%p5424_p3), [#allocation25], 4294967024  ;;  %v1011_v1 = vsel %vm1010_vm0, %v1007_v0, 0.0  ;;  %3421 = vmatprep.subr.bf16.mxu0 %v4437_v8  ;;  %3425 = vmatprep.mubr.msk.bf16.mxu0 %vm4438_vm1, %v4437_v8  ;;  %v3249_v14 = vld [vmem:[#allocation20] ss:$0 sm:$0xff]  ;;  %s4440_s5 = smov 96  }
 0x12c   : > { %1012 = vadd.xlane.f32.xlu0 %v1011_v1  ;;  %3429 = vmatprep.subr.bf16.mxu1 %v4437_v8  ;;  %v3250_v16 = vld [vmem:[#allocation21] ss:$0 sm:$0xff]  ;;  %v3251_v20 = vld [vmem:[#allocation8] ss:$0 sm:$0xff]  ;;  %s4441_s13 = smov 88   ;;  %s5357_s8 = smov 80  }
 0x12d   : > { %3431 = vmatprep.mubr.msk.bf16.mxu1 %vm4438_vm1, %v4437_v8  ;;  %s5356_s28 = smov 112   ;;  %s5355_s24 = smov 72   ;;  %vm1110_vm2 = vcmask 64512   ;;  %v4963_v39 = vld [vmem:[%s877_s17] ss:$0 sm:$0xff]  ;;  %vm1182_vm3 = vcmask 1043456  }
 0x12e   : > { %s5351_s12 = smov 104   ;;  %s5350_s1 = smov 64   ;;  %vm1343_vm4 = vcmask 130112   ;;  %vm1461_vm5 = vcmask 195712   ;;  %vm1579_vm6 = vcmask 261312   ;;  %vm1795_vm7 = vcmask 523264  }
 0x12f   : > { %s5349_s17 = smov 56   ;;  %s5348_s9 = smov 48  }
 0x130   : > { %v3820_v7 = vld [vmem:[%s5425_s11 + $0x8] sm:$0xff]   ;;  %v3821_v9 = vld [vmem:[%s5425_s11] sm:$0xff]   ;;  %s5347_s18 = smov 40   ;;  %s5354_s15 = smov 8  }
 0x131   : > { %3422 = vmatpush3.bf16.msra.mxu0 %v3820_v7  ;;  %s5427_s7 = sld [smem:[#allocation49_spill]]  ;;  %p5442_p5 = scmp.ne.s32.totalorder %s5403_s19, 0 }
 0x132   : > { %3423 = vmatprep.subr.bf16.mxu0 %v4437_v8  ;;  %s5428_s10 = sld [smem:[#allocation51_spill]] }
 0x135   : > { %3424 = vmatpush3.bf16.msra.mxu0 %v3821_v9 }
 0x136   : > { %3435 = vmatprep.subr.bf16.mxu0 %v4437_v8 }
 0x1b5   : > { %v1013_v2 = vpop.xlane.xlu0 %1012 }
 0x1b6   : > { %v1015_v3 = vmul.f32 0.03125, %v1013_v2 }
 0x1b8   : > { %v1016_v4 = vsub.f32 %v1007_v0, %v1015_v3 }
 0x1ba   : > { %v1017_v5 = vmul.f32 %v1016_v4, %v1016_v4 }
 0x1bc   : > { %v1018_v6 = vsel %vm1010_vm0, %v1017_v5, 0.0 }
 0x1bd   : > { %1019 = vadd.xlane.f32.xlu0 %v1018_v6 }
 0x246   : > { %v1020_v10 = vpop.xlane.xlu0 %1019 }
 0x247   : > { %v1021_v11 = vmul.f32 0.03125, %v1020_v10 }
 0x249   : > { %v1022_v12 = vadd.f32 1e-12, %v1021_v11 }
 0x24b   : > { %3846 = vrsqrt.f32 %v1022_v12 }
 0x258   : > { %v3847_v13 = vpop.eup %3846 }
 0x259   : > { %v1024_v15 = vmul.f32 %v3847_v13, %v1016_v4 }
 0x25b   : > { %v1031_v17 = vmul.f32 %v3249_v14, %v1024_v15 }
 0x25d   : > { %v4917_v18 = vadd.f32 %v3250_v16, %v1031_v17 }
 0x25f   : > { %v1043_v19 = vpack.c.bf16 %v4917_v18, %v4917_v18 }
 0x261   : > { %3426 = vmatmul.mubr.msk.bf16.vlgmr.msra.gmra.mxu0 %vm1010_vm0, %v1043_v19 }
 0x262   : > { %3437 = vmatprep.mubr.msk.bf16.mxu0 %vm4438_vm1, %v4437_v8 }
 0x321   : > { %v1100_v21 = vpop.f32.mrf.mxu0 }
 0x322   : > { %v1101_v22 = vadd.f32 %v3251_v20, %v1100_v21 }
 0x323   : > { %v3427_v23 = vpop.f32.mrf.mxu0 }
 0x324   : > { %v4924_v24 = vpack.c.bf16 %v1101_v22, %v1101_v22 }
 0x325   : > { %v1103_v25 = vpop.f32.mrf.mxu0 }
 0x326   : > { %1227 = vrot.lane.b32.xlu0 %v4924_v24, %s4439_s25  ;;  %1108 = vrot.lane.b32.xlu1 %v4924_v24, %s4440_s5 }
 0x327   : > { %v3428_v26 = vpop.f32.mrf.mxu0 }
 0x32a   : > { %1229 = vrot.lane.b32.xlu1 %v4924_v24, %s4441_s13 }
 0x32e   : > { %1347 = vrot.lane.b32.xlu1 %v4924_v24, %s5357_s8  ;;  %s5436_s8 = smov 40  }
 0x332   : > { %1345 = vrot.lane.b32.xlu1 %v4924_v24, %s5356_s28  ;;  %s5437_s28 = smov 8  }
 0x336   : > { %1465 = vrot.lane.b32.xlu1 %v4924_v24, %s5355_s24 }
 0x33a   : > { %1463 = vrot.lane.b32.xlu1 %v4924_v24, %s5351_s12  ;;  %s5353_s12 = smov 16  }
 0x398   : > { %v1109_v27 = vpop.permute.xlu1 %1108  ;;  %v1228_v32 = vpop.permute.xlu0 %1227 }
 0x399   : > { %v1115_v28 = vsel %vm1110_vm2, %v1109_v27, 0 }
 0x39a   : > { %3430 = vmatpush3.bf16.xpose.msra.mxu1 %v1115_v28 }
 0x39b   : > { %3441 = vmatprep.subr.bf16.mxu1 %v4437_v8 }
 0x39c   : > { %v1230_v29 = vpop.permute.xlu1 %1229 }
 0x39d   : > { %v1235_v30 = vsel %vm1110_vm2, %v1230_v29, 0 }
 0x3a0   : > { %v1348_v31 = vpop.permute.xlu1 %1347 }
 0x3a1   : > { %3432 = vmatmul.mubr.msk.bf16.vlgmr.msra.gmra.mxu1 %vm1110_vm2, %v4924_v24  ;;  %v1353_v34 = vsel %vm1110_vm2, %v1348_v31, 0 }
 0x3a2   : > { %3442 = vmatpush3.bf16.xpose.msra.mxu1 %v1235_v30  ;;  %3443 = vmatprep.mubr.msk.bf16.mxu1 %vm4438_vm1, %v4437_v8 }
 0x3a3   : > { %3453 = vmatprep.subr.bf16.mxu1 %v4437_v8 }
 0x3a4   : > { %v1346_v33 = vpop.permute.xlu1 %1345 }
 0x3a8   : > { %v1466_v35 = vpop.permute.xlu1 %1465 }
 0x3a9   : > { %3444 = vmatmul.mubr.msk.bf16.vlgmr.msra.gmra.mxu1 %vm1110_vm2, %v1228_v32  ;;  %v1471_v36 = vsel %vm1110_vm2, %v1466_v35, 0 }
 0x3aa   : > { %3454 = vmatpush3.bf16.xpose.msra.mxu1 %v1353_v34  ;;  %3455 = vmatprep.mubr.msk.bf16.mxu1 %vm4438_vm1, %v4437_v8 }
 0x3ab   : > { %3465 = vmatprep.subr.bf16.mxu1 %v4437_v8 }
 0x3ac   : > { %v1464_v37 = vpop.permute.xlu1 %1463 }
 0x3b1   : > { %3456 = vmatmul.mubr.msk.bf16.vlgmr.msra.gmra.mxu1 %vm1110_vm2, %v1346_v33 }
 0x3b2   : > { %3466 = vmatpush3.bf16.xpose.msra.mxu1 %v1471_v36  ;;  %3467 = vmatprep.mubr.msk.bf16.mxu1 %vm4438_vm1, %v4437_v8 }
 0x3b3   : > { %3477 = vmatprep.subr.bf16.mxu1 %v4437_v8 }
 0x3b9   : > { %3468 = vmatmul.mubr.msk.bf16.vlgmr.msra.gmra.mxu1 %vm1110_vm2, %v1464_v37 }
 0x3ba   : > { %3481 = vmatprep.mubr.msk.bf16.mxu1 %vm4438_vm1, %v4437_v8 }
 0x461   : > { %v1151_v38 = vpop.f32.mrf.mxu1 }
 0x462   : > { %v1157_v40 = vmul.f32 0.35355338, %v1151_v38 }
 0x463   : > { %v3433_v41 = vpop.f32.mrf.mxu1 }
 0x464   : > { %v1164_v42 = vadd.f32 %v4963_v39, %v1157_v40 }
 0x465   : > { %v1154_v43 = vpop.f32.mrf.mxu1 }
 0x466   : > { %v1165_v44 = vsel %vm1110_vm2, %v1164_v42, -inf }
 0x467   : > { %v3434_v45 = vpop.f32.mrf.mxu1  ;;  %1166 = vmax.xlane.f32.xlu1 %v1165_v44 }
 0x469   : > { %v1271_v46 = vpop.f32.mrf.mxu1 }
 0x46a   : > { %v1277_v47 = vmul.f32 0.35355338, %v1271_v46 }
 0x46b   : > { %v3445_v48 = vpop.f32.mrf.mxu1 }
 0x46c   : > { %v1278_v49 = vadd.f32 %v4963_v39, %v1277_v47 }
 0x46d   : > { %v1274_v50 = vpop.f32.mrf.mxu1 }
 0x46e   : > { %v1279_v51 = vsel %vm1110_vm2, %v1278_v49, -inf }
 0x46f   : > { %v3446_v52 = vpop.f32.mrf.mxu1  ;;  %1280 = vmax.xlane.f32.xlu0 %v1279_v51 }
 0x471   : > { %v1389_v53 = vpop.f32.mrf.mxu1 }
 0x472   : > { %v1395_v54 = vmul.f32 0.35355338, %v1389_v53 }
 0x473   : > { %v3457_v55 = vpop.f32.mrf.mxu1 }
 0x474   : > { %v1396_v56 = vadd.f32 %v4963_v39, %v1395_v54 }
 0x475   : > { %v1392_v57 = vpop.f32.mrf.mxu1 }
 0x476   : > { %v1397_v58 = vsel %vm1110_vm2, %v1396_v56, -inf }
 0x477   : > { %v3458_v59 = vpop.f32.mrf.mxu1  ;;  %1398 = vmax.xlane.f32.xlu1 %v1397_v58 }
 0x479   : > { %v1507_v60 = vpop.f32.mrf.mxu1 }
 0x47a   : > { %v1513_v61 = vmul.f32 0.35355338, %v1507_v60 }
 0x47b   : > { %v3469_v62 = vpop.f32.mrf.mxu1 }
 0x47c   : > { %v1514_v63 = vadd.f32 %v4963_v39, %v1513_v61 }
 0x47d   : > { %v1510_v0 = vpop.f32.mrf.mxu1 }
 0x47e   : > { %v1515_v1 = vsel %vm1110_vm2, %v1514_v63, -inf }
 0x47f   : > { %v3470_v2 = vpop.f32.mrf.mxu1  ;;  %1516 = vmax.xlane.f32.xlu0 %v1515_v1 }
 0x4f0   : > { %v1167_v3 = vpop.xlane.xlu1 %1166 }
 0x4f1   : > { %v1168_v4 = vsub.f32 %v1164_v42, %v1167_v3 }
 0x4f3   : > { %v1169_v5 = vmul.f32 1.442695, %v1168_v4 }
 0x4f5   : > { %3848 = vpow2.f32 %v1169_v5 }
 0x4f8   : > { %v1281_v6 = vpop.xlane.xlu0 %1280 }
 0x4f9   : > { %v1282_v7 = vsub.f32 %v1278_v49, %v1281_v6 }
 0x4fb   : > { %v1283_v9 = vmul.f32 1.442695, %v1282_v7 }
 0x4fd   : > { %3850 = vpow2.f32 %v1283_v9 }
 0x500   : > { %v1399_v20 = vpop.xlane.xlu1 %1398 }
 0x501   : > { %v1400_v21 = vsub.f32 %v1396_v56, %v1399_v20 }
 0x502   : > { %v3849_v10 = vpop.eup %3848 }
 0x503   : > { %v1171_v11 = vsel %vm1110_vm2, %v3849_v10, 0.0  ;;  %v1401_v22 = vmul.f32 1.442695, %v1400_v21 }
 0x504   : > { %1172 = vadd.xlane.f32.xlu1 %v1171_v11 }
 0x508   : > { %v1517_v12 = vpop.xlane.xlu0 %1516 }
 0x509   : > { %v1518_v13 = vsub.f32 %v1514_v63, %v1517_v12 }
 0x50a   : > { %v3851_v14 = vpop.eup %3850 }
 0x50b   : > { %v1519_v15 = vmul.f32 1.442695, %v1518_v13  ;;  %v1285_v16 = vsel %vm1110_vm2, %v3851_v14, 0.0 }
 0x50c   : > { %1286 = vadd.xlane.f32.xlu0 %v1285_v16 }
 0x50d   : > { %3852 = vpow2.f32 %v1519_v15 }
 0x50e   : > { %3854 = vpow2.f32 %v1401_v22 }
 0x515   : > { %1177 = vrot.lane.b32.xlu1 %v4924_v24, %s5350_s1  ;;  %s5431_s1 = smov 72  }
 0x51a   : > { %v3853_v17 = vpop.eup %3852 }
 0x51b   : > { %v1521_v19 = vsel %vm1110_vm2, %v3853_v17, 0.0  ;;  %v3855_v23 = vpop.eup %3854 }
 0x51c   : > { %1522 = vadd.xlane.f32.xlu0 %v1521_v19  ;;  %v1403_v25 = vsel %vm1110_vm2, %v3855_v23, 0.0 }
 0x532   : > { %1291 = vrot.lane.b32.xlu0 %v4924_v24, %s5349_s17  ;;  %s5432_s17 = smov 104  }
 0x539   : > { %1404 = vadd.xlane.f32.xlu1 %v1403_v25  ;;  %v3824_v25 = vld [vmem:[%s5427_s7 + $0x8] sm:$0xff]  }
 0x54a   : > { %1409 = vrot.lane.b32.xlu1 %v4924_v24, %s5348_s9  ;;  %s5426_s9 = sld [smem:[#allocation45_spill]] }
 0x54e   : > { %1527 = vrot.lane.b32.xlu1 %v4924_v24, %s5347_s18  ;;  %s5352_s18 = smov 24  }
 0x550   : > { %v3822_v58 = vld [vmem:[%s5426_s9 + $0x8] sm:$0xff]   ;;  %v3823_v59 = vld [vmem:[%s5426_s9] sm:$0xff]  }
 0x551   : > { %3478 = vmatpush3.bf16.msra.mxu1 %v3822_v58 }
 0x552   : > { %3479 = vmatprep.subr.bf16.mxu1 %v4437_v8 }
 0x555   : > { %3480 = vmatpush3.bf16.msra.mxu1 %v3823_v59 }
 0x556   : > { %3493 = vmatprep.subr.bf16.mxu1 %v4437_v8 }
 0x58d   : > { %v1173_v26 = vpop.xlane.xlu1 %1172 }
 0x58e   : > { %3856 = vrcp.f32 %v1173_v26 }
 0x591   : > { %v1178_v27 = vpop.permute.xlu1 %1177 }
 0x592   : > { %v1184_v28 = vsel %vm1182_vm3, %v1178_v27, 0 }
 0x593   : > { %3436 = vmatpush3.bf16.msra.mxu0 %v1184_v28 }
 0x594   : > { %3447 = vmatprep.subr.bf16.mxu0 %v4437_v8 }
 0x595   : > { %v1287_v29 = vpop.xlane.xlu0 %1286 }
 0x596   : > { %3858 = vrcp.f32 %v1287_v29 }
 0x59b   : > { %v3857_v30 = vpop.eup %3856 }
 0x59c   : > { %v1175_v31 = vmul.f32 %v3857_v30, %v3849_v10  ;;  %v3264_v10 = vld [vmem:[#allocation9] ss:$0 sm:$0xff]  ;;  %v3268_v30 = vld [vmem:[#allocation11] ss:$0 sm:$0xff] }
 0x59e   : > { %v1176_v32 = vpack.c.bf16 %v1175_v31, %v1175_v31 }
 0x5a0   : > { %3438 = vmatmul.mubr.msk.bf16.vlgmr.msra.gmra.mxu0 %vm1110_vm2, %v1176_v32  ;;  %v3269_v32 = vld [vmem:[#allocation12] ss:$0 sm:$0xff] }
 0x5a1   : > { %3449 = vmatprep.mubr.msk.bf16.mxu0 %vm4438_vm1, %v4437_v8 }
 0x5a3   : > { %v3859_v24 = vpop.eup %3858 }
 0x5a4   : > { %v1289_v34 = vmul.f32 %v3859_v24, %v3851_v14 }
 0x5a5   : > { %v1523_v33 = vpop.xlane.xlu0 %1522 }
 0x5a6   : > { %v1290_v37 = vpack.c.bf16 %v1289_v34, %v1289_v34 }
 0x5a9   : > { %v1292_v35 = vpop.permute.xlu0 %1291 }
 0x5aa   : > { %v1297_v36 = vsel %vm1182_vm3, %v1292_v35, 0  ;;  %v3826_v35 = vld [vmem:[%s5428_s10 + $0x18] sm:$0xff]  }
 0x5ab   : > { %3448 = vmatpush3.bf16.msra.mxu0 %v1297_v36  ;;  %v3827_v36 = vld [vmem:[%s5428_s10 + $0x10] sm:$0xff]  }
 0x5ac   : > { %3459 = vmatprep.subr.bf16.mxu0 %v4437_v8 }
 0x5ae   : > { %3450 = vmatmul.mubr.msk.bf16.vlgmr.msra.gmra.mxu0 %vm1110_vm2, %v1290_v37  ;;  %v3828_v37 = vld [vmem:[%s5428_s10 + $0x8] sm:$0xff]  }
 0x5af   : > { %3461 = vmatprep.mubr.msk.bf16.mxu0 %vm4438_vm1, %v4437_v8 }
 0x5c2   : > { %v1405_v38 = vpop.xlane.xlu1 %1404 }
 0x5c3   : > { %3860 = vrcp.f32 %v1405_v38  ;;  %v3829_v38 = vld [vmem:[%s5428_s10] sm:$0xff]  }
 0x5c4   : > { %3862 = vrcp.f32 %v1523_v33 }
 0x5c6   : > { %v1410_v40 = vpop.permute.xlu1 %1409 }
 0x5c7   : > { %v1415_v41 = vsel %vm1182_vm3, %v1410_v40, 0  ;;  %v3270_v40 = vld [vmem:[#allocation14] ss:$0 sm:$0xff] }
 0x5c8   : > { %3460 = vmatpush3.bf16.msra.mxu0 %v1415_v41 }
 0x5c9   : > { %3471 = vmatprep.subr.bf16.mxu0 %v4437_v8 }
 0x5ca   : > { %v1528_v44 = vpop.permute.xlu1 %1527 }
 0x5cb   : > { %v1533_v47 = vsel %vm1182_vm3, %v1528_v44, 0 }
 0x5d0   : > { %v3861_v42 = vpop.eup %3860 }
 0x5d1   : > { %v1407_v43 = vmul.f32 %v3861_v42, %v3855_v23  ;;  %v3863_v46 = vpop.eup %3862 }
 0x5d2   : > { %v1525_v48 = vmul.f32 %v3863_v46, %v3853_v17 }
 0x5d3   : > { %v1408_v45 = vpack.c.bf16 %v1407_v43, %v1407_v43 }
 0x5d4   : > { %v1526_v49 = vpack.c.bf16 %v1525_v48, %v1525_v48 }
 0x5d5   : > { %3462 = vmatmul.mubr.msk.bf16.vlgmr.msra.gmra.mxu0 %vm1110_vm2, %v1408_v45 }
 0x5d6   : > { %3472 = vmatpush3.bf16.msra.mxu0 %v1533_v47  ;;  %3473 = vmatprep.mubr.msk.bf16.mxu0 %vm4438_vm1, %v4437_v8 }
 0x5d7   : > { %3485 = vmatprep.subr.bf16.mxu0 %v4437_v8 }
 0x5dd   : > { %3474 = vmatmul.mubr.msk.bf16.vlgmr.msra.gmra.mxu0 %vm1110_vm2, %v1526_v49 }
 0x5de   : > { %3489 = vmatprep.mubr.msk.bf16.mxu0 %vm4438_vm1, %v4437_v8  ;;  %3486 = vmatpush3.bf16.msra.mxu0 %v3824_v25 }
 0x5df   : > { %3487 = vmatprep.subr.bf16.mxu0 %v4437_v8 }
 0x660   : > { %v1220_v50 = vpop.f32.mrf.mxu0 }
 0x661   : > { %1226 = vst.msk [vmem:[#allocation2] sm:$0xff] %vm1110_vm2, %v1220_v50 }
 0x662   : > { %v3439_v51 = vpop.f32.mrf.mxu0 }
 0x664   : > { %v1223_v52 = vpop.f32.mrf.mxu0 }
 0x666   : > { %v3440_v53 = vpop.f32.mrf.mxu0 }
 0x66e   : > { %v1333_v54 = vpop.f32.mrf.mxu0 }
 0x66f   : > { %1340 = vrot.lane.b32.xlu0 %v1333_v54, %s5354_s15 }
 0x670   : > { %v3451_v55 = vpop.f32.mrf.mxu0 }
 0x672   : > { %v1336_v56 = vpop.f32.mrf.mxu0 }
 0x673   : > { %v3274_v56 = vld [vmem:[#allocation15] ss:$0 sm:$0xff] }
 0x674   : > { %v3452_v57 = vpop.f32.mrf.mxu0 }
 0x695   : > { %v1451_v60 = vpop.f32.mrf.mxu0 }
 0x696   : > { %1458 = vrot.lane.b32.xlu1 %v1451_v60, %s5353_s12  ;;  %s5429_s12 = smov 80  }
 0x697   : > { %v3463_v61 = vpop.f32.mrf.mxu0 }
 0x699   : > { %v1454_v62 = vpop.f32.mrf.mxu0 }
 0x69b   : > { %v3464_v63 = vpop.f32.mrf.mxu0 }
 0x69d   : > { %v1569_v0 = vpop.f32.mrf.mxu0 }
 0x69e   : > { %1576 = vrot.lane.b32.xlu0 %v1569_v0, %s5352_s18  ;;  %s5430_s18 = smov 112  }
 0x69f   : > { %v3475_v1 = vpop.f32.mrf.mxu0 }
 0x6a1   : > { %v1572_v2 = vpop.f32.mrf.mxu0 }
 0x6a3   : > { %v3476_v3 = vpop.f32.mrf.mxu0 }
 0x6e1   : > { %v1341_v4 = vpop.permute.xlu0 %1340 }
 0x6e2   : > { %1344 = vst.msk [vmem:[#allocation2] sm:$0xff] %vm1343_vm4, %v1341_v4 }
 0x708   : > { %v1459_v5 = vpop.permute.xlu1 %1458 }
 0x709   : > { %1462 = vst.msk [vmem:[#allocation2] sm:$0xff] %vm1461_vm5, %v1459_v5  ;;  %v3830_v5 = vld [vmem:[%s5425_s11 + $0x18] sm:$0xff]  }
 0x710   : > { %v1577_v6 = vpop.permute.xlu0 %1576 }
 0x711   : > { %1580 = vst.msk [vmem:[#allocation2] sm:$0xff] %vm1579_vm6, %v1577_v6  ;;  %v3831_v6 = vld [vmem:[%s5425_s11 + $0x10] sm:$0xff]  }
 0x718   : > { %v1581_v7 = vld [vmem:[#allocation2] sm:$0xff] }
 0x719   : > { %v1586_v9 = vpack.c.bf16 %v1581_v7, %v1581_v7 }
 0x71b   : > { %3482 = vmatmul.mubr.msk.bf16.vlgmr.msra.gmra.mxu1 %vm1010_vm0, %v1586_v9 }
 0x71c   : > { %3501 = vmatprep.mubr.msk.bf16.mxu1 %vm4438_vm1, %v4437_v8  ;;  %3494 = vmatpush3.bf16.msra.mxu1 %v3826_v35 }
 0x71d   : > { %3495 = vmatprep.subr.bf16.mxu1 %v4437_v8 }
 0x720   : > { %3496 = vmatpush3.bf16.msra.mxu1 %v3827_v36 }
 0x721   : > { %3497 = vmatprep.subr.bf16.mxu1 %v4437_v8 }
 0x724   : > { %3498 = vmatpush3.bf16.msra.mxu1 %v3828_v37 }
 0x725   : > { %3499 = vmatprep.subr.bf16.mxu1 %v4437_v8 }
 0x728   : > { %3500 = vmatpush3.bf16.msra.mxu1 %v3829_v38 }
 0x729   : > { %3519 = vmatprep.subr.bf16.mxu1 %v4437_v8 }
 0x7db   : > { %v1643_v11 = vpop.f32.mrf.mxu1 }
 0x7dc   : > { %v1644_v12 = vadd.f32 %v3264_v10, %v1643_v11 }
 0x7dd   : > { %v3483_v13 = vpop.f32.mrf.mxu1 }
 0x7de   : > { %v1649_v14 = vadd.f32 %v1644_v12, %v4917_v18  ;;  %v3825_v18 = vld [vmem:[%s5427_s7] sm:$0xff]  }
 0x7df   : > { %v1646_v15 = vpop.f32.mrf.mxu1  ;;  %3488 = vmatpush3.bf16.msra.mxu0 %v3825_v18  ;;  %v3280_v12 = vld [vmem:[#allocation17] ss:$0 sm:$0xff] }
 0x7e0   : > { %v1652_v16 = vsel %vm1010_vm0, %v1649_v14, 0.0  ;;  %3505 = vmatprep.subr.bf16.mxu0 %v4437_v8 }
 0x7e1   : > { %1653 = vadd.xlane.f32.xlu1 %v1652_v16  ;;  %v3484_v17 = vpop.f32.mrf.mxu1 }
 0x86a   : > { %v1654_v19 = vpop.xlane.xlu1 %1653 }
 0x86b   : > { %v1655_v20 = vmul.f32 0.03125, %v1654_v19  ;;  %v3286_v19 = vld [vmem:[#allocation8 + $0x1] ss:$0 sm:$0xff] }
 0x86d   : > { %v1656_v21 = vsub.f32 %v1649_v14, %v1655_v20  ;;  %v3281_v14 = vld [vmem:[#allocation18] ss:$0 sm:$0xff] }
 0x86f   : > { %v1657_v22 = vmul.f32 %v1656_v21, %v1656_v21 }
 0x871   : > { %v1658_v23 = vsel %vm1010_vm0, %v1657_v22, 0.0 }
 0x872   : > { %1659 = vadd.xlane.f32.xlu0 %v1658_v23 }
 0x8fb   : > { %v1660_v26 = vpop.xlane.xlu0 %1659 }
 0x8fc   : > { %v1661_v27 = vmul.f32 0.03125, %v1660_v26 }
 0x8fe   : > { %v1662_v28 = vadd.f32 1e-12, %v1661_v27 }
 0x900   : > { %3864 = vrsqrt.f32 %v1662_v28 }
 0x90d   : > { %v3865_v29 = vpop.eup %3864 }
 0x90e   : > { %v1664_v31 = vmul.f32 %v3865_v29, %v1656_v21 }
 0x910   : > { %v1671_v24 = vmul.f32 %v3268_v30, %v1664_v31 }
 0x912   : > { %v1678_v33 = vadd.f32 %v3269_v32, %v1671_v24 }
 0x914   : > { %v1683_v34 = vpack.c.bf16 %v1678_v33, %v1678_v33 }
 0x916   : > { %3490 = vmatmul.mubr.msk.bf16.vlgmr.msra.gmra.mxu0 %vm1010_vm0, %v1683_v34 }
 0x917   : > { %3509 = vmatprep.mubr.msk.bf16.mxu0 %vm4438_vm1, %v4437_v8  ;;  %3506 = vmatpush3.bf16.msra.mxu0 %v3830_v5 }
 0x918   : > { %3507 = vmatprep.subr.bf16.mxu0 %v4437_v8 }
 0x91b   : > { %3508 = vmatpush3.bf16.msra.mxu0 %v3831_v6 }
 0x91c   : > { %3513 = vmatprep.subr.bf16.mxu0 %v4437_v8 }
 0x9d6   : > { %v1740_v41 = vpop.f32.mrf.mxu0 }
 0x9d7   : > { %v1741_v42 = vadd.f32 %v3270_v40, %v1740_v41 }
 0x9d8   : > { %v3491_v43 = vpop.f32.mrf.mxu0 }
 0x9d9   : > { %v1747_v44 = vmul.f32 0.044715, %v1741_v42  ;;  %v1746_v52 = vmul.f32 0.5, %v1741_v42 }
 0x9da   : > { %v1743_v45 = vpop.f32.mrf.mxu0 }
 0x9db   : > { %v1748_v46 = vmul.f32 %v1747_v44, %v1741_v42 }
 0x9dc   : > { %v3492_v47 = vpop.f32.mrf.mxu0 }
 0x9dd   : > { %v1749_v48 = vmul.f32 %v1748_v46, %v1741_v42 }
 0x9df   : > { %v1750_v49 = vadd.f32 %v1749_v48, %v1741_v42 }
 0x9e1   : > { %v1751_v50 = vmul.f32 0.7978846, %v1750_v49 }
 0x9e3   : > { %3866 = vtanh.f32 %v1751_v50 }
 0x9f0   : > { %v3867_v51 = vpop.eup %3866 }
 0x9f1   : > { %v1753_v53 = vadd.f32 1.0, %v3867_v51 }
 0x9f3   : > { %v1754_v54 = vmul.f32 %v1753_v53, %v1746_v52 }
 0x9f5   : > { %v1763_v55 = vpack.c.bf16 %v1754_v54, %v1754_v54 }
 0x9f7   : > { %3502 = vmatmul.mubr.msk.bf16.vlgmr.msra.gmra.mxu1 %vm1795_vm7, %v1763_v55 }
 0x9f8   : > { %3521 = vmatprep.mubr.msk.bf16.mxu1 %vm4438_vm1, %v4437_v8 }
 0xab7   : > { %v1833_v57 = vpop.f32.mrf.mxu1 }
 0xab8   : > { %v1834_v58 = vadd.f32 %v3274_v56, %v1833_v57 }
 0xab9   : > { %v3503_v59 = vpop.f32.mrf.mxu1 }
 0xaba   : > { %v1839_v60 = vadd.f32 %v1834_v58, %v1678_v33 }
 0xabb   : > { %v1836_v61 = vpop.f32.mrf.mxu1 }
 0xabc   : > { %v1842_v62 = vsel %vm1010_vm0, %v1839_v60, 0.0 }
 0xabd   : > { %1843 = vadd.xlane.f32.xlu0 %v1842_v62  ;;  %v3504_v63 = vpop.f32.mrf.mxu1 }
 0xb46   : > { %v1844_v0 = vpop.xlane.xlu0 %1843 }
 0xb47   : > { %v1845_v1 = vmul.f32 0.03125, %v1844_v0 }
 0xb49   : > { %v1846_v2 = vsub.f32 %v1839_v60, %v1845_v1 }
 0xb4b   : > { %v1847_v3 = vmul.f32 %v1846_v2, %v1846_v2 }
 0xb4d   : > { %v1848_v4 = vsel %vm1010_vm0, %v1847_v3, 0.0 }
 0xb4e   : > { %1849 = vadd.xlane.f32.xlu1 %v1848_v4 }
 0xbd7   : > { %v1850_v7 = vpop.xlane.xlu1 %1849 }
 0xbd8   : > { %v1851_v9 = vmul.f32 0.03125, %v1850_v7 }
 0xbda   : > { %v1852_v10 = vadd.f32 1e-12, %v1851_v9 }
 0xbdc   : > { %3868 = vrsqrt.f32 %v1852_v10 }
 0xbe9   : > { %v3869_v11 = vpop.eup %3868 }
 0xbea   : > { %v1854_v13 = vmul.f32 %v3869_v11, %v1846_v2 }
 0xbec   : > { %v1861_v15 = vmul.f32 %v3280_v12, %v1854_v13 }
 0xbee   : > { %v5066_v16 = vadd.f32 %v3281_v14, %v1861_v15 }
 0xbf0   : > { %v1874_v17 = vpack.c.bf16 %v5066_v16, %v5066_v16 }
 0xbf2   : > { %3510 = vmatmul.mubr.msk.bf16.vlgmr.msra.gmra.mxu0 %vm1010_vm0, %v1874_v17 }
 0xbf3   : > { %3515 = vmatprep.mubr.msk.bf16.mxu0 %vm4438_vm1, %v4437_v8 }
 0xcb2   : > { %v1932_v20 = vpop.f32.mrf.mxu0 }
 0xcb3   : > { %v1933_v21 = vadd.f32 %v3286_v19, %v1932_v20 }
 0xcb4   : > { %v3511_v22 = vpop.f32.mrf.mxu0 }
 0xcb5   : > { %v5073_v23 = vpack.c.bf16 %v1933_v21, %v1933_v21 }
 0xcb6   : > { %v1935_v25 = vpop.f32.mrf.mxu0 }
 0xcb7   : > { %2053 = vrot.lane.b32.xlu1 %v5073_v23, %s4441_s13  ;;  %1940 = vrot.lane.b32.xlu0 %v5073_v23, %s4440_s5  ;;  %s5434_s5 = smov 56   ;;  %s5435_s13 = smov 48  }
 0xcb8   : > { %v3512_v18 = vpop.f32.mrf.mxu0 }
 0xcbb   : > { %2051 = vrot.lane.b32.xlu1 %v5073_v23, %s4439_s25  ;;  %2170 = vrot.lane.b32.xlu0 %v5073_v23, %s5429_s12  ;;  %s5433_s25 = smov 64   ;;  %s1004_s12 = scalar_lea.vmem [#allocation28], %s4859_s14 }
 0xcbf   : > { %2168 = vrot.lane.b32.xlu1 %v5073_v23, %s5430_s18  ;;  %2287 = vrot.lane.b32.xlu0 %v5073_v23, %s5431_s1  ;;  %s5438_s1 = smov 16   ;;  %s5441_s18 = sld [smem:[#allocation63_spill]] }
 0xcc3   : > { %2285 = vrot.lane.b32.xlu1 %v5073_v23, %s5432_s17  ;;  %s5439_s17 = smov 24  }
 0xd29   : > { %v1941_v26 = vpop.permute.xlu0 %1940  ;;  %v2054_v28 = vpop.permute.xlu1 %2053 }
 0xd2a   : > { %v1946_v27 = vsel %vm1110_vm2, %v1941_v26, 0  ;;  %v2059_v29 = vsel %vm1110_vm2, %v2054_v28, 0 }
 0xd2b   : > { %3514 = vmatpush3.bf16.xpose.msra.mxu0 %v1946_v27 }
 0xd2c   : > { %3525 = vmatprep.subr.bf16.mxu0 %v4437_v8 }
 0xd2d   : > { %v2171_v30 = vpop.permute.xlu0 %2170  ;;  %v2052_v31 = vpop.permute.xlu1 %2051 }
 0xd2e   : > { %v2176_v32 = vsel %vm1110_vm2, %v2171_v30, 0 }
 0xd31   : > { %v2288_v24 = vpop.permute.xlu0 %2287  ;;  %v2169_v33 = vpop.permute.xlu1 %2168 }
 0xd32   : > { %3516 = vmatmul.mubr.msk.bf16.vlgmr.msra.gmra.mxu0 %vm1110_vm2, %v5073_v23  ;;  %v2293_v34 = vsel %vm1110_vm2, %v2288_v24, 0 }
 0xd33   : > { %3526 = vmatpush3.bf16.xpose.msra.mxu0 %v2059_v29  ;;  %3527 = vmatprep.mubr.msk.bf16.mxu0 %vm4438_vm1, %v4437_v8 }
 0xd34   : > { %3537 = vmatprep.subr.bf16.mxu0 %v4437_v8 }
 0xd35   : > { %v2286_v35 = vpop.permute.xlu1 %2285 }
 0xd3a   : > { %3528 = vmatmul.mubr.msk.bf16.vlgmr.msra.gmra.mxu0 %vm1110_vm2, %v2052_v31 }
 0xd3b   : > { %3538 = vmatpush3.bf16.xpose.msra.mxu0 %v2176_v32  ;;  %3539 = vmatprep.mubr.msk.bf16.mxu0 %vm4438_vm1, %v4437_v8 }
 0xd3c   : > { %3549 = vmatprep.subr.bf16.mxu0 %v4437_v8 }
 0xd42   : > { %3540 = vmatmul.mubr.msk.bf16.vlgmr.msra.gmra.mxu0 %vm1110_vm2, %v2169_v33 }
 0xd43   : > { %3550 = vmatpush3.bf16.xpose.msra.mxu0 %v2293_v34  ;;  %3551 = vmatprep.mubr.msk.bf16.mxu0 %vm4438_vm1, %v4437_v8 }
 0xd44   : > { %3561 = vmatprep.subr.bf16.mxu0 %v4437_v8 }
 0xd4a   : > { %3552 = vmatmul.mubr.msk.bf16.vlgmr.msra.gmra.mxu0 %vm1110_vm2, %v2286_v35 }
 0xd4b   : > { %3565 = vmatprep.mubr.msk.bf16.mxu0 %vm4438_vm1, %v4437_v8 }
 0xdf2   : > { %v1982_v36 = vpop.f32.mrf.mxu0 }
 0xdf3   : > { %v1988_v37 = vmul.f32 0.35355338, %v1982_v36 }
 0xdf4   : > { %v3517_v38 = vpop.f32.mrf.mxu0 }
 0xdf5   : > { %v1989_v40 = vadd.f32 %v4963_v39, %v1988_v37 }
 0xdf6   : > { %v1985_v41 = vpop.f32.mrf.mxu0 }
 0xdf7   : > { %v1990_v42 = vsel %vm1110_vm2, %v1989_v40, -inf }
 0xdf8   : > { %1991 = vmax.xlane.f32.xlu0 %v1990_v42  ;;  %v3518_v43 = vpop.f32.mrf.mxu0 }
 0xdfa   : > { %v2095_v44 = vpop.f32.mrf.mxu0 }
 0xdfb   : > { %v2101_v45 = vmul.f32 0.35355338, %v2095_v44 }
 0xdfc   : > { %v3529_v46 = vpop.f32.mrf.mxu0 }
 0xdfd   : > { %v2102_v47 = vadd.f32 %v4963_v39, %v2101_v45 }
 0xdfe   : > { %v2098_v48 = vpop.f32.mrf.mxu0 }
 0xdff   : > { %v2103_v49 = vsel %vm1110_vm2, %v2102_v47, -inf }
 0xe00   : > { %2104 = vmax.xlane.f32.xlu1 %v2103_v49  ;;  %v3530_v50 = vpop.f32.mrf.mxu0 }
 0xe02   : > { %v2212_v51 = vpop.f32.mrf.mxu0 }
 0xe03   : > { %v2218_v52 = vmul.f32 0.35355338, %v2212_v51 }
 0xe04   : > { %v3541_v53 = vpop.f32.mrf.mxu0 }
 0xe05   : > { %v2219_v54 = vadd.f32 %v4963_v39, %v2218_v52 }
 0xe06   : > { %v2215_v55 = vpop.f32.mrf.mxu0 }
 0xe07   : > { %v2220_v56 = vsel %vm1110_vm2, %v2219_v54, -inf  ;;  %v3832_v55 = vld [vmem:[%s5426_s9 + $0x18] sm:$0xff]  }
 0xe08   : > { %2221 = vmax.xlane.f32.xlu0 %v2220_v56  ;;  %v3542_v57 = vpop.f32.mrf.mxu0  ;;  %3562 = vmatpush3.bf16.msra.mxu0 %v3832_v55  ;;  %v3833_v56 = vld [vmem:[%s5426_s9 + $0x10] sm:$0xff]  }
 0xe09   : > { %3563 = vmatprep.subr.bf16.mxu0 %v4437_v8 }
 0xe0a   : > { %v2329_v58 = vpop.f32.mrf.mxu0 }
 0xe0b   : > { %v2335_v59 = vmul.f32 0.35355338, %v2329_v58 }
 0xe0c   : > { %v3553_v60 = vpop.f32.mrf.mxu0  ;;  %3564 = vmatpush3.bf16.msra.mxu0 %v3833_v56 }
 0xe0d   : > { %v2336_v61 = vadd.f32 %v4963_v39, %v2335_v59  ;;  %3577 = vmatprep.subr.bf16.mxu0 %v4437_v8 }
 0xe0e   : > { %v2332_v62 = vpop.f32.mrf.mxu0 }
 0xe0f   : > { %v2337_v63 = vsel %vm1110_vm2, %v2336_v61, -inf }
 0xe10   : > { %2338 = vmax.xlane.f32.xlu0 %v2337_v63  ;;  %v3554_v0 = vpop.f32.mrf.mxu0 }
 0xe81   : > { %v1992_v1 = vpop.xlane.xlu0 %1991 }
 0xe82   : > { %v1993_v2 = vsub.f32 %v1989_v40, %v1992_v1 }
 0xe84   : > { %v1994_v3 = vmul.f32 1.442695, %v1993_v2 }
 0xe86   : > { %3870 = vpow2.f32 %v1994_v3 }
 0xe89   : > { %v2105_v4 = vpop.xlane.xlu1 %2104 }
 0xe8a   : > { %v2106_v5 = vsub.f32 %v2102_v47, %v2105_v4 }
 0xe8c   : > { %v2107_v6 = vmul.f32 1.442695, %v2106_v5 }
 0xe8e   : > { %3872 = vpow2.f32 %v2107_v6  ;;  %v3302_v6 = vld [vmem:[#allocation9 + $0x1] ss:$0 sm:$0xff] }
 0xe91   : > { %v2222_v10 = vpop.xlane.xlu0 %2221 }
 0xe92   : > { %v2223_v19 = vsub.f32 %v2219_v54, %v2222_v10 }
 0xe93   : > { %v3871_v7 = vpop.eup %3870 }
 0xe94   : > { %v1996_v9 = vsel %vm1110_vm2, %v3871_v7, 0.0  ;;  %v2224_v20 = vmul.f32 1.442695, %v2223_v19 }
 0xe95   : > { %1997 = vadd.xlane.f32.xlu1 %v1996_v9 }
 0xe99   : > { %v2339_v11 = vpop.xlane.xlu0 %2338 }
 0xe9a   : > { %v2340_v39 = vsub.f32 %v2336_v61, %v2339_v11 }
 0xe9b   : > { %v3873_v12 = vpop.eup %3872 }
 0xe9c   : > { %v2341_v13 = vmul.f32 1.442695, %v2340_v39  ;;  %v2109_v14 = vsel %vm1110_vm2, %v3873_v12, 0.0 }
 0xe9d   : > { %2110 = vadd.xlane.f32.xlu0 %v2109_v14 }
 0xe9e   : > { %3874 = vpow2.f32 %v2341_v13 }
 0xe9f   : > { %3876 = vpow2.f32 %v2224_v20 }
 0xea6   : > { %2002 = vrot.lane.b32.xlu1 %v5073_v23, %s5433_s25  ;;  %s2942_s25 = scalar_lea.sflag [#allocation29], %s4856_s22 }
 0xeab   : > { %v3875_v15 = vpop.eup %3874 }
 0xeac   : > { %v2343_v17 = vsel %vm1110_vm2, %v3875_v15, 0.0  ;;  %v3877_v21 = vpop.eup %3876 }
 0xead   : > { %2344 = vadd.xlane.f32.xlu0 %v2343_v17  ;;  %v2226_v22 = vsel %vm1110_vm2, %v3877_v21, 0.0 }
 0xec3   : > { %2115 = vrot.lane.b32.xlu0 %v5073_v23, %s5434_s5  ;;  %s4453_s5 = smov [#allocation28]  }
 0xeca   : > { %2227 = vadd.xlane.f32.xlu1 %v2226_v22 }
 0xedb   : > { %2232 = vrot.lane.b32.xlu1 %v5073_v23, %s5435_s13  ;;  %s4294_s13 = sshll.u32 %s4453_s5, 4  ;;  %s4295_s13 = int_to_ptr.vmem [resolvable:$false] %s4294_s13 }
 0xedf   : > { %2349 = vrot.lane.b32.xlu1 %v5073_v23, %s5436_s8  ;;  %s5440_s8 = sld [smem:[#allocation59_spill]] }
 0xf1e   : > { %v1998_v25 = vpop.xlane.xlu1 %1997 }
 0xf1f   : > { %3878 = vrcp.f32 %v1998_v25 }
 0xf22   : > { %v2003_v18 = vpop.permute.xlu1 %2002 }
 0xf23   : > { %v2008_v26 = vsel %vm1182_vm3, %v2003_v18, 0 }
 0xf24   : > { %3520 = vmatpush3.bf16.msra.mxu1 %v2008_v26 }
 0xf25   : > { %3531 = vmatprep.subr.bf16.mxu1 %v4437_v8 }
 0xf26   : > { %v2111_v27 = vpop.xlane.xlu0 %2110 }
 0xf27   : > { %3880 = vrcp.f32 %v2111_v27  ;;  %v3306_v27 = vld [vmem:[#allocation11 + $0x1] ss:$0 sm:$0xff] }
 0xf2c   : > { %v3879_v28 = vpop.eup %3878 }
 0xf2d   : > { %v2000_v29 = vmul.f32 %v3879_v28, %v3871_v7 }
 0xf2f   : > { %v2001_v30 = vpack.c.bf16 %v2000_v29, %v2000_v29  ;;  %v3307_v29 = vld [vmem:[#allocation12 + $0x1] ss:$0 sm:$0xff] }
 0xf31   : > { %3522 = vmatmul.mubr.msk.bf16.vlgmr.msra.gmra.mxu1 %vm1110_vm2, %v2001_v30 }
 0xf32   : > { %3533 = vmatprep.mubr.msk.bf16.mxu1 %vm4438_vm1, %v4437_v8 }
 0xf34   : > { %v3881_v31 = vpop.eup %3880 }
 0xf35   : > { %v2113_v32 = vmul.f32 %v3881_v31, %v3873_v12 }
 0xf36   : > { %v2345_v23 = vpop.xlane.xlu0 %2344 }
 0xf37   : > { %v2114_v34 = vpack.c.bf16 %v2113_v32, %v2113_v32  ;;  %v3836_v32 = vld [vmem:[%s5428_s10 + $0x38] sm:$0xff]  }
 0xf3a   : > { %v2116_v24 = vpop.permute.xlu0 %2115 }
 0xf3b   : > { %v2121_v33 = vsel %vm1182_vm3, %v2116_v24, 0  ;;  %v3837_v24 = vld [vmem:[%s5428_s10 + $0x30] sm:$0xff]  }
 0xf3c   : > { %3532 = vmatpush3.bf16.msra.mxu1 %v2121_v33  ;;  %v3838_v33 = vld [vmem:[%s5428_s10 + $0x28] sm:$0xff]  }
 0xf3d   : > { %3543 = vmatprep.subr.bf16.mxu1 %v4437_v8 }
 0xf3f   : > { %3534 = vmatmul.mubr.msk.bf16.vlgmr.msra.gmra.mxu1 %vm1110_vm2, %v2114_v34  ;;  %v3839_v34 = vld [vmem:[%s5428_s10 + $0x20] sm:$0xff]  }
 0xf40   : > { %3545 = vmatprep.mubr.msk.bf16.mxu1 %vm4438_vm1, %v4437_v8 }
 0xf53   : > { %v2228_v35 = vpop.xlane.xlu1 %2227 }
 0xf54   : > { %3882 = vrcp.f32 %v2228_v35  ;;  %v3312_v35 = vld [vmem:[#allocation14 + $0x1] ss:$0 sm:$0xff] }
 0xf55   : > { %3884 = vrcp.f32 %v2345_v23 }
 0xf57   : > { %v2233_v36 = vpop.permute.xlu1 %2232 }
 0xf58   : > { %v2238_v37 = vsel %vm1182_vm3, %v2233_v36, 0 }
 0xf59   : > { %3544 = vmatpush3.bf16.msra.mxu1 %v2238_v37 }
 0xf5a   : > { %3555 = vmatprep.subr.bf16.mxu1 %v4437_v8 }
 0xf5b   : > { %v2350_v41 = vpop.permute.xlu1 %2349 }
 0xf5c   : > { %v2355_v44 = vsel %vm1182_vm3, %v2350_v41, 0 }
 0xf61   : > { %v3883_v38 = vpop.eup %3882 }
 0xf62   : > { %v2230_v40 = vmul.f32 %v3883_v38, %v3877_v21  ;;  %v3885_v43 = vpop.eup %3884  ;;  %v3834_v21 = vld [vmem:[%s5427_s7 + $0x18] sm:$0xff]  }
 0xf63   : > { %v2347_v45 = vmul.f32 %v3885_v43, %v3875_v15 }
 0xf64   : > { %v2231_v42 = vpack.c.bf16 %v2230_v40, %v2230_v40 }
 0xf65   : > { %v2348_v46 = vpack.c.bf16 %v2347_v45, %v2347_v45 }
 0xf66   : > { %3546 = vmatmul.mubr.msk.bf16.vlgmr.msra.gmra.mxu1 %vm1110_vm2, %v2231_v42 }
 0xf67   : > { %3556 = vmatpush3.bf16.msra.mxu1 %v2355_v44  ;;  %3557 = vmatprep.mubr.msk.bf16.mxu1 %vm4438_vm1, %v4437_v8 }
 0xf68   : > { %3569 = vmatprep.subr.bf16.mxu1 %v4437_v8 }
 0xf6e   : > { %3558 = vmatmul.mubr.msk.bf16.vlgmr.msra.gmra.mxu1 %vm1110_vm2, %v2348_v46 }
 0xf6f   : > { %3573 = vmatprep.mubr.msk.bf16.mxu1 %vm4438_vm1, %v4437_v8  ;;  %3570 = vmatpush3.bf16.msra.mxu1 %v3834_v21 }
 0xf70   : > { %3571 = vmatprep.subr.bf16.mxu1 %v4437_v8 }
 0xff1   : > { %v2044_v47 = vpop.f32.mrf.mxu1 }
 0xff2   : > { %2050 = vst.msk [vmem:[#allocation2] sm:$0xff] %vm1110_vm2, %v2044_v47 }
 0xff3   : > { %v3523_v48 = vpop.f32.mrf.mxu1 }
 0xff5   : > { %v2047_v49 = vpop.f32.mrf.mxu1 }
 0xff7   : > { %v3524_v50 = vpop.f32.mrf.mxu1 }
 0xfff   : > { %v2157_v51 = vpop.f32.mrf.mxu1 }
0x1000   : > { %2164 = vrot.lane.b32.xlu0 %v2157_v51, %s5437_s28  ;;  %s5359_s28 = sshll.u32 %s4606_s26, 7 }
0x1001   : > { %v3535_v52 = vpop.f32.mrf.mxu1 }
0x1002   : > { %v3324_v52 = vld [vmem:[#allocation15 + $0x1] ss:$0 sm:$0xff] }
0x1003   : > { %v2160_v53 = vpop.f32.mrf.mxu1 }
0x1005   : > { %v3536_v54 = vpop.f32.mrf.mxu1 }
0x1026   : > { %v2274_v57 = vpop.f32.mrf.mxu1 }
0x1027   : > { %2281 = vrot.lane.b32.xlu1 %v2274_v57, %s5438_s1  ;;  %s2966_s1 = scalar_lea.hbm %s5441_s18, %s5359_s28 }
0x1028   : > { %v3547_v58 = vpop.f32.mrf.mxu1 }
0x102a   : > { %v2277_v59 = vpop.f32.mrf.mxu1 }
0x102c   : > { %v3548_v60 = vpop.f32.mrf.mxu1 }
0x102e   : > { %v2391_v61 = vpop.f32.mrf.mxu1 }
0x102f   : > { %2398 = vrot.lane.b32.xlu0 %v2391_v61, %s5439_s17  ;;  %s2968_s17 = sshll.u32 %s1004_s12, 4  ;;  %s2969_s17 = int_to_ptr.vmem [resolvable:$true] %s2968_s17 }
0x1030   : > { %v3559_v62 = vpop.f32.mrf.mxu1  ;;  %p4297_p9 = scmp.lt.s32.totalorder %s2969_s17, %s4295_s13 }
0x1032   : > { %v2394_v63 = vpop.f32.mrf.mxu1 }
0x1034   : > { %v3560_v0 = vpop.f32.mrf.mxu1 }
0x1072   : > { %v2165_v1 = vpop.permute.xlu0 %2164 }
0x1073   : > { %2167 = vst.msk [vmem:[#allocation2] sm:$0xff] %vm1343_vm4, %v2165_v1  ;;  %v3840_v1 = vld [vmem:[%s5324_s16 + $0x8] sm:$0xff]  }
0x1099   : > { %v2282_v2 = vpop.permute.xlu1 %2281 }
0x109a   : > { %2284 = vst.msk [vmem:[#allocation2] sm:$0xff] %vm1461_vm5, %v2282_v2  ;;  %v3841_v2 = vld [vmem:[#allocation26 + $0x8] sm:$0xff]  }
0x10a1   : > { %v2399_v3 = vpop.permute.xlu0 %2398 }
0x10a2   : > { %2401 = vst.msk [vmem:[#allocation2] sm:$0xff] %vm1579_vm6, %v2399_v3  ;;  %v3842_v3 = vld [vmem:[%s5324_s16] sm:$0xff]  }
0x10a9   : > { %v2402_v4 = vld [vmem:[#allocation2] sm:$0xff] }
0x10aa   : > { %v2408_v5 = vpack.c.bf16 %v2402_v4, %v2402_v4  ;;  %v3843_v4 = vld [vmem:[#allocation26] sm:$0xff]  }
0x10ac   : > { %3566 = vmatmul.mubr.msk.bf16.vlgmr.msra.gmra.mxu0 %vm1010_vm0, %v2408_v5 }
0x10ad   : > { %3585 = vmatprep.mubr.msk.bf16.mxu0 %vm4438_vm1, %v4437_v8  ;;  %3578 = vmatpush3.bf16.msra.mxu0 %v3836_v32 }
0x10ae   : > { %3579 = vmatprep.subr.bf16.mxu0 %v4437_v8 }
0x10b1   : > { %3580 = vmatpush3.bf16.msra.mxu0 %v3837_v24 }
0x10b2   : > { %3581 = vmatprep.subr.bf16.mxu0 %v4437_v8 }
0x10b5   : > { %3582 = vmatpush3.bf16.msra.mxu0 %v3838_v33 }
0x10b6   : > { %3583 = vmatprep.subr.bf16.mxu0 %v4437_v8 }
0x10b9   : > { %3584 = vmatpush3.bf16.msra.mxu0 %v3839_v34 }
0x10ba   : > { %3605 = vmatprep.subr.bf16.mxu0 %v4437_v8 }
0x116c   : > { %v2466_v7 = vpop.f32.mrf.mxu0 }
0x116d   : > { %v2467_v9 = vadd.f32 %v3302_v6, %v2466_v7 }
0x116e   : > { %v3567_v10 = vpop.f32.mrf.mxu0 }
0x116f   : > { %v2472_v11 = vadd.f32 %v2467_v9, %v5066_v16  ;;  %v3835_v16 = vld [vmem:[%s5427_s7 + $0x10] sm:$0xff]   ;;  %v3330_v10 = vld [vmem:[#allocation17 + $0x1] ss:$0 sm:$0xff]  ;;  %s4290_s7 = scalar_lea.vmem %s2969_s17, 128 }
0x1170   : > { %v2469_v39 = vpop.f32.mrf.mxu0  ;;  %3572 = vmatpush3.bf16.msra.mxu1 %v3835_v16  ;;  %p4291_p13 = scmp.ne.s32.totalorder %s2969_s17, %s4290_s7 }
0x1171   : > { %v2477_v12 = vsel %vm1010_vm0, %v2472_v11, 0.0  ;;  %3589 = vmatprep.subr.bf16.mxu1 %v4437_v8  ;;  %v3331_v39 = vld [vmem:[#allocation18 + $0x1] ss:$0 sm:$0xff] }
0x1172   : > { %2478 = vadd.xlane.f32.xlu1 %v2477_v12  ;;  %v3568_v13 = vpop.f32.mrf.mxu0  ;;  %p4292_p8 = pnand %p4291_p13, %p5442_p5 }
0x1174   : > { %p4293_p10 = pneg %p4292_p8 }
0x11fb   : > { %v2479_v14 = vpop.xlane.xlu1 %2478 }
0x11fc   : > { %v2480_v15 = vmul.f32 0.03125, %v2479_v14 }
0x11fe   : > { %v2481_v17 = vsub.f32 %v2472_v11, %v2480_v15  ;;  %v3332_v15 = vld [vmem:[#allocation23] ss:$0 sm:$0xff] }
0x1200   : > { %v2482_v19 = vmul.f32 %v2481_v17, %v2481_v17 }
0x1202   : > { %v2483_v20 = vsel %vm1010_vm0, %v2482_v19, 0.0 }
0x1203   : > { %2484 = vadd.xlane.f32.xlu0 %v2483_v20 }
0x128c   : > { %v2485_v22 = vpop.xlane.xlu0 %2484 }
0x128d   : > { %v2486_v25 = vmul.f32 0.03125, %v2485_v22 }
0x128f   : > { %v2487_v18 = vadd.f32 1e-12, %v2486_v25 }
0x1291   : > { %3886 = vrsqrt.f32 %v2487_v18 }
0x129e   : > { %v3887_v26 = vpop.eup %3886 }
0x129f   : > { %v2489_v28 = vmul.f32 %v3887_v26, %v2481_v17  ;;  %v3342_v17 = vld [vmem:[%s5331_s23] ss:$0 sm:$0xff] }
0x12a1   : > { %v2496_v30 = vmul.f32 %v3306_v27, %v2489_v28 }
0x12a3   : > { %v2503_v31 = vadd.f32 %v3307_v29, %v2496_v30 }
0x12a5   : > { %v2509_v23 = vpack.c.bf16 %v2503_v31, %v2503_v31 }
0x12a7   : > { %3574 = vmatmul.mubr.msk.bf16.vlgmr.msra.gmra.mxu1 %vm1010_vm0, %v2509_v23 }
0x12a8   : > { %3593 = vmatprep.mubr.msk.bf16.mxu1 %vm4438_vm1, %v4437_v8  ;;  %3590 = vmatpush3.bf16.msra.mxu1 %v3840_v1 }
0x12a9   : > { %3591 = vmatprep.subr.bf16.mxu1 %v4437_v8 }
0x12ac   : > { %3592 = vmatpush3.bf16.msra.mxu1 %v3842_v3 }
0x12ad   : > { %3597 = vmatprep.subr.bf16.mxu1 %v4437_v8 }
0x1367   : > { %v2567_v36 = vpop.f32.mrf.mxu1 }
0x1368   : > { %v2568_v37 = vadd.f32 %v3312_v35, %v2567_v36 }
0x1369   : > { %v3575_v38 = vpop.f32.mrf.mxu1 }
0x136a   : > { %v2574_v40 = vmul.f32 0.044715, %v2568_v37  ;;  %v2573_v48 = vmul.f32 0.5, %v2568_v37 }
0x136b   : > { %v2570_v41 = vpop.f32.mrf.mxu1 }
0x136c   : > { %v2575_v42 = vmul.f32 %v2574_v40, %v2568_v37 }
0x136d   : > { %v3576_v43 = vpop.f32.mrf.mxu1 }
0x136e   : > { %v2576_v44 = vmul.f32 %v2575_v42, %v2568_v37  ;;  %v3844_v43 = vld [vmem:[%s5328_s20 + $0x8] sm:$0xff]  }
0x1370   : > { %v2577_v45 = vadd.f32 %v2576_v44, %v2568_v37  ;;  %v3845_v44 = vld [vmem:[%s5328_s20] sm:$0xff]  }
0x1372   : > { %v2578_v46 = vmul.f32 0.7978846, %v2577_v45 }
0x1374   : > { %3888 = vtanh.f32 %v2578_v46 }
0x1381   : > { %v3889_v47 = vpop.eup %3888 }
0x1382   : > { %v2580_v49 = vadd.f32 1.0, %v3889_v47 }
0x1384   : > { %v2581_v50 = vmul.f32 %v2580_v49, %v2573_v48  ;;  %v3336_v49 = vld [vmem:[#allocation24] ss:$0 sm:$0xff] }
0x1386   : > { %v2591_v51 = vpack.c.bf16 %v2581_v50, %v2581_v50 }
0x1388   : > { %3586 = vmatmul.mubr.msk.bf16.vlgmr.msra.gmra.mxu0 %vm1795_vm7, %v2591_v51  ;;  %v3337_v51 = vld [vmem:[%s5440_s8] ss:$0 sm:$0xff]  ;;  %s4296_s8 = scalar_lea.vmem %s4295_s13, 256 }
0x1389   : > { %3609 = vmatprep.mubr.msk.bf16.mxu0 %vm4438_vm1, %v4437_v8  ;;  %3606 = vmatpush3.bf16.msra.mxu0 %v3841_v2  ;;  %p4298_p11 = scmp.lt.s32.totalorder %s4296_s8, %s4290_s7 }
0x138a   : > { %3607 = vmatprep.subr.bf16.mxu0 %v4437_v8 }
0x138b   : > { %p4299_p4 = por %p4298_p11, %p4297_p9 }
0x138d   : > { %3608 = vmatpush3.bf16.msra.mxu0 %v3843_v4  ;;  %p4300_p1 = pnand %p4299_p4, %p4293_p10 }
0x1448   : > { %v2661_v53 = vpop.f32.mrf.mxu0 }
0x1449   : > { %v2662_v54 = vadd.f32 %v3324_v52, %v2661_v53 }
0x144a   : > { %v3587_v55 = vpop.f32.mrf.mxu0 }
0x144b   : > { %v2667_v56 = vadd.f32 %v2662_v54, %v2503_v31 }
0x144c   : > { %v2664_v57 = vpop.f32.mrf.mxu0 }
0x144d   : > { %v2672_v58 = vsel %vm1010_vm0, %v2667_v56, 0.0 }
0x144e   : > { %2673 = vadd.xlane.f32.xlu0 %v2672_v58  ;;  %v3588_v59 = vpop.f32.mrf.mxu0 }
0x14d7   : > { %v2674_v60 = vpop.xlane.xlu0 %2673 }
0x14d8   : > { %v2675_v61 = vmul.f32 0.03125, %v2674_v60 }
0x14da   : > { %v2676_v62 = vsub.f32 %v2667_v56, %v2675_v61 }
0x14dc   : > { %v2677_v63 = vmul.f32 %v2676_v62, %v2676_v62 }
0x14de   : > { %v2678_v0 = vsel %vm1010_vm0, %v2677_v63, 0.0 }
0x14df   : > { %2679 = vadd.xlane.f32.xlu1 %v2678_v0 }
0x1568   : > { %v2680_v5 = vpop.xlane.xlu1 %2679 }
0x1569   : > { %v2681_v6 = vmul.f32 0.03125, %v2680_v5 }
0x156b   : > { %v2682_v7 = vadd.f32 1e-12, %v2681_v6 }
0x156d   : > { %3890 = vrsqrt.f32 %v2682_v7 }
0x157a   : > { %v3891_v9 = vpop.eup %3890 }
0x157b   : > { %v2684_v11 = vmul.f32 %v3891_v9, %v2676_v62 }
0x157d   : > { %v2691_v12 = vmul.f32 %v3330_v10, %v2684_v11 }
0x157f   : > { %v2698_v13 = vadd.f32 %v3331_v39, %v2691_v12 }
0x1581   : > { %v2703_v14 = vpack.c.bf16 %v2698_v13, %v2698_v13 }
0x1583   : > { %3594 = vmatmul.mubr.msk.bf16.vlgmr.msra.gmra.mxu1 %vm1010_vm0, %v2703_v14  ;;  %3610 = vmatmul.mubr.msk.bf16.vlgmr.msra.gmra.mxu0 %vm1010_vm0, %v2703_v14 }
0x1584   : > { %3601 = vmatprep.mubr.msk.bf16.mxu1 %vm4438_vm1, %v4437_v8  ;;  %3598 = vmatpush3.bf16.msra.mxu1 %v3844_v43 }
0x1585   : > { %3599 = vmatprep.subr.bf16.mxu1 %v4437_v8 }
0x1588   : > { %3600 = vmatpush3.bf16.msra.mxu1 %v3845_v44 }
0x1643   : > { %v2760_v19 = vpop.f32.mrf.mxu1  ;;  %v2929_v20 = vpop.f32.mrf.mxu0 }
0x1644   : > { %v2761_v21 = vadd.f32 %v3332_v15, %v2760_v19  ;;  %v2930_v16 = vadd.f32 %v3342_v17, %v2929_v20 }
0x1645   : > { %v3595_v22 = vpop.f32.mrf.mxu1  ;;  %v3611_v25 = vpop.f32.mrf.mxu0 }
0x1646   : > { %v2767_v18 = vmul.f32 0.044715, %v2761_v21  ;;  %2935 = vst [vmem:[%s1004_s12] sm:$0xff] %v2930_v16  ;;  %v2766_v33 = vmul.f32 0.5, %v2761_v21 }
0x1647   : > { %v2763_v26 = vpop.f32.mrf.mxu1  ;;  %v2932_v27 = vpop.f32.mrf.mxu0 }
0x1648   : > { %v2768_v28 = vmul.f32 %v2767_v18, %v2761_v21 }
0x1649   : > { %v3596_v29 = vpop.f32.mrf.mxu1  ;;  %v3612_v30 = vpop.f32.mrf.mxu0 }
0x164a   : > { %v2769_v31 = vmul.f32 %v2768_v28, %v2761_v21 }
0x164c   : > { %v2770_v23 = vadd.f32 %v2769_v31, %v2761_v21 }
0x164e   : > { %v2771_v32 = vmul.f32 0.7978846, %v2770_v23 }
0x1650   : > { %3892 = vtanh.f32 %v2771_v32 }
0x165d   : > { %v3893_v24 = vpop.eup %3892 }
0x165e   : > { %v2773_v34 = vadd.f32 1.0, %v3893_v24 }
0x1660   : > { %v2774_v35 = vmul.f32 %v2773_v34, %v2766_v33 }
0x1662   : > { %v2777_v36 = vsel %vm1010_vm0, %v2774_v35, 0.0 }
0x1663   : > { %2778 = vadd.xlane.f32.xlu0 %v2777_v36 }
0x16ec   : > { %v2779_v37 = vpop.xlane.xlu0 %2778 }
0x16ed   : > { %v2780_v38 = vmul.f32 0.03125, %v2779_v37 }
0x16ef   : > { %v2781_v40 = vsub.f32 %v2774_v35, %v2780_v38 }
0x16f1   : > { %v2782_v41 = vmul.f32 %v2781_v40, %v2781_v40 }
0x16f3   : > { %v2783_v42 = vsel %vm1010_vm0, %v2782_v41, 0.0 }
0x16f4   : > { %2784 = vadd.xlane.f32.xlu1 %v2783_v42 }
0x177d   : > { %v2785_v45 = vpop.xlane.xlu1 %2784 }
0x177e   : > { %v2786_v46 = vmul.f32 0.03125, %v2785_v45 }
0x1780   : > { %v2787_v47 = vadd.f32 1e-12, %v2786_v46 }
0x1782   : > { %3894 = vrsqrt.f32 %v2787_v47 }
0x178f   : > { %v3895_v48 = vpop.eup %3894 }
0x1790   : > { %v2789_v50 = vmul.f32 %v3895_v48, %v2781_v40 }
0x1792   : > { %v2796_v52 = vmul.f32 %v3336_v49, %v2789_v50 }
0x1794   : > { %v2803_v53 = vadd.f32 %v3337_v51, %v2796_v52 }
0x1796   : > { %v2808_v54 = vpack.c.bf16 %v2803_v53, %v2803_v53 }
0x1798   : > { %3602 = vmatmul.mubr.msk.bf16.vlgmr.msra.gmra.mxu1 %vm1010_vm0, %v2808_v54 }
0x1799   : > { %4303 = shalt.err (!%p4300_p1)
}
0x179a   : > { %s4304_s24 = scalar_lea.hbm %s2966_s1, 128  ;;  %s4308_s28 = scalar_lea.hbm %s5441_s18, 256 }
0x179b   : > { %p4305_p2 = scmp.ne.s32.totalorder %s2966_s1, %s4304_s24  ;;  %p4309_p6 = scmp.lt.s32.totalorder %s2966_s1, %s5441_s18 }
0x179c   : > { %p4310_p0 = scmp.lt.s32.totalorder %s4308_s28, %s4304_s24 }
0x179d   : > { %p4306_p7 = pnand %p4305_p2, %p5442_p5 }
0x179e   : > { %p4311_p3 = por %p4310_p0, %p4309_p6 }
0x179f   : > { %p4307_p12 = pneg %p4306_p7 }
0x17a1   : > { %p4312_p13 = pnand %p4311_p3, %p4307_p12 }
0x17a3   : > { %4315 = shalt.err (!%p4312_p13)
}
0x17a4   : > { %3670 = dma.vmem_to_hbm [thread:$0]  (%p5442_p5), %s2969_s17, 128, %s2966_s1, %s2942_s25  }
0x17a5   : > { %s5443_s13 = sld [smem:[#allocation60_spill]]  ;;  %s997_s8 = scalar_lea.vmem [#allocation27], %s4859_s14 }
0x17a6   : > { %s2955_s12 = sshll.u32 %s997_s8, 4  ;;  %s5444_s10 = sshll.u32 %s4606_s26, 7  ;;  %s5267_s12 = int_to_ptr.vmem [resolvable:$true] %s2955_s12 }
0x17a7   : > { %s5445_s24 = sld [smem:[#allocation62_spill]]  ;;  %s2937_s1 = scalar_lea.sflag [#allocation5], %s4856_s22 }
0x17a8   : > { %s4316_s17 = scalar_lea.vmem %s5267_s12, 128  ;;  %s4454_s26 = smov [#allocation27]  }
0x17a9   : > { %p4317_p8 = scmp.ne.s32.totalorder %s5267_s12, %s4316_s17  ;;  %s4320_s14 = sshll.u32 %s4454_s26, 4  ;;  %s4321_s14 = int_to_ptr.vmem [resolvable:$false] %s4320_s14 }
0x17aa   : > { %s4322_s25 = scalar_lea.vmem %s4321_s14, 256  ;;  %p4323_p11 = scmp.lt.s32.totalorder %s5267_s12, %s4321_s14 }
0x17ab   : > { %v3338_v8 = vld [vmem:[%s5443_s13] ss:$0 sm:$0xff]  ;;  %p4318_p10 = pnand %p4317_p8, %p5442_p5  ;;  %p4324_p4 = scmp.lt.s32.totalorder %s4322_s25, %s4316_s17 }
0x17ad   : > { %s5265_s15 = scalar_lea.hbm %s5445_s24, %s5444_s10  ;;  %p4319_p9 = pneg %p4318_p10 }
0x17ae   : > { %p4325_p1 = por %p4324_p4, %p4323_p11 }
0x17b0   : > { %p4326_p2 = pnand %p4325_p1, %p4319_p9 }
0x1858   : > { %v2865_v55 = vpop.f32.mrf.mxu1 }
0x1859   : > { %v2866_v56 = vadd.f32 %v3338_v8, %v2865_v55 }
0x185a   : > { %v3603_v57 = vpop.f32.mrf.mxu1 }
0x185b   : > { %2871 = vst [vmem:[%s997_s8] sm:$0xff] %v2866_v56 }
0x185c   : > { %v2868_v58 = vpop.f32.mrf.mxu1 }
0x185d   : > { %4329 = shalt.err (!%p4326_p2)
}
0x185e   : > { %s4330_s7 = scalar_lea.hbm %s5265_s15, 128  ;;  %s4334_s13 = scalar_lea.hbm %s5445_s24, 256 }
0x185f   : > { %p4331_p7 = scmp.ne.s32.totalorder %s5265_s15, %s4330_s7  ;;  %p4335_p0 = scmp.lt.s32.totalorder %s5265_s15, %s5445_s24 }
0x1860   : > { %p4336_p3 = scmp.lt.s32.totalorder %s4334_s13, %s4330_s7 }
0x1861   : > { %p4332_p12 = pnand %p4331_p7, %p5442_p5 }
0x1862   : > { %p4337_p13 = por %p4336_p3, %p4335_p0 }
0x1863   : > { %p4333_p6 = pneg %p4332_p12 }
0x1865   : > { %p4338_p8 = pnand %p4337_p13, %p4333_p6 }
0x1867   : > { %4341 = shalt.err (!%p4338_p8)
}
0x1868   : > { %3669 = dma.vmem_to_hbm [thread:$0]  (%p5442_p5), %s5267_s12, 128, %s5265_s15, %s2937_s1   ;;  %v3604_v59 = vpop.f32.mrf.mxu1 }
0x1869 PF: > { %s2980_s9 = sand.u32 1, %s4404_s29   ;;  %p5446_p10 = scmp.ne.s32.totalorder %s5404_s3, 0 }
0x186a   : > { %p5447_p9 = scmp.ge.s32.totalorder %s4416_s30, 2  ;;  %s2981_s28 = scalar_lea.sflag [#allocation5], %s2980_s9 }
0x186c   : > { %p3721_p11 = pnand %p5447_p9, %p5446_p10 }
0x186e   : > { %p3722_p4 = pneg %p3721_p11 }
0x1870   : > { %4395 = dma.done.wait (%p3722_p4), %s2981_s28, 128  }
0x1871   : > { %4397 = vsyncadd (%p3722_p4), %s2981_s28, 4294967168  ;;  %s2990_s17 = scalar_lea.sflag [#allocation29], %s2980_s9 }
0x1872   : > { %4399 = dma.done.wait (%p3722_p4), %s2990_s17, 128  }
0x1873   : > { %4401 = vsyncadd (%p3722_p4), %s2990_s17, 4294967168  ;;  %p51_p5 = scmp.ge.s32.totalorder %s4761_s0, 4   ;;  %s5448_s29 = smov %s4408_s2 }
0x1874   : > { %s5449_s2 = smov %s4412_s6  ;;  %s5450_s6 = smov %s4773_s4 }
0x1875   : > { %s5451_s30 = smov %s4761_s0  ;;  %53 = sbr.rel (!%p51_p5) target bundleno = 39 (0x27), region = 255 }
0x187a   :  { %2995 = vsyncpa [#allocation4], 1 }
0x187b   :  { %2997 = vsyncpa [#allocation4 + $0x1], 1 }
0x187c   :  { %2998 = vsyncpa [#allocation7], 1 }
0x187d   :  { %3000 = vsyncpa [#allocation7 + $0x1], 1 }
0x187e   :  { %3001 = vsyncpa [#allocation10], 1 }
0x187f   :  { %3002 = vsyncpa [#allocation13], 1 }
0x1880   :  { %3003 = vsyncpa [#allocation16], 1 }
0x1881   :  { %3004 = vsyncpa [#allocation19], 1 }
0x1882   :  { %3005 = vsyncpa [#allocation22], 1 }
0x1883   :  { %3006 = vsyncpa [#allocation25], 1 }
0x1884   :  { %3007 = vsyncpa [#allocation5], 1 }
0x1885   :  { %3009 = vsyncpa [#allocation5 + $0x1], 1 }
0x1886   :  { %3010 = vsyncpa [#allocation29], 1 }
0x1887   :  { %3012 = vsyncpa [#allocation29 + $0x1], 1 }

</bundles_post_ra>
